<compile_context>
chip_gen: v7x
topology: tpu7x:2x2x1
jax: 0.10.0
libtpu: 0.0.40
codegen_flags: <defaults>
</compile_context>

<pallas_src>
import functools

import jax
import jax.numpy as jnp
import numpy as np
from jax.experimental import pallas as pl
from jax.experimental.pallas import tpu as pltpu


# ----------------------------------------------------------------------------
# Pallas kernels
# ----------------------------------------------------------------------------
def _stage1_kernel(cols_ref, w_ref, b_ref, o_ref, *, cin, taps):
    """Fused [1x1 p1 | 1x1 t2 | 1x1 t3 | maxpool3x3 + 1x1 p4] stage.

    cols_ref: (tm, taps*cin)  lane-packed 3x3 pool taps of x (pad = -inf);
              tap `taps//2` is the unshifted x itself.
    w_ref:    (2*cin, Cout)   block_diag([W1|W2a|W3a], W4)
    b_ref:    (1, Cout)
    o_ref:    (tm, Cout)      slab [p1 | t2 | t3 | p4]
    """
    cols = cols_ref[...]
    center = taps // 2
    x = cols[:, center * cin:(center + 1) * cin]          # unshifted input
    m = cols[:, 0:cin]
    for t in range(1, taps):                              # static unroll, 9 taps
        m = jnp.maximum(m, cols[:, t * cin:(t + 1) * cin])
    xm = jnp.concatenate([x, m], axis=-1)                 # (tm, 2*cin)
    acc = jnp.dot(xm, w_ref[...], preferred_element_type=jnp.float32)
    acc = acc + b_ref[...]
    o_ref[...] = jnp.maximum(acc, 0.0).astype(o_ref.dtype)


def _matmul_bias_relu_kernel(x_ref, w_ref, b_ref, o_ref):
    """o = ReLU(x @ w + b): single wide-contraction MXU dot per tile."""
    acc = jnp.dot(x_ref[...], w_ref[...], preferred_element_type=jnp.float32)
    acc = acc + b_ref[...]
    o_ref[...] = jnp.maximum(acc, 0.0).astype(o_ref.dtype)


# ----------------------------------------------------------------------------
# Wrappers (padding / im2col / reshapes stay in plain JAX glue)
# ----------------------------------------------------------------------------
def _im2col(x_nhwc, K, pad_value=0.0):
    """Flat, lane-packed im2col: (N*H*W, K*K*C), SAME padding, stride 1."""
    N, H, W, C = x_nhwc.shape
    p = K // 2
    if p > 0:
        xp = jnp.pad(x_nhwc, ((0, 0), (p, p), (p, p), (0, 0)),
                     constant_values=pad_value)
    else:
        xp = x_nhwc
    cols = [xp[:, kh:kh + H, kw:kw + W, :] for kh in range(K) for kw in range(K)]
    return jnp.concatenate(cols, axis=-1).reshape(N * H * W, K * K * C)


def _block_diag(a, b):
    da0, da1 = a.shape
    db0, db1 = b.shape
    top = jnp.concatenate([a, jnp.zeros((da0, db1), a.dtype)], axis=1)
    bot = jnp.concatenate([jnp.zeros((db0, da1), b.dtype), b], axis=1)
    return jnp.concatenate([top, bot], axis=0)


def _tiled_call(kernel, x2d, w, b, *, tm):
    """Run `kernel` tiled over the flattened spatial dimension M."""
    M, din_x = x2d.shape
    din_w, dout = w.shape
    assert tm % 8 == 0, tm
    mp = ((M + tm - 1) // tm) * tm            # pad M up to a multiple of tm
    if mp != M:
        x2d = jnp.pad(x2d, ((0, mp - M), (0, 0)))
    out = pl.pallas_call(
        kernel,
        out_shape=jax.ShapeDtypeStruct((mp, dout), x2d.dtype),
        grid=(mp // tm,),
        in_specs=[
            pl.BlockSpec((tm, din_x), lambda i: (i, 0)),
            pl.BlockSpec((din_w, dout), lambda i: (0, 0)),
            pl.BlockSpec((1, dout), lambda i: (0, 0)),
        ],
        out_specs=pl.BlockSpec((tm, dout), lambda i: (i, 0)),
        compiler_params=pltpu.CompilerParams(
            dimension_semantics=("parallel",)),
    )(x2d, w, b.reshape(1, dout))
    return out[:M]


def inception_forward(x_nchw, params, *, tm=512):
    """Inception forward: (N, in_c, H, W) -> (N, c1+c2[1]+c3[1]+c4, H, W)."""
    x = jnp.transpose(x_nchw, (0, 2, 3, 1)).astype(jnp.float32)  # NCHW -> NHWC
    n, h, w_, cin = x.shape
    c1 = params["w1"].shape[-1]
    c2a, c2b = params["w2a"].shape[-1], params["w2b"].shape[-1]
    c3a, c3b = params["w3a"].shape[-1], params["w3b"].shape[-1]
    c4 = params["w4"].shape[-1]

    # ---- stage 1: fused 1x1 branches + (maxpool3x3 -> 1x1) branch ----
    pool_cols = _im2col(x, 3, pad_value=-jnp.inf)                 # (M, 9*cin)
    wcat = jnp.concatenate([params["w1"].reshape(cin, c1),
                            params["w2a"].reshape(cin, c2a),
                            params["w3a"].reshape(cin, c3a)], axis=1)
    wbig1 = _block_diag(wcat, params["w4"].reshape(cin, c4))      # (2*cin, .)
    bbig1 = jnp.concatenate([params["b1"], params["b2a"],
                             params["b3a"], params["b4"]])
    k1 = functools.partial(_stage1_kernel, cin=cin, taps=9)
    s1 = _tiled_call(k1, pool_cols, wbig1, bbig1, tm=tm)          # (M, c1+c2a+c3a+c4)
    p1 = s1[:, :c1]
    t2 = s1[:, c1:c1 + c2a].reshape(n, h, w_, c2a)
    t3 = s1[:, c1 + c2a:c1 + c2a + c3a].reshape(n, h, w_, c3a)
    p4 = s1[:, c1 + c2a + c3a:]

    # ---- stage 2: fused 3x3 conv (on t2) + 5x5 conv (on t3) ----
    xcol = jnp.concatenate([_im2col(t2, 3), _im2col(t3, 5)], axis=-1)
    wbig2 = _block_diag(params["w2b"].reshape(9 * c2a, c2b),
                        params["w3b"].reshape(25 * c3a, c3b))
    bbig2 = jnp.concatenate([params["b2b"], params["b3b"]])
    s2 = _tiled_call(_matmul_bias_relu_kernel, xcol, wbig2, bbig2, tm=tm)
    p2 = s2[:, :c2b]
    p3 = s2[:, c2b:]

    out = jnp.concatenate([p1, p2, p3, p4], axis=-1).reshape(n, h, w_, -1)
    return jnp.transpose(out, (0, 3, 1, 2))                       # NHWC -> NCHW


# ----------------------------------------------------------------------------
# Pure-JAX reference (for correctness check only)
# ----------------------------------------------------------------------------
def _ref_conv_relu(x_nhwc, w_hwio, b, K):
    p = K // 2
    y = jax.lax.conv_general_dilated(
        x_nhwc, w_hwio, window_strides=(1, 1), padding=((p, p), (p, p)),
        dimension_numbers=("NHWC", "HWIO", "NHWC"))
    return jax.nn.relu(y + b)


def _ref_maxpool(x_nhwc):
    return jax.lax.reduce_window(
        x_nhwc, -jnp.inf, jax.lax.max, (1, 3, 3, 1), (1, 1, 1, 1),
        padding=((0, 0), (1, 1), (1, 1), (0, 0)))


def inception_reference(x_nchw, params):
    x = jnp.transpose(x_nchw, (0, 2, 3, 1))
    p1 = _ref_conv_relu(x, params["w1"], params["b1"], 1)
    p2 = _ref_conv_relu(_ref_conv_relu(x, params["w2a"], params["b2a"], 1),
                        params["w2b"], params["b2b"], 3)
    p3 = _ref_conv_relu(_ref_conv_relu(x, params["w3a"], params["b3a"], 1),
                        params["w3b"], params["b3b"], 5)
    p4 = _ref_conv_relu(_ref_maxpool(x), params["w4"], params["b4"], 1)
    out = jnp.concatenate([p1, p2, p3, p4], axis=-1)
    return jnp.transpose(out, (0, 3, 1, 2))


# ----------------------------------------------------------------------------
# Deterministic parameter construction + run
# ----------------------------------------------------------------------------
def _init_conv(key, K, cin, cout, scale=0.1):
    kw, kb = jax.random.split(key)
    w = jax.random.normal(kw, (K, K, cin, cout), jnp.float32) * scale  # HWIO
    b = jax.random.normal(kb, (cout,), jnp.float32) * scale
    return w, b


if __name__ == "__main__":
    # Module config consistent with Inception(in_c, c1, c2, c3, c4)
    in_c, c1, c2, c3, c4 = 4, 8, (8, 16), (4, 8), 8
    N, H, W = 2, 16, 16

    key = jax.random.PRNGKey(0)
    k = jax.random.split(key, 7)
    params = {}
    params["w1"], params["b1"] = _init_conv(k[0], 1, in_c, c1)
    params["w2a"], params["b2a"] = _init_conv(k[1], 1, in_c, c2[0])
    params["w2b"], params["b2b"] = _init_conv(k[2], 3, c2[0], c2[1])
    params["w3a"], params["b3a"] = _init_conv(k[3], 1, in_c, c3[0])
    params["w3b"], params["b3b"] = _init_conv(k[4], 5, c3[0], c3[1])
    params["w4"], params["b4"] = _init_conv(k[5], 1, in_c, c4)

    x = jax.random.normal(k[6], (N, in_c, H, W), jnp.float32)  # NCHW like PyTorch

    fwd = jax.jit(inception_forward)
    out = jax.block_until_ready(fwd(x, params))
    ref = jax.block_until_ready(inception_reference(x, params))

    assert out.shape == (N, c1 + c2[1] + c3[1] + c4, H, W), out.shape
    np.testing.assert_allclose(np.asarray(out), np.asarray(ref),
                               rtol=1e-4, atol=1e-4)
    print("KERNEL_OK")
</pallas_src>

<mosaic_0001>
module attributes {stable_mosaic.version = 11 : i64} {
  func.func @_stage1_kernel(%arg0: i32, %arg1: memref<512x36xf32, #tpu.memory_space<vmem>>, %arg2: memref<8x28xf32, #tpu.memory_space<vmem>>, %arg3: memref<1x28xf32, #tpu.memory_space<vmem>>, %arg4: memref<512x28xf32, #tpu.memory_space<vmem>>) attributes {dimension_semantics = [#tpu.dimension_semantics<parallel>], iteration_bounds = array<i64: 1>, scalar_prefetch = 0 : i64, scratch_operands = 0 : i64, tpu.core_type = #tpu.core_type<tc>, window_params = [{transform_indices = @transform_0, window_bounds = array<i64: 512, 36>}, {pipeline_mode = #tpu.pipeline_mode<synchronous>, transform_indices = @transform_1, window_bounds = array<i64: 8, 28>}, {pipeline_mode = #tpu.pipeline_mode<synchronous>, transform_indices = @transform_2, window_bounds = array<i64: 1, 28>}, {transform_indices = @transform_3, window_bounds = array<i64: 512, 28>}]} {
    %c0 = arith.constant 0 : index
    %c0_0 = arith.constant 0 : index
    %0 = vector.load %arg1[%c0, %c0_0] : memref<512x36xf32, #tpu.memory_space<vmem>>, vector<512x36xf32>
    %1 = vector.extract_strided_slice %0 {offsets = [0, 16], sizes = [512, 4], strides = [1, 1]} : vector<512x36xf32> to vector<512x4xf32>
    %2 = vector.extract_strided_slice %0 {offsets = [0, 0], sizes = [512, 4], strides = [1, 1]} : vector<512x36xf32> to vector<512x4xf32>
    %3 = vector.extract_strided_slice %0 {offsets = [0, 4], sizes = [512, 4], strides = [1, 1]} : vector<512x36xf32> to vector<512x4xf32>
    %4 = arith.maximumf %2, %3 : vector<512x4xf32>
    %5 = vector.extract_strided_slice %0 {offsets = [0, 8], sizes = [512, 4], strides = [1, 1]} : vector<512x36xf32> to vector<512x4xf32>
    %6 = arith.maximumf %4, %5 : vector<512x4xf32>
    %7 = vector.extract_strided_slice %0 {offsets = [0, 12], sizes = [512, 4], strides = [1, 1]} : vector<512x36xf32> to vector<512x4xf32>
    %8 = arith.maximumf %6, %7 : vector<512x4xf32>
    %9 = vector.extract_strided_slice %0 {offsets = [0, 16], sizes = [512, 4], strides = [1, 1]} : vector<512x36xf32> to vector<512x4xf32>
    %10 = arith.maximumf %8, %9 : vector<512x4xf32>
    %11 = vector.extract_strided_slice %0 {offsets = [0, 20], sizes = [512, 4], strides = [1, 1]} : vector<512x36xf32> to vector<512x4xf32>
    %12 = arith.maximumf %10, %11 : vector<512x4xf32>
    %13 = vector.extract_strided_slice %0 {offsets = [0, 24], sizes = [512, 4], strides = [1, 1]} : vector<512x36xf32> to vector<512x4xf32>
    %14 = arith.maximumf %12, %13 : vector<512x4xf32>
    %15 = vector.extract_strided_slice %0 {offsets = [0, 28], sizes = [512, 4], strides = [1, 1]} : vector<512x36xf32> to vector<512x4xf32>
    %16 = arith.maximumf %14, %15 : vector<512x4xf32>
    %17 = vector.extract_strided_slice %0 {offsets = [0, 32], sizes = [512, 4], strides = [1, 1]} : vector<512x36xf32> to vector<512x4xf32>
    %18 = arith.maximumf %16, %17 : vector<512x4xf32>
    %19 = tpu.concatenate %1, %18 in 1 : vector<512x4xf32>, vector<512x4xf32> -> vector<512x8xf32>
    %c0_1 = arith.constant 0 : index
    %c0_2 = arith.constant 0 : index
    %20 = vector.load %arg2[%c0_1, %c0_2] : memref<8x28xf32, #tpu.memory_space<vmem>>, vector<8x28xf32>
    %cst = arith.constant dense<0.000000e+00> : vector<512x28xf32>
    %21 = tpu.matmul %19, %20, %cst {dimension_numbers = #tpu.dot_dimension_numbers<[1], [0], [0], [1], [0, 0, 1, 1], [], []>} : vector<512x8xf32>, vector<8x28xf32>, vector<512x28xf32> -> vector<512x28xf32>
    %c0_3 = arith.constant 0 : index
    %c0_4 = arith.constant 0 : index
    %22 = vector.load %arg3[%c0_3, %c0_4] : memref<1x28xf32, #tpu.memory_space<vmem>>, vector<1x28xf32>
    %23 = vector.broadcast %22 : vector<1x28xf32> to vector<512x28xf32>
    %24 = arith.addf %21, %23 : vector<512x28xf32>
    %cst_5 = arith.constant 0.000000e+00 : f32
    %25 = vector.broadcast %cst_5 : f32 to vector<512x28xf32>
    %26 = arith.maximumf %24, %25 : vector<512x28xf32>
    %c0_6 = arith.constant 0 : index
    %c0_7 = arith.constant 0 : index
    %27 = vector.load %arg4[%c0_6, %c0_7] : memref<512x28xf32, #tpu.memory_space<vmem>>, vector<512x28xf32>
    tpu.vector_store %arg4[%c0_6, %c0_7], %26 {strides = array<i32>} : memref<512x28xf32, #tpu.memory_space<vmem>>, vector<512x28xf32>,
    return
  }
  func.func @transform_0(%arg0: i32) -> (i32, i32) {
    %c0_i32 = arith.constant 0 : i32
    %c0_i32_0 = arith.constant 0 : i32
    return %arg0, %c0_i32 : i32, i32
  }
  func.func @transform_1(%arg0: i32) -> (i32, i32) {
    %c0_i32 = arith.constant 0 : i32
    %c0_i32_0 = arith.constant 0 : i32
    %c0_i32_1 = arith.constant 0 : i32
    return %c0_i32, %c0_i32_0 : i32, i32
  }
  func.func @transform_2(%arg0: i32) -> (i32, i32) {
    %c0_i32 = arith.constant 0 : i32
    %c0_i32_0 = arith.constant 0 : i32
    %c0_i32_1 = arith.constant 0 : i32
    return %c0_i32, %c0_i32_0 : i32, i32
  }
  func.func @transform_3(%arg0: i32) -> (i32, i32) {
    %c0_i32 = arith.constant 0 : i32
    %c0_i32_0 = arith.constant 0 : i32
    return %arg0, %c0_i32 : i32, i32
  }
}

module attributes {stable_mosaic.version = 11 : i64} {
  func.func @_matmul_bias_relu_kernel(%arg0: i32, %arg1: memref<512x172xf32, #tpu.memory_space<vmem>>, %arg2: memref<172x24xf32, #tpu.memory_space<vmem>>, %arg3: memref<1x24xf32, #tpu.memory_space<vmem>>, %arg4: memref<512x24xf32, #tpu.memory_space<vmem>>) attributes {dimension_semantics = [#tpu.dimension_semantics<parallel>], iteration_bounds = array<i64: 1>, scalar_prefetch = 0 : i64, scratch_operands = 0 : i64, tpu.core_type = #tpu.core_type<tc>, window_params = [{transform_indices = @transform_0, window_bounds = array<i64: 512, 172>}, {pipeline_mode = #tpu.pipeline_mode<synchronous>, transform_indices = @transform_1, window_bounds = array<i64: 172, 24>}, {pipeline_mode = #tpu.pipeline_mode<synchronous>, transform_indices = @transform_2, window_bounds = array<i64: 1, 24>}, {transform_indices = @transform_3, window_bounds = array<i64: 512, 24>}]} {
    %c0 = arith.constant 0 : index
    %c0_0 = arith.constant 0 : index
    %0 = vector.load %arg1[%c0, %c0_0] : memref<512x172xf32, #tpu.memory_space<vmem>>, vector<512x172xf32>
    %c0_1 = arith.constant 0 : index
    %c0_2 = arith.constant 0 : index
    %1 = vector.load %arg2[%c0_1, %c0_2] : memref<172x24xf32, #tpu.memory_space<vmem>>, vector<172x24xf32>
    %cst = arith.constant dense<0.000000e+00> : vector<512x24xf32>
    %2 = tpu.matmul %0, %1, %cst {dimension_numbers = #tpu.dot_dimension_numbers<[1], [0], [0], [1], [0, 0, 1, 1], [], []>} : vector<512x172xf32>, vector<172x24xf32>, vector<512x24xf32> -> vector<512x24xf32>
    %c0_3 = arith.constant 0 : index
    %c0_4 = arith.constant 0 : index
    %3 = vector.load %arg3[%c0_3, %c0_4] : memref<1x24xf32, #tpu.memory_space<vmem>>, vector<1x24xf32>
    %4 = vector.broadcast %3 : vector<1x24xf32> to vector<512x24xf32>
    %5 = arith.addf %2, %4 : vector<512x24xf32>
    %cst_5 = arith.constant 0.000000e+00 : f32
    %6 = vector.broadcast %cst_5 : f32 to vector<512x24xf32>
    %7 = arith.maximumf %5, %6 : vector<512x24xf32>
    %c0_6 = arith.constant 0 : index
    %c0_7 = arith.constant 0 : index
    %8 = vector.load %arg4[%c0_6, %c0_7] : memref<512x24xf32, #tpu.memory_space<vmem>>, vector<512x24xf32>
    tpu.vector_store %arg4[%c0_6, %c0_7], %7 {strides = array<i32>} : memref<512x24xf32, #tpu.memory_space<vmem>>, vector<512x24xf32>,
    return
  }
  func.func @transform_0(%arg0: i32) -> (i32, i32) {
    %c0_i32 = arith.constant 0 : i32
    %c0_i32_0 = arith.constant 0 : i32
    return %arg0, %c0_i32 : i32, i32
  }
  func.func @transform_1(%arg0: i32) -> (i32, i32) {
    %c0_i32 = arith.constant 0 : i32
    %c0_i32_0 = arith.constant 0 : i32
    %c0_i32_1 = arith.constant 0 : i32
    return %c0_i32, %c0_i32_0 : i32, i32
  }
  func.func @transform_2(%arg0: i32) -> (i32, i32) {
    %c0_i32 = arith.constant 0 : i32
    %c0_i32_0 = arith.constant 0 : i32
    %c0_i32_1 = arith.constant 0 : i32
    return %c0_i32, %c0_i32_0 : i32, i32
  }
  func.func @transform_3(%arg0: i32) -> (i32, i32) {
    %c0_i32 = arith.constant 0 : i32
    %c0_i32_0 = arith.constant 0 : i32
    return %arg0, %c0_i32 : i32, i32
  }
}

</mosaic_0001>

<bundles_post_ra>
// kernel: inception_forward.2
= control target key start
LH: loop header
LB: loop body
LE: loop exit
PB: predicated region body
PF: predicated region fallthrough
CT: control target
= control target key end

     0   :  { %s3566_s16 = smov 124   ;;  %s3567_s10 = smov 120   ;;  %vm2446_vm0 = vcmask 31744   ;;  %vm2519_vm1 = vcmask 64512   ;;  %vm3161_vm2 = vcmask 228352   ;;  %s7593_s0 = inlined_call_operand.vmem [shape: f32[512,36], index: 0, kind: input, shape index: {}]   ;;  %s7594_s1 = inlined_call_operand.vmem [shape: f32[8,28], index: 1, kind: input, shape index: {}]   ;;  %s7595_s2 = inlined_call_operand.vmem [shape: f32[1,28], index: 2, kind: input, shape index: {}]   ;;  %s7596_s3 = inlined_call_operand.vmem [shape: f32[512,28], index: 3, kind: output, shape index: {}]  }
   0x1   :  { %v3598_v0 = vld [vmem:[%s7593_s0 + $0x10] sm:$0xff]  ;;  %v3603_v1 = vld [vmem:[%s7593_s0] sm:$0xff]  ;;  %v3612_v2 = vld [vmem:[%s7593_s0 + $0x18] sm:$0xff]  ;;  %s3569_s11 = smov 112   ;;  %s3570_s14 = smov 108  }
   0x2   :  { %7729 = vst [vmem:[#allocation2_spill] sm:$0xff] %v3603_v1  ;;  %146 = vrot.lane.b32.xlu1 %v3598_v0, %s3566_s16  ;;  %142 = vrot.lane.b32.xlu0 %v3603_v1, %s3566_s16  ;;  %v3617_v3 = vld [vmem:[%s7593_s0 + $0x8] sm:$0xff]  ;;  %v3631_v5 = vld [vmem:[%s7593_s0 + $0x20] sm:$0xff]  ;;  %s3574_s19 = smov 4  }
   0x3   :  { %v3626_v4 = vld [vmem:[%s7593_s0 + $0x28] sm:$0xff]  ;;  %v3640_v6 = vld [vmem:[%s7593_s0 + $0x38] sm:$0xff]  ;;  %v3645_v7 = vld [vmem:[%s7593_s0 + $0x30] sm:$0xff] }
   0x4   :  { %v3654_v8 = vld [vmem:[%s7593_s0 + $0x48] sm:$0xff]  ;;  %v3659_v9 = vld [vmem:[%s7593_s0 + $0x40] sm:$0xff]  ;;  %v3668_v10 = vld [vmem:[%s7593_s0 + $0x58] sm:$0xff] }
   0x5   :  { %v3673_v11 = vld [vmem:[%s7593_s0 + $0x50] sm:$0xff]  ;;  %v3682_v12 = vld [vmem:[%s7593_s0 + $0x68] sm:$0xff]  ;;  %v3687_v13 = vld [vmem:[%s7593_s0 + $0x60] sm:$0xff] }
   0x6   :  { %148 = vrot.lane.b32.xlu1 %v3612_v2, %s3566_s16  ;;  %144 = vrot.lane.b32.xlu0 %v3617_v3, %s3566_s16  ;;  %v3696_v14 = vld [vmem:[%s7593_s0 + $0x78] sm:$0xff]  ;;  %v3701_v15 = vld [vmem:[%s7593_s0 + $0x70] sm:$0xff] }
   0x7   :  { %v3710_v16 = vld [vmem:[%s7593_s0 + $0x88] sm:$0xff]  ;;  %v3715_v17 = vld [vmem:[%s7593_s0 + $0x80] sm:$0xff]  ;;  %v3724_v18 = vld [vmem:[%s7593_s0 + $0x98] sm:$0xff] }
   0x8   :  { %v3729_v19 = vld [vmem:[%s7593_s0 + $0x90] sm:$0xff]  ;;  %v3738_v20 = vld [vmem:[%s7593_s0 + $0xa8] sm:$0xff]  ;;  %v3743_v21 = vld [vmem:[%s7593_s0 + $0xa0] sm:$0xff] }
   0x9   :  { %v3752_v22 = vld [vmem:[%s7593_s0 + $0xb8] sm:$0xff]  ;;  %v3757_v23 = vld [vmem:[%s7593_s0 + $0xb0] sm:$0xff]  ;;  %v3766_v24 = vld [vmem:[%s7593_s0 + $0xc8] sm:$0xff] }
   0xa   :  { %152 = vrot.lane.b32.xlu1 %v3626_v4, %s3566_s16  ;;  %150 = vrot.lane.b32.xlu0 %v3631_v5, %s3566_s16  ;;  %v3771_v25 = vld [vmem:[%s7593_s0 + $0xc0] sm:$0xff]  ;;  %v3780_v26 = vld [vmem:[%s7593_s0 + $0xd8] sm:$0xff] }
   0xb   :  { %v3785_v27 = vld [vmem:[%s7593_s0 + $0xd0] sm:$0xff]  ;;  %v3794_v28 = vld [vmem:[%s7593_s0 + $0xe8] sm:$0xff]  ;;  %v3799_v29 = vld [vmem:[%s7593_s0 + $0xe0] sm:$0xff] }
   0xc   :  { %v3808_v30 = vld [vmem:[%s7593_s0 + $0xf8] sm:$0xff]  ;;  %v3813_v31 = vld [vmem:[%s7593_s0 + $0xf0] sm:$0xff]  ;;  %v3822_v32 = vld [vmem:[%s7593_s0 + $0x108] sm:$0xff] }
   0xd   :  { %v3827_v33 = vld [vmem:[%s7593_s0 + $0x100] sm:$0xff]  ;;  %v3836_v34 = vld [vmem:[%s7593_s0 + $0x118] sm:$0xff]  ;;  %v3841_v35 = vld [vmem:[%s7593_s0 + $0x110] sm:$0xff] }
   0xe   :  { %156 = vrot.lane.b32.xlu1 %v3640_v6, %s3566_s16  ;;  %154 = vrot.lane.b32.xlu0 %v3645_v7, %s3566_s16  ;;  %v3850_v36 = vld [vmem:[%s7593_s0 + $0x128] sm:$0xff]  ;;  %v3855_v37 = vld [vmem:[%s7593_s0 + $0x120] sm:$0xff] }
   0xf   :  { %v3864_v38 = vld [vmem:[%s7593_s0 + $0x138] sm:$0xff]  ;;  %v3869_v39 = vld [vmem:[%s7593_s0 + $0x130] sm:$0xff]  ;;  %v3878_v40 = vld [vmem:[%s7593_s0 + $0x148] sm:$0xff] }
  0x10   :  { %v3883_v41 = vld [vmem:[%s7593_s0 + $0x140] sm:$0xff]  ;;  %v3892_v42 = vld [vmem:[%s7593_s0 + $0x158] sm:$0xff]  ;;  %v3897_v43 = vld [vmem:[%s7593_s0 + $0x150] sm:$0xff] }
  0x11   :  { %v3906_v44 = vld [vmem:[%s7593_s0 + $0x168] sm:$0xff]  ;;  %v3911_v45 = vld [vmem:[%s7593_s0 + $0x160] sm:$0xff]  ;;  %v3920_v46 = vld [vmem:[%s7593_s0 + $0x178] sm:$0xff] }
  0x12   :  { %160 = vrot.lane.b32.xlu1 %v3654_v8, %s3566_s16  ;;  %158 = vrot.lane.b32.xlu0 %v3659_v9, %s3566_s16  ;;  %v3925_v47 = vld [vmem:[%s7593_s0 + $0x170] sm:$0xff]  ;;  %v3934_v48 = vld [vmem:[%s7593_s0 + $0x188] sm:$0xff] }
  0x13   :  { %v3939_v49 = vld [vmem:[%s7593_s0 + $0x180] sm:$0xff]  ;;  %v3948_v50 = vld [vmem:[%s7593_s0 + $0x198] sm:$0xff]  ;;  %v3953_v51 = vld [vmem:[%s7593_s0 + $0x190] sm:$0xff] }
  0x14   :  { %7730 = vst [vmem:[#allocation3_spill] sm:$0xff] %v3939_v49  ;;  %7731 = vst [vmem:[#allocation4_spill] sm:$0xff] %v3948_v50  ;;  %v3962_v52 = vld [vmem:[%s7593_s0 + $0x1a8] sm:$0xff]  ;;  %v3967_v53 = vld [vmem:[%s7593_s0 + $0x1a0] sm:$0xff] }
  0x15   :  { %7732 = vst [vmem:[#allocation5_spill] sm:$0xff] %v3953_v51  ;;  %7733 = vst [vmem:[#allocation6_spill] sm:$0xff] %v3967_v53  ;;  %v3976_v54 = vld [vmem:[%s7593_s0 + $0x1b8] sm:$0xff]  ;;  %v3981_v55 = vld [vmem:[%s7593_s0 + $0x1b0] sm:$0xff] }
  0x16   :  { %164 = vrot.lane.b32.xlu1 %v3668_v10, %s3566_s16  ;;  %162 = vrot.lane.b32.xlu0 %v3673_v11, %s3566_s16  ;;  %7734 = vst [vmem:[#allocation7_spill] sm:$0xff] %v3976_v54  ;;  %7735 = vst [vmem:[#allocation8_spill] sm:$0xff] %v3981_v55  ;;  %v3990_v56 = vld [vmem:[%s7593_s0 + $0x1c8] sm:$0xff]  ;;  %v3995_v57 = vld [vmem:[%s7593_s0 + $0x1c0] sm:$0xff] }
  0x17   :  { %7736 = vst [vmem:[#allocation9_spill] sm:$0xff] %v3995_v57  ;;  %v4004_v58 = vld [vmem:[%s7593_s0 + $0x1d8] sm:$0xff]  ;;  %v4009_v59 = vld [vmem:[%s7593_s0 + $0x1d0] sm:$0xff]  ;;  %v4022_v62 = vld [vmem:[%s7593_s0 + $0x1e8] sm:$0xff] }
  0x18   :  { %7737 = vst [vmem:[#allocation10_spill] sm:$0xff] %v4004_v58  ;;  %7738 = vst [vmem:[#allocation11_spill] sm:$0xff] %v4009_v59  ;;  %v4027_v63 = vld [vmem:[%s7593_s0 + $0x1e0] sm:$0xff] }
  0x19   :  { %7741 = vst [vmem:[#allocation14_spill] sm:$0xff] %v4027_v63 }
  0x1a   :  { %168 = vrot.lane.b32.xlu1 %v3682_v12, %s3566_s16  ;;  %166 = vrot.lane.b32.xlu0 %v3687_v13, %s3566_s16 }
  0x1e   :  { %172 = vrot.lane.b32.xlu1 %v3696_v14, %s3566_s16  ;;  %170 = vrot.lane.b32.xlu0 %v3701_v15, %s3566_s16 }
  0x22   :  { %176 = vrot.lane.b32.xlu1 %v3710_v16, %s3566_s16  ;;  %174 = vrot.lane.b32.xlu0 %v3715_v17, %s3566_s16 }
  0x26   :  { %180 = vrot.lane.b32.xlu1 %v3724_v18, %s3566_s16  ;;  %178 = vrot.lane.b32.xlu0 %v3729_v19, %s3566_s16 }
  0x2a   :  { %184 = vrot.lane.b32.xlu1 %v3738_v20, %s3566_s16  ;;  %182 = vrot.lane.b32.xlu0 %v3743_v21, %s3566_s16 }
  0x2e   :  { %188 = vrot.lane.b32.xlu1 %v3752_v22, %s3566_s16  ;;  %186 = vrot.lane.b32.xlu0 %v3757_v23, %s3566_s16 }
  0x32   :  { %192 = vrot.lane.b32.xlu1 %v3766_v24, %s3566_s16  ;;  %190 = vrot.lane.b32.xlu0 %v3771_v25, %s3566_s16 }
  0x36   :  { %196 = vrot.lane.b32.xlu1 %v3780_v26, %s3566_s16  ;;  %194 = vrot.lane.b32.xlu0 %v3785_v27, %s3566_s16 }
  0x3a   :  { %200 = vrot.lane.b32.xlu1 %v3794_v28, %s3566_s16  ;;  %198 = vrot.lane.b32.xlu0 %v3799_v29, %s3566_s16 }
  0x3e   :  { %204 = vrot.lane.b32.xlu1 %v3808_v30, %s3566_s16  ;;  %202 = vrot.lane.b32.xlu0 %v3813_v31, %s3566_s16 }
  0x42   :  { %208 = vrot.lane.b32.xlu1 %v3822_v32, %s3566_s16  ;;  %206 = vrot.lane.b32.xlu0 %v3827_v33, %s3566_s16 }
  0x46   :  { %212 = vrot.lane.b32.xlu1 %v3836_v34, %s3566_s16  ;;  %210 = vrot.lane.b32.xlu0 %v3841_v35, %s3566_s16 }
  0x4a   :  { %216 = vrot.lane.b32.xlu1 %v3850_v36, %s3566_s16  ;;  %214 = vrot.lane.b32.xlu0 %v3855_v37, %s3566_s16 }
  0x4e   :  { %220 = vrot.lane.b32.xlu1 %v3864_v38, %s3566_s16  ;;  %218 = vrot.lane.b32.xlu0 %v3869_v39, %s3566_s16 }
  0x52   :  { %224 = vrot.lane.b32.xlu1 %v3878_v40, %s3566_s16  ;;  %222 = vrot.lane.b32.xlu0 %v3883_v41, %s3566_s16 }
  0x56   :  { %228 = vrot.lane.b32.xlu1 %v3892_v42, %s3566_s16  ;;  %226 = vrot.lane.b32.xlu0 %v3897_v43, %s3566_s16 }
  0x5a   :  { %232 = vrot.lane.b32.xlu1 %v3906_v44, %s3566_s16  ;;  %230 = vrot.lane.b32.xlu0 %v3911_v45, %s3566_s16 }
  0x5e   :  { %236 = vrot.lane.b32.xlu1 %v3920_v46, %s3566_s16  ;;  %234 = vrot.lane.b32.xlu0 %v3925_v47, %s3566_s16 }
  0x62   :  { %240 = vrot.lane.b32.xlu1 %v3934_v48, %s3566_s16  ;;  %238 = vrot.lane.b32.xlu0 %v3939_v49, %s3566_s16 }
  0x66   :  { %244 = vrot.lane.b32.xlu1 %v3948_v50, %s3566_s16  ;;  %242 = vrot.lane.b32.xlu0 %v3953_v51, %s3566_s16 }
  0x6a   :  { %248 = vrot.lane.b32.xlu1 %v3962_v52, %s3566_s16  ;;  %246 = vrot.lane.b32.xlu0 %v3967_v53, %s3566_s16 }
  0x6e   :  { %252 = vrot.lane.b32.xlu1 %v3976_v54, %s3566_s16  ;;  %250 = vrot.lane.b32.xlu0 %v3981_v55, %s3566_s16 }
  0x72   :  { %256 = vrot.lane.b32.xlu1 %v3990_v56, %s3566_s16  ;;  %254 = vrot.lane.b32.xlu0 %v3995_v57, %s3566_s16 }
  0x74   :  { %v4011_v60 = vpop.permute.xlu1 %146  ;;  %v4013_v61 = vpop.permute.xlu0 %142 }
  0x75   :  { %7739 = vst [vmem:[#allocation12_spill] sm:$0xff] %v4011_v60  ;;  %7740 = vst [vmem:[#allocation13_spill] sm:$0xff] %v4013_v61  ;;  %v4040_v61 = vld [vmem:[%s7593_s0 + $0x1f8] sm:$0xff] }
  0x76   :  { %260 = vrot.lane.b32.xlu1 %v4004_v58, %s3566_s16  ;;  %258 = vrot.lane.b32.xlu0 %v4009_v59, %s3566_s16  ;;  %v4045_v59 = vld [vmem:[%s7593_s0 + $0x1f0] sm:$0xff] }
  0x78   :  { %v4029_v57 = vpop.permute.xlu1 %148  ;;  %v4031_v60 = vpop.permute.xlu0 %144 }
  0x79   :  { %7742 = vst [vmem:[#allocation15_spill] sm:$0xff] %v4029_v57  ;;  %7743 = vst [vmem:[#allocation16_spill] sm:$0xff] %v4031_v60 }
  0x7a   :  { %264 = vrot.lane.b32.xlu1 %v4022_v62, %s3566_s16  ;;  %262 = vrot.lane.b32.xlu0 %v4027_v63, %s3566_s16 }
  0x7c   :  { %v4047_v58 = vpop.permute.xlu1 %152  ;;  %v4049_v57 = vpop.permute.xlu0 %150 }
  0x7d   :  { %7744 = vst [vmem:[#allocation17_spill] sm:$0xff] %v4047_v58  ;;  %7745 = vst [vmem:[#allocation18_spill] sm:$0xff] %v4049_v57 }
  0x7e   :  { %268 = vrot.lane.b32.xlu1 %v4040_v61, %s3566_s16  ;;  %266 = vrot.lane.b32.xlu0 %v4045_v59, %s3566_s16  ;;  %s3568_s16 = smov 116  }
  0x80   :  { %v4055_v60 = vpop.permute.xlu1 %156  ;;  %v4057_v63 = vpop.permute.xlu0 %154 }
  0x81   :  { %7746 = vst [vmem:[#allocation19_spill] sm:$0xff] %v4055_v60  ;;  %7747 = vst [vmem:[#allocation20_spill] sm:$0xff] %v4057_v63 }
  0x82   :  { %400 = vrot.lane.b32.xlu1 %v3617_v3, %s3567_s10  ;;  %398 = vrot.lane.b32.xlu0 %v3603_v1, %s3567_s10 }
  0x84   :  { %v4063_v58 = vpop.permute.xlu1 %160  ;;  %v4065_v57 = vpop.permute.xlu0 %158 }
  0x85   :  { %7748 = vst [vmem:[#allocation21_spill] sm:$0xff] %v4063_v58  ;;  %7749 = vst [vmem:[#allocation22_spill] sm:$0xff] %v4065_v57 }
  0x86   :  { %404 = vrot.lane.b32.xlu1 %v3612_v2, %s3567_s10  ;;  %402 = vrot.lane.b32.xlu0 %v3598_v0, %s3567_s10 }
  0x88   :  { %v4071_v60 = vpop.permute.xlu1 %164  ;;  %v4073_v63 = vpop.permute.xlu0 %162 }
  0x89   :  { %7750 = vst [vmem:[#allocation23_spill] sm:$0xff] %v4071_v60  ;;  %7751 = vst [vmem:[#allocation24_spill] sm:$0xff] %v4073_v63 }
  0x8a   :  { %408 = vrot.lane.b32.xlu1 %v3626_v4, %s3567_s10  ;;  %406 = vrot.lane.b32.xlu0 %v3631_v5, %s3567_s10 }
  0x8c   :  { %v4079_v1 = vpop.permute.xlu1 %168  ;;  %v4081_v58 = vpop.permute.xlu0 %166 }
  0x8d   :  { %7752 = vst [vmem:[#allocation25_spill] sm:$0xff] %v4079_v1  ;;  %7753 = vst [vmem:[#allocation26_spill] sm:$0xff] %v4081_v58 }
  0x8e   :  { %412 = vrot.lane.b32.xlu1 %v3640_v6, %s3567_s10  ;;  %410 = vrot.lane.b32.xlu0 %v3645_v7, %s3567_s10 }
  0x90   :  { %v4087_v57 = vpop.permute.xlu1 %172  ;;  %v4089_v60 = vpop.permute.xlu0 %170 }
  0x91   :  { %7754 = vst [vmem:[#allocation27_spill] sm:$0xff] %v4087_v57  ;;  %7755 = vst [vmem:[#allocation28_spill] sm:$0xff] %v4089_v60 }
  0x92   :  { %416 = vrot.lane.b32.xlu1 %v3654_v8, %s3567_s10  ;;  %414 = vrot.lane.b32.xlu0 %v3659_v9, %s3567_s10 }
  0x94   :  { %v4095_v63 = vpop.permute.xlu1 %176  ;;  %v4097_v1 = vpop.permute.xlu0 %174 }
  0x95   :  { %7756 = vst [vmem:[#allocation29_spill] sm:$0xff] %v4095_v63  ;;  %7757 = vst [vmem:[#allocation30_spill] sm:$0xff] %v4097_v1 }
  0x96   :  { %420 = vrot.lane.b32.xlu1 %v3668_v10, %s3567_s10  ;;  %418 = vrot.lane.b32.xlu0 %v3673_v11, %s3567_s10 }
  0x98   :  { %v4103_v58 = vpop.permute.xlu1 %180  ;;  %v4105_v57 = vpop.permute.xlu0 %178 }
  0x99   :  { %7758 = vst [vmem:[#allocation31_spill] sm:$0xff] %v4103_v58  ;;  %7759 = vst [vmem:[#allocation32_spill] sm:$0xff] %v4105_v57 }
  0x9a   :  { %424 = vrot.lane.b32.xlu1 %v3682_v12, %s3567_s10  ;;  %422 = vrot.lane.b32.xlu0 %v3687_v13, %s3567_s10 }
  0x9c   :  { %v4111_v60 = vpop.permute.xlu1 %184  ;;  %v4113_v63 = vpop.permute.xlu0 %182 }
  0x9d   :  { %7760 = vst [vmem:[#allocation33_spill] sm:$0xff] %v4111_v60  ;;  %7761 = vst [vmem:[#allocation34_spill] sm:$0xff] %v4113_v63 }
  0x9e   :  { %428 = vrot.lane.b32.xlu1 %v3696_v14, %s3567_s10  ;;  %426 = vrot.lane.b32.xlu0 %v3701_v15, %s3567_s10 }
  0xa0   :  { %v4119_v1 = vpop.permute.xlu1 %188  ;;  %v4121_v58 = vpop.permute.xlu0 %186 }
  0xa1   :  { %7762 = vst [vmem:[#allocation35_spill] sm:$0xff] %v4119_v1  ;;  %7763 = vst [vmem:[#allocation36_spill] sm:$0xff] %v4121_v58 }
  0xa2   :  { %432 = vrot.lane.b32.xlu1 %v3710_v16, %s3567_s10  ;;  %430 = vrot.lane.b32.xlu0 %v3715_v17, %s3567_s10 }
  0xa4   :  { %v4127_v57 = vpop.permute.xlu1 %192  ;;  %v4129_v60 = vpop.permute.xlu0 %190 }
  0xa5   :  { %7764 = vst [vmem:[#allocation37_spill] sm:$0xff] %v4127_v57  ;;  %7765 = vst [vmem:[#allocation38_spill] sm:$0xff] %v4129_v60 }
  0xa6   :  { %436 = vrot.lane.b32.xlu1 %v3724_v18, %s3567_s10  ;;  %434 = vrot.lane.b32.xlu0 %v3729_v19, %s3567_s10 }
  0xa8   :  { %v4135_v63 = vpop.permute.xlu1 %196  ;;  %v4137_v1 = vpop.permute.xlu0 %194 }
  0xa9   :  { %7766 = vst [vmem:[#allocation39_spill] sm:$0xff] %v4135_v63  ;;  %7767 = vst [vmem:[#allocation40_spill] sm:$0xff] %v4137_v1 }
  0xaa   :  { %440 = vrot.lane.b32.xlu1 %v3738_v20, %s3567_s10  ;;  %438 = vrot.lane.b32.xlu0 %v3743_v21, %s3567_s10 }
  0xac   :  { %v4143_v58 = vpop.permute.xlu1 %200  ;;  %v4145_v57 = vpop.permute.xlu0 %198 }
  0xad   :  { %7768 = vst [vmem:[#allocation41_spill] sm:$0xff] %v4143_v58  ;;  %7769 = vst [vmem:[#allocation42_spill] sm:$0xff] %v4145_v57 }
  0xae   :  { %444 = vrot.lane.b32.xlu1 %v3752_v22, %s3567_s10  ;;  %442 = vrot.lane.b32.xlu0 %v3757_v23, %s3567_s10 }
  0xb0   :  { %v4151_v60 = vpop.permute.xlu1 %204  ;;  %v4153_v63 = vpop.permute.xlu0 %202 }
  0xb1   :  { %7770 = vst [vmem:[#allocation43_spill] sm:$0xff] %v4151_v60  ;;  %7771 = vst [vmem:[#allocation44_spill] sm:$0xff] %v4153_v63 }
  0xb2   :  { %448 = vrot.lane.b32.xlu1 %v3766_v24, %s3567_s10  ;;  %446 = vrot.lane.b32.xlu0 %v3771_v25, %s3567_s10 }
  0xb4   :  { %v4159_v1 = vpop.permute.xlu1 %208  ;;  %v4161_v58 = vpop.permute.xlu0 %206 }
  0xb5   :  { %7772 = vst [vmem:[#allocation45_spill] sm:$0xff] %v4159_v1  ;;  %7773 = vst [vmem:[#allocation46_spill] sm:$0xff] %v4161_v58 }
  0xb6   :  { %452 = vrot.lane.b32.xlu1 %v3780_v26, %s3567_s10  ;;  %450 = vrot.lane.b32.xlu0 %v3785_v27, %s3567_s10 }
  0xb8   :  { %v4167_v57 = vpop.permute.xlu1 %212  ;;  %v4169_v60 = vpop.permute.xlu0 %210 }
  0xb9   :  { %7774 = vst [vmem:[#allocation47_spill] sm:$0xff] %v4167_v57  ;;  %7775 = vst [vmem:[#allocation48_spill] sm:$0xff] %v4169_v60 }
  0xba   :  { %456 = vrot.lane.b32.xlu1 %v3794_v28, %s3567_s10  ;;  %454 = vrot.lane.b32.xlu0 %v3799_v29, %s3567_s10 }
  0xbc   :  { %v4175_v63 = vpop.permute.xlu1 %216  ;;  %v4177_v1 = vpop.permute.xlu0 %214 }
  0xbd   :  { %7776 = vst [vmem:[#allocation49_spill] sm:$0xff] %v4175_v63  ;;  %7777 = vst [vmem:[#allocation50_spill] sm:$0xff] %v4177_v1 }
  0xbe   :  { %460 = vrot.lane.b32.xlu1 %v3808_v30, %s3567_s10  ;;  %458 = vrot.lane.b32.xlu0 %v3813_v31, %s3567_s10 }
  0xc0   :  { %v4183_v58 = vpop.permute.xlu1 %220  ;;  %v4185_v57 = vpop.permute.xlu0 %218 }
  0xc1   :  { %7778 = vst [vmem:[#allocation51_spill] sm:$0xff] %v4183_v58  ;;  %7779 = vst [vmem:[#allocation52_spill] sm:$0xff] %v4185_v57 }
  0xc2   :  { %464 = vrot.lane.b32.xlu1 %v3822_v32, %s3567_s10  ;;  %462 = vrot.lane.b32.xlu0 %v3827_v33, %s3567_s10 }
  0xc4   :  { %v4191_v60 = vpop.permute.xlu1 %224  ;;  %v4193_v63 = vpop.permute.xlu0 %222 }
  0xc5   :  { %7780 = vst [vmem:[#allocation53_spill] sm:$0xff] %v4191_v60  ;;  %7781 = vst [vmem:[#allocation54_spill] sm:$0xff] %v4193_v63 }
  0xc6   :  { %468 = vrot.lane.b32.xlu1 %v3836_v34, %s3567_s10  ;;  %466 = vrot.lane.b32.xlu0 %v3841_v35, %s3567_s10 }
  0xc8   :  { %v4199_v1 = vpop.permute.xlu1 %228  ;;  %v4201_v58 = vpop.permute.xlu0 %226 }
  0xc9   :  { %7782 = vst [vmem:[#allocation55_spill] sm:$0xff] %v4199_v1  ;;  %7783 = vst [vmem:[#allocation56_spill] sm:$0xff] %v4201_v58 }
  0xca   :  { %472 = vrot.lane.b32.xlu1 %v3850_v36, %s3567_s10  ;;  %470 = vrot.lane.b32.xlu0 %v3855_v37, %s3567_s10 }
  0xcc   :  { %v4207_v57 = vpop.permute.xlu1 %232  ;;  %v4209_v60 = vpop.permute.xlu0 %230 }
  0xcd   :  { %7784 = vst [vmem:[#allocation57_spill] sm:$0xff] %v4207_v57  ;;  %7785 = vst [vmem:[#allocation58_spill] sm:$0xff] %v4209_v60 }
  0xce   :  { %476 = vrot.lane.b32.xlu1 %v3864_v38, %s3567_s10  ;;  %474 = vrot.lane.b32.xlu0 %v3869_v39, %s3567_s10 }
  0xd0   :  { %v4215_v63 = vpop.permute.xlu1 %236  ;;  %v4217_v1 = vpop.permute.xlu0 %234 }
  0xd1   :  { %7786 = vst [vmem:[#allocation59_spill] sm:$0xff] %v4215_v63  ;;  %7787 = vst [vmem:[#allocation60_spill] sm:$0xff] %v4217_v1 }
  0xd2   :  { %480 = vrot.lane.b32.xlu1 %v3878_v40, %s3567_s10  ;;  %478 = vrot.lane.b32.xlu0 %v3883_v41, %s3567_s10 }
  0xd4   :  { %v4223_v58 = vpop.permute.xlu1 %240  ;;  %v4225_v57 = vpop.permute.xlu0 %238 }
  0xd5   :  { %7788 = vst [vmem:[#allocation61_spill] sm:$0xff] %v4223_v58  ;;  %7789 = vst [vmem:[#allocation62_spill] sm:$0xff] %v4225_v57 }
  0xd6   :  { %484 = vrot.lane.b32.xlu1 %v3892_v42, %s3567_s10  ;;  %482 = vrot.lane.b32.xlu0 %v3897_v43, %s3567_s10 }
  0xd8   :  { %v4231_v60 = vpop.permute.xlu1 %244  ;;  %v4233_v63 = vpop.permute.xlu0 %242 }
  0xd9   :  { %7790 = vst [vmem:[#allocation63_spill] sm:$0xff] %v4231_v60  ;;  %7791 = vst [vmem:[#allocation64_spill] sm:$0xff] %v4233_v63 }
  0xda   :  { %488 = vrot.lane.b32.xlu1 %v3906_v44, %s3567_s10  ;;  %486 = vrot.lane.b32.xlu0 %v3911_v45, %s3567_s10 }
  0xdc   :  { %v4239_v1 = vpop.permute.xlu1 %248  ;;  %v4241_v58 = vpop.permute.xlu0 %246 }
  0xdd   :  { %7792 = vst [vmem:[#allocation65_spill] sm:$0xff] %v4239_v1  ;;  %7793 = vst [vmem:[#allocation66_spill] sm:$0xff] %v4241_v58 }
  0xde   :  { %492 = vrot.lane.b32.xlu1 %v3920_v46, %s3567_s10  ;;  %490 = vrot.lane.b32.xlu0 %v3925_v47, %s3567_s10 }
  0xe0   :  { %v4247_v57 = vpop.permute.xlu1 %252  ;;  %v4249_v60 = vpop.permute.xlu0 %250 }
  0xe1   :  { %7794 = vst [vmem:[#allocation67_spill] sm:$0xff] %v4247_v57  ;;  %7795 = vst [vmem:[#allocation68_spill] sm:$0xff] %v4249_v60 }
  0xe2   :  { %496 = vrot.lane.b32.xlu1 %v3934_v48, %s3567_s10  ;;  %494 = vrot.lane.b32.xlu0 %v3939_v49, %s3567_s10 }
  0xe4   :  { %v4255_v63 = vpop.permute.xlu1 %256  ;;  %v4257_v1 = vpop.permute.xlu0 %254 }
  0xe5   :  { %7796 = vst [vmem:[#allocation69_spill] sm:$0xff] %v4255_v63  ;;  %7797 = vst [vmem:[#allocation70_spill] sm:$0xff] %v4257_v1 }
  0xe6   :  { %500 = vrot.lane.b32.xlu1 %v3948_v50, %s3567_s10  ;;  %498 = vrot.lane.b32.xlu0 %v3953_v51, %s3567_s10 }
  0xe8   :  { %v4263_v58 = vpop.permute.xlu1 %260  ;;  %v4265_v57 = vpop.permute.xlu0 %258 }
  0xe9   :  { %7798 = vst [vmem:[#allocation71_spill] sm:$0xff] %v4263_v58  ;;  %7799 = vst [vmem:[#allocation72_spill] sm:$0xff] %v4265_v57  ;;  %v7804_v57 = vld [vmem:[#allocation9_spill] sm:$0xff] }
  0xea   :  { %504 = vrot.lane.b32.xlu1 %v3962_v52, %s3567_s10  ;;  %502 = vrot.lane.b32.xlu0 %v3967_v53, %s3567_s10 }
  0xec   :  { %v4271_v60 = vpop.permute.xlu1 %264  ;;  %v4273_v63 = vpop.permute.xlu0 %262 }
  0xed   :  { %7800 = vst [vmem:[#allocation73_spill] sm:$0xff] %v4271_v60  ;;  %7801 = vst [vmem:[#allocation74_spill] sm:$0xff] %v4273_v63  ;;  %v7807_v63 = vld [vmem:[#allocation10_spill] sm:$0xff] }
  0xee   :  { %508 = vrot.lane.b32.xlu1 %v3976_v54, %s3567_s10  ;;  %506 = vrot.lane.b32.xlu0 %v3981_v55, %s3567_s10  ;;  %v7808_v54 = vld [vmem:[#allocation11_spill] sm:$0xff] }
  0xf0   :  { %v4279_v1 = vpop.permute.xlu1 %268  ;;  %v4281_v58 = vpop.permute.xlu0 %266 }
  0xf1   :  { %7802 = vst [vmem:[#allocation75_spill] sm:$0xff] %v4279_v1  ;;  %7803 = vst [vmem:[#allocation76_spill] sm:$0xff] %v4281_v58  ;;  %v7811_v58 = vld [vmem:[#allocation14_spill] sm:$0xff] }
  0xf2   :  { %512 = vrot.lane.b32.xlu1 %v3990_v56, %s3567_s10  ;;  %510 = vrot.lane.b32.xlu0 %v7804_v57, %s3567_s10 }
  0xf4   :  { %v4287_v53 = vpop.permute.xlu1 %400  ;;  %v4289_v60 = vpop.permute.xlu0 %398 }
  0xf5   :  { %7805 = vst [vmem:[#allocation77_spill] sm:$0xff] %v4287_v53  ;;  %7806 = vst [vmem:[#allocation78_spill] sm:$0xff] %v4289_v60 }
  0xf6   :  { %516 = vrot.lane.b32.xlu1 %v7807_v63, %s3567_s10  ;;  %514 = vrot.lane.b32.xlu0 %v7808_v54, %s3567_s10 }
  0xf8   :  { %v4295_v55 = vpop.permute.xlu1 %404  ;;  %v4297_v1 = vpop.permute.xlu0 %402 }
  0xf9   :  { %7809 = vst [vmem:[#allocation10_spill] sm:$0xff] %v4295_v55  ;;  %7810 = vst [vmem:[#allocation11_spill] sm:$0xff] %v4297_v1  ;;  %v7816_v1 = vld [vmem:[#allocation2_spill] sm:$0xff] }
  0xfa   :  { %520 = vrot.lane.b32.xlu1 %v4022_v62, %s3567_s10  ;;  %518 = vrot.lane.b32.xlu0 %v7811_v58, %s3567_s10 }
  0xfc   :  { %v4303_v57 = vpop.permute.xlu1 %408  ;;  %v4305_v53 = vpop.permute.xlu0 %406 }
  0xfd   :  { %7812 = vst [vmem:[#allocation14_spill] sm:$0xff] %v4303_v57  ;;  %7813 = vst [vmem:[#allocation79_spill] sm:$0xff] %v4305_v53 }
  0xfe   :  { %524 = vrot.lane.b32.xlu1 %v4040_v61, %s3567_s10  ;;  %522 = vrot.lane.b32.xlu0 %v4045_v59, %s3567_s10 }
 0x100   :  { %v4311_v60 = vpop.permute.xlu1 %412  ;;  %v4313_v55 = vpop.permute.xlu0 %410 }
 0x101   :  { %7814 = vst [vmem:[#allocation80_spill] sm:$0xff] %v4311_v60  ;;  %7815 = vst [vmem:[#allocation81_spill] sm:$0xff] %v4313_v55 }
 0x102   :  { %656 = vrot.lane.b32.xlu1 %v3617_v3, %s3568_s16  ;;  %654 = vrot.lane.b32.xlu0 %v7816_v1, %s3568_s16 }
 0x104   :  { %v4319_v57 = vpop.permute.xlu1 %416  ;;  %v4321_v53 = vpop.permute.xlu0 %414 }
 0x105   :  { %7817 = vst [vmem:[#allocation82_spill] sm:$0xff] %v4319_v57  ;;  %7818 = vst [vmem:[#allocation83_spill] sm:$0xff] %v4321_v53 }
 0x106   :  { %660 = vrot.lane.b32.xlu1 %v3612_v2, %s3568_s16  ;;  %658 = vrot.lane.b32.xlu0 %v3598_v0, %s3568_s16 }
 0x108   :  { %v4327_v60 = vpop.permute.xlu1 %420  ;;  %v4329_v55 = vpop.permute.xlu0 %418 }
 0x109   :  { %7819 = vst [vmem:[#allocation84_spill] sm:$0xff] %v4327_v60  ;;  %7820 = vst [vmem:[#allocation85_spill] sm:$0xff] %v4329_v55 }
 0x10a   :  { %664 = vrot.lane.b32.xlu1 %v3626_v4, %s3568_s16  ;;  %662 = vrot.lane.b32.xlu0 %v3631_v5, %s3568_s16 }
 0x10c   :  { %v4335_v1 = vpop.permute.xlu1 %424  ;;  %v4337_v57 = vpop.permute.xlu0 %422 }
 0x10d   :  { %7821 = vst [vmem:[#allocation86_spill] sm:$0xff] %v4335_v1  ;;  %7822 = vst [vmem:[#allocation87_spill] sm:$0xff] %v4337_v57 }
 0x10e   :  { %668 = vrot.lane.b32.xlu1 %v3640_v6, %s3568_s16  ;;  %666 = vrot.lane.b32.xlu0 %v3645_v7, %s3568_s16 }
 0x110   :  { %v4343_v53 = vpop.permute.xlu1 %428  ;;  %v4345_v60 = vpop.permute.xlu0 %426 }
 0x111   :  { %7823 = vst [vmem:[#allocation88_spill] sm:$0xff] %v4343_v53  ;;  %7824 = vst [vmem:[#allocation89_spill] sm:$0xff] %v4345_v60 }
 0x112   :  { %672 = vrot.lane.b32.xlu1 %v3654_v8, %s3568_s16  ;;  %670 = vrot.lane.b32.xlu0 %v3659_v9, %s3568_s16 }
 0x114   :  { %v4351_v55 = vpop.permute.xlu1 %432  ;;  %v4353_v1 = vpop.permute.xlu0 %430 }
 0x115   :  { %7825 = vst [vmem:[#allocation90_spill] sm:$0xff] %v4351_v55  ;;  %7826 = vst [vmem:[#allocation91_spill] sm:$0xff] %v4353_v1 }
 0x116   :  { %676 = vrot.lane.b32.xlu1 %v3668_v10, %s3568_s16  ;;  %674 = vrot.lane.b32.xlu0 %v3673_v11, %s3568_s16 }
 0x118   :  { %v4359_v57 = vpop.permute.xlu1 %436  ;;  %v4361_v53 = vpop.permute.xlu0 %434 }
 0x119   :  { %7827 = vst [vmem:[#allocation92_spill] sm:$0xff] %v4359_v57  ;;  %7828 = vst [vmem:[#allocation93_spill] sm:$0xff] %v4361_v53 }
 0x11a   :  { %680 = vrot.lane.b32.xlu1 %v3682_v12, %s3568_s16  ;;  %678 = vrot.lane.b32.xlu0 %v3687_v13, %s3568_s16 }
 0x11c   :  { %v4367_v60 = vpop.permute.xlu1 %440  ;;  %v4369_v55 = vpop.permute.xlu0 %438 }
 0x11d   :  { %7829 = vst [vmem:[#allocation94_spill] sm:$0xff] %v4367_v60  ;;  %7830 = vst [vmem:[#allocation95_spill] sm:$0xff] %v4369_v55 }
 0x11e   :  { %684 = vrot.lane.b32.xlu1 %v3696_v14, %s3568_s16  ;;  %682 = vrot.lane.b32.xlu0 %v3701_v15, %s3568_s16 }
 0x120   :  { %v4375_v1 = vpop.permute.xlu1 %444  ;;  %v4377_v57 = vpop.permute.xlu0 %442 }
 0x121   :  { %7831 = vst [vmem:[#allocation96_spill] sm:$0xff] %v4375_v1  ;;  %7832 = vst [vmem:[#allocation97_spill] sm:$0xff] %v4377_v57 }
 0x122   :  { %688 = vrot.lane.b32.xlu1 %v3710_v16, %s3568_s16  ;;  %686 = vrot.lane.b32.xlu0 %v3715_v17, %s3568_s16 }
 0x124   :  { %v4383_v53 = vpop.permute.xlu1 %448  ;;  %v4385_v60 = vpop.permute.xlu0 %446 }
 0x125   :  { %7833 = vst [vmem:[#allocation98_spill] sm:$0xff] %v4383_v53  ;;  %7834 = vst [vmem:[#allocation99_spill] sm:$0xff] %v4385_v60 }
 0x126   :  { %692 = vrot.lane.b32.xlu1 %v3724_v18, %s3568_s16  ;;  %690 = vrot.lane.b32.xlu0 %v3729_v19, %s3568_s16 }
 0x128   :  { %v4391_v55 = vpop.permute.xlu1 %452  ;;  %v4393_v1 = vpop.permute.xlu0 %450 }
 0x129   :  { %7835 = vst [vmem:[#allocation100_spill] sm:$0xff] %v4391_v55  ;;  %7836 = vst [vmem:[#allocation101_spill] sm:$0xff] %v4393_v1 }
 0x12a   :  { %696 = vrot.lane.b32.xlu1 %v3738_v20, %s3568_s16  ;;  %694 = vrot.lane.b32.xlu0 %v3743_v21, %s3568_s16 }
 0x12c   :  { %v4399_v57 = vpop.permute.xlu1 %456  ;;  %v4401_v53 = vpop.permute.xlu0 %454 }
 0x12d   :  { %7837 = vst [vmem:[#allocation102_spill] sm:$0xff] %v4399_v57  ;;  %7838 = vst [vmem:[#allocation103_spill] sm:$0xff] %v4401_v53 }
 0x12e   :  { %700 = vrot.lane.b32.xlu1 %v3752_v22, %s3568_s16  ;;  %698 = vrot.lane.b32.xlu0 %v3757_v23, %s3568_s16 }
 0x130   :  { %v4407_v60 = vpop.permute.xlu1 %460  ;;  %v4409_v55 = vpop.permute.xlu0 %458 }
 0x131   :  { %7839 = vst [vmem:[#allocation104_spill] sm:$0xff] %v4407_v60  ;;  %7840 = vst [vmem:[#allocation105_spill] sm:$0xff] %v4409_v55 }
 0x132   :  { %704 = vrot.lane.b32.xlu1 %v3766_v24, %s3568_s16  ;;  %702 = vrot.lane.b32.xlu0 %v3771_v25, %s3568_s16 }
 0x134   :  { %v4415_v1 = vpop.permute.xlu1 %464  ;;  %v4417_v57 = vpop.permute.xlu0 %462 }
 0x135   :  { %7841 = vst [vmem:[#allocation106_spill] sm:$0xff] %v4415_v1  ;;  %7842 = vst [vmem:[#allocation107_spill] sm:$0xff] %v4417_v57 }
 0x136   :  { %708 = vrot.lane.b32.xlu1 %v3780_v26, %s3568_s16  ;;  %706 = vrot.lane.b32.xlu0 %v3785_v27, %s3568_s16 }
 0x138   :  { %v4423_v53 = vpop.permute.xlu1 %468  ;;  %v4425_v60 = vpop.permute.xlu0 %466 }
 0x139   :  { %7843 = vst [vmem:[#allocation108_spill] sm:$0xff] %v4423_v53  ;;  %7844 = vst [vmem:[#allocation109_spill] sm:$0xff] %v4425_v60 }
 0x13a   :  { %712 = vrot.lane.b32.xlu1 %v3794_v28, %s3568_s16  ;;  %710 = vrot.lane.b32.xlu0 %v3799_v29, %s3568_s16 }
 0x13c   :  { %v4431_v55 = vpop.permute.xlu1 %472  ;;  %v4433_v1 = vpop.permute.xlu0 %470 }
 0x13d   :  { %7845 = vst [vmem:[#allocation110_spill] sm:$0xff] %v4431_v55  ;;  %7846 = vst [vmem:[#allocation111_spill] sm:$0xff] %v4433_v1 }
 0x13e   :  { %716 = vrot.lane.b32.xlu1 %v3808_v30, %s3568_s16  ;;  %714 = vrot.lane.b32.xlu0 %v3813_v31, %s3568_s16 }
 0x140   :  { %v4439_v57 = vpop.permute.xlu1 %476  ;;  %v4441_v53 = vpop.permute.xlu0 %474 }
 0x141   :  { %7847 = vst [vmem:[#allocation112_spill] sm:$0xff] %v4439_v57  ;;  %7848 = vst [vmem:[#allocation113_spill] sm:$0xff] %v4441_v53 }
 0x142   :  { %720 = vrot.lane.b32.xlu1 %v3822_v32, %s3568_s16  ;;  %718 = vrot.lane.b32.xlu0 %v3827_v33, %s3568_s16 }
 0x144   :  { %v4447_v60 = vpop.permute.xlu1 %480  ;;  %v4449_v55 = vpop.permute.xlu0 %478 }
 0x145   :  { %7849 = vst [vmem:[#allocation114_spill] sm:$0xff] %v4447_v60  ;;  %7850 = vst [vmem:[#allocation115_spill] sm:$0xff] %v4449_v55 }
 0x146   :  { %724 = vrot.lane.b32.xlu1 %v3836_v34, %s3568_s16  ;;  %722 = vrot.lane.b32.xlu0 %v3841_v35, %s3568_s16 }
 0x148   :  { %v4455_v1 = vpop.permute.xlu1 %484  ;;  %v4457_v57 = vpop.permute.xlu0 %482 }
 0x149   :  { %7851 = vst [vmem:[#allocation116_spill] sm:$0xff] %v4455_v1  ;;  %7852 = vst [vmem:[#allocation117_spill] sm:$0xff] %v4457_v57 }
 0x14a   :  { %728 = vrot.lane.b32.xlu1 %v3850_v36, %s3568_s16  ;;  %726 = vrot.lane.b32.xlu0 %v3855_v37, %s3568_s16 }
 0x14c   :  { %v4463_v53 = vpop.permute.xlu1 %488  ;;  %v4465_v60 = vpop.permute.xlu0 %486 }
 0x14d   :  { %7853 = vst [vmem:[#allocation118_spill] sm:$0xff] %v4463_v53  ;;  %7854 = vst [vmem:[#allocation119_spill] sm:$0xff] %v4465_v60 }
 0x14e   :  { %732 = vrot.lane.b32.xlu1 %v3864_v38, %s3568_s16  ;;  %730 = vrot.lane.b32.xlu0 %v3869_v39, %s3568_s16 }
 0x150   :  { %v4471_v55 = vpop.permute.xlu1 %492  ;;  %v4473_v1 = vpop.permute.xlu0 %490 }
 0x151   :  { %7855 = vst [vmem:[#allocation120_spill] sm:$0xff] %v4471_v55  ;;  %7856 = vst [vmem:[#allocation121_spill] sm:$0xff] %v4473_v1 }
 0x152   :  { %736 = vrot.lane.b32.xlu1 %v3878_v40, %s3568_s16  ;;  %734 = vrot.lane.b32.xlu0 %v3883_v41, %s3568_s16 }
 0x154   :  { %v4479_v57 = vpop.permute.xlu1 %496  ;;  %v4481_v53 = vpop.permute.xlu0 %494 }
 0x155   :  { %7857 = vst [vmem:[#allocation122_spill] sm:$0xff] %v4479_v57  ;;  %7858 = vst [vmem:[#allocation123_spill] sm:$0xff] %v4481_v53 }
 0x156   :  { %740 = vrot.lane.b32.xlu1 %v3892_v42, %s3568_s16  ;;  %738 = vrot.lane.b32.xlu0 %v3897_v43, %s3568_s16 }
 0x158   :  { %v4487_v60 = vpop.permute.xlu1 %500  ;;  %v4489_v55 = vpop.permute.xlu0 %498 }
 0x159   :  { %7859 = vst [vmem:[#allocation124_spill] sm:$0xff] %v4487_v60  ;;  %7860 = vst [vmem:[#allocation125_spill] sm:$0xff] %v4489_v55 }
 0x15a   :  { %744 = vrot.lane.b32.xlu1 %v3906_v44, %s3568_s16  ;;  %742 = vrot.lane.b32.xlu0 %v3911_v45, %s3568_s16 }
 0x15c   :  { %v4495_v1 = vpop.permute.xlu1 %504  ;;  %v4497_v57 = vpop.permute.xlu0 %502 }
 0x15d   :  { %7861 = vst [vmem:[#allocation126_spill] sm:$0xff] %v4495_v1  ;;  %7862 = vst [vmem:[#allocation127_spill] sm:$0xff] %v4497_v57 }
 0x15e   :  { %748 = vrot.lane.b32.xlu1 %v3920_v46, %s3568_s16  ;;  %746 = vrot.lane.b32.xlu0 %v3925_v47, %s3568_s16 }
 0x160   :  { %v4503_v53 = vpop.permute.xlu1 %508  ;;  %v4505_v60 = vpop.permute.xlu0 %506 }
 0x161   :  { %7863 = vst [vmem:[#allocation128_spill] sm:$0xff] %v4503_v53  ;;  %7864 = vst [vmem:[#allocation129_spill] sm:$0xff] %v4505_v60  ;;  %v7869_v60 = vld [vmem:[#allocation6_spill] sm:$0xff] }
 0x162   :  { %752 = vrot.lane.b32.xlu1 %v3934_v48, %s3568_s16  ;;  %750 = vrot.lane.b32.xlu0 %v3939_v49, %s3568_s16 }
 0x164   :  { %v4511_v55 = vpop.permute.xlu1 %512  ;;  %v4513_v1 = vpop.permute.xlu0 %510 }
 0x165   :  { %7865 = vst [vmem:[#allocation130_spill] sm:$0xff] %v4511_v55  ;;  %7866 = vst [vmem:[#allocation131_spill] sm:$0xff] %v4513_v1  ;;  %v7872_v1 = vld [vmem:[#allocation7_spill] sm:$0xff] }
 0x166   :  { %756 = vrot.lane.b32.xlu1 %v3948_v50, %s3568_s16  ;;  %754 = vrot.lane.b32.xlu0 %v3953_v51, %s3568_s16  ;;  %v7873_v50 = vld [vmem:[#allocation8_spill] sm:$0xff] }
 0x168   :  { %v4519_v57 = vpop.permute.xlu1 %516  ;;  %v4521_v53 = vpop.permute.xlu0 %514 }
 0x169   :  { %7867 = vst [vmem:[#allocation132_spill] sm:$0xff] %v4519_v57  ;;  %7868 = vst [vmem:[#allocation133_spill] sm:$0xff] %v4521_v53  ;;  %v7876_v53 = vld [vmem:[#allocation9_spill] sm:$0xff] }
 0x16a   :  { %760 = vrot.lane.b32.xlu1 %v3962_v52, %s3568_s16  ;;  %758 = vrot.lane.b32.xlu0 %v7869_v60, %s3568_s16 }
 0x16c   :  { %v4527_v49 = vpop.permute.xlu1 %520  ;;  %v4529_v55 = vpop.permute.xlu0 %518 }
 0x16d   :  { %7870 = vst [vmem:[#allocation134_spill] sm:$0xff] %v4527_v49  ;;  %7871 = vst [vmem:[#allocation135_spill] sm:$0xff] %v4529_v55 }
 0x16e   :  { %764 = vrot.lane.b32.xlu1 %v7872_v1, %s3568_s16  ;;  %762 = vrot.lane.b32.xlu0 %v7873_v50, %s3568_s16 }
 0x170   :  { %v4535_v51 = vpop.permute.xlu1 %524  ;;  %v4537_v57 = vpop.permute.xlu0 %522 }
 0x171   :  { %7874 = vst [vmem:[#allocation7_spill] sm:$0xff] %v4535_v51  ;;  %7875 = vst [vmem:[#allocation8_spill] sm:$0xff] %v4537_v57 }
 0x172   :  { %768 = vrot.lane.b32.xlu1 %v3990_v56, %s3568_s16  ;;  %766 = vrot.lane.b32.xlu0 %v7876_v53, %s3568_s16 }
 0x174   :  { %v4543_v60 = vpop.permute.xlu1 %656  ;;  %v4545_v49 = vpop.permute.xlu0 %654 }
 0x175   :  { %7877 = vst [vmem:[#allocation9_spill] sm:$0xff] %v4543_v60  ;;  %7878 = vst [vmem:[#allocation136_spill] sm:$0xff] %v4545_v49 }
 0x176   :  { %772 = vrot.lane.b32.xlu1 %v7807_v63, %s3568_s16  ;;  %770 = vrot.lane.b32.xlu0 %v7808_v54, %s3568_s16 }
 0x178   :  { %v4551_v55 = vpop.permute.xlu1 %660  ;;  %v4553_v51 = vpop.permute.xlu0 %658 }
 0x179   :  { %7879 = vst [vmem:[#allocation137_spill] sm:$0xff] %v4551_v55  ;;  %7880 = vst [vmem:[#allocation138_spill] sm:$0xff] %v4553_v51  ;;  %v7885_v51 = vld [vmem:[#allocation2_spill] sm:$0xff] }
 0x17a   :  { %776 = vrot.lane.b32.xlu1 %v4022_v62, %s3568_s16  ;;  %774 = vrot.lane.b32.xlu0 %v7811_v58, %s3568_s16 }
 0x17c   :  { %v4559_v57 = vpop.permute.xlu1 %664  ;;  %v4561_v60 = vpop.permute.xlu0 %662 }
 0x17d   :  { %7881 = vst [vmem:[#allocation139_spill] sm:$0xff] %v4559_v57  ;;  %7882 = vst [vmem:[#allocation140_spill] sm:$0xff] %v4561_v60 }
 0x17e   :  { %780 = vrot.lane.b32.xlu1 %v4040_v61, %s3568_s16  ;;  %778 = vrot.lane.b32.xlu0 %v4045_v59, %s3568_s16  ;;  %s3571_s16 = smov 104  }
 0x180   :  { %v4567_v49 = vpop.permute.xlu1 %668  ;;  %v4569_v55 = vpop.permute.xlu0 %666 }
 0x181   :  { %7883 = vst [vmem:[#allocation141_spill] sm:$0xff] %v4567_v49  ;;  %7884 = vst [vmem:[#allocation142_spill] sm:$0xff] %v4569_v55 }
 0x182   :  { %912 = vrot.lane.b32.xlu1 %v3617_v3, %s3569_s11  ;;  %910 = vrot.lane.b32.xlu0 %v7885_v51, %s3569_s11 }
 0x184   :  { %v4575_v57 = vpop.permute.xlu1 %672  ;;  %v4577_v60 = vpop.permute.xlu0 %670 }
 0x185   :  { %7886 = vst [vmem:[#allocation2_spill] sm:$0xff] %v4575_v57  ;;  %7887 = vst [vmem:[#allocation143_spill] sm:$0xff] %v4577_v60  ;;  %v5136_v57 = vld [vmem:[%s7593_s0 + $0x118] sm:$0xff]  ;;  %v5161_v60 = vld [vmem:[%s7593_s0 + $0x120] sm:$0xff] }
 0x186   :  { %916 = vrot.lane.b32.xlu1 %v3612_v2, %s3569_s11  ;;  %914 = vrot.lane.b32.xlu0 %v3598_v0, %s3569_s11 }
 0x188   :  { %v4583_v49 = vpop.permute.xlu1 %676  ;;  %v4585_v55 = vpop.permute.xlu0 %674 }
 0x189   :  { %7888 = vst [vmem:[#allocation144_spill] sm:$0xff] %v4583_v49  ;;  %7889 = vst [vmem:[#allocation145_spill] sm:$0xff] %v4585_v55  ;;  %v5125_v55 = vld [vmem:[%s7593_s0 + $0x100] sm:$0xff] }
 0x18a   :  { %920 = vrot.lane.b32.xlu1 %v3626_v4, %s3569_s11  ;;  %918 = vrot.lane.b32.xlu0 %v3631_v5, %s3569_s11 }
 0x18c   :  { %v4591_v3 = vpop.permute.xlu1 %680  ;;  %v4593_v51 = vpop.permute.xlu0 %678 }
 0x18d   :  { %7890 = vst [vmem:[#allocation146_spill] sm:$0xff] %v4591_v3  ;;  %7891 = vst [vmem:[#allocation147_spill] sm:$0xff] %v4593_v51  ;;  %v5082_v3 = vld [vmem:[%s7593_s0 + $0xe8] sm:$0xff] }
 0x18e   :  { %924 = vrot.lane.b32.xlu1 %v3640_v6, %s3569_s11  ;;  %922 = vrot.lane.b32.xlu0 %v3645_v7, %s3569_s11 }
 0x190   :  { %v4599_v0 = vpop.permute.xlu1 %684  ;;  %v4601_v2 = vpop.permute.xlu0 %682 }
 0x191   :  { %7892 = vst [vmem:[#allocation148_spill] sm:$0xff] %v4599_v0  ;;  %7893 = vst [vmem:[#allocation149_spill] sm:$0xff] %v4601_v2  ;;  %v5071_v2 = vld [vmem:[%s7593_s0 + $0xd0] sm:$0xff] }
 0x192   :  { %928 = vrot.lane.b32.xlu1 %v3654_v8, %s3569_s11  ;;  %926 = vrot.lane.b32.xlu0 %v3659_v9, %s3569_s11 }
 0x194   :  { %v4607_v4 = vpop.permute.xlu1 %688  ;;  %v4609_v5 = vpop.permute.xlu0 %686 }
 0x195   :  { %7894 = vst [vmem:[#allocation150_spill] sm:$0xff] %v4607_v4  ;;  %7895 = vst [vmem:[#allocation151_spill] sm:$0xff] %v4609_v5  ;;  %v5017_v5 = vld [vmem:[%s7593_s0 + $0xa0] sm:$0xff] }
 0x196   :  { %932 = vrot.lane.b32.xlu1 %v3668_v10, %s3569_s11  ;;  %930 = vrot.lane.b32.xlu0 %v3673_v11, %s3569_s11 }
 0x198   :  { %v4615_v6 = vpop.permute.xlu1 %692  ;;  %v4617_v7 = vpop.permute.xlu0 %690 }
 0x199   :  { %7896 = vst [vmem:[#allocation152_spill] sm:$0xff] %v4615_v6  ;;  %7897 = vst [vmem:[#allocation153_spill] sm:$0xff] %v4617_v7  ;;  %v4945_v6 = vld [vmem:[%s7593_s0 + $0x60] sm:$0xff]  ;;  %v4963_v7 = vld [vmem:[%s7593_s0 + $0x70] sm:$0xff] }
 0x19a   :  { %936 = vrot.lane.b32.xlu1 %v3682_v12, %s3569_s11  ;;  %934 = vrot.lane.b32.xlu0 %v3687_v13, %s3569_s11 }
 0x19c   :  { %v4623_v8 = vpop.permute.xlu1 %696  ;;  %v4625_v9 = vpop.permute.xlu0 %694 }
 0x19d   :  { %7898 = vst [vmem:[#allocation154_spill] sm:$0xff] %v4623_v8  ;;  %7899 = vst [vmem:[#allocation155_spill] sm:$0xff] %v4625_v9  ;;  %v4927_v8 = vld [vmem:[%s7593_s0 + $0x50] sm:$0xff] }
 0x19e   :  { %940 = vrot.lane.b32.xlu1 %v3696_v14, %s3569_s11  ;;  %938 = vrot.lane.b32.xlu0 %v3701_v15, %s3569_s11 }
 0x1a0   :  { %v4631_v10 = vpop.permute.xlu1 %700  ;;  %v4633_v11 = vpop.permute.xlu0 %698 }
 0x1a1   :  { %7900 = vst [vmem:[#allocation156_spill] sm:$0xff] %v4631_v10  ;;  %7901 = vst [vmem:[#allocation157_spill] sm:$0xff] %v4633_v11  ;;  %v4909_v10 = vld [vmem:[%s7593_s0 + $0x40] sm:$0xff] }
 0x1a2   :  { %944 = vrot.lane.b32.xlu1 %v3710_v16, %s3569_s11  ;;  %942 = vrot.lane.b32.xlu0 %v3715_v17, %s3569_s11  ;;  %7963 = vst [vmem:[#allocation211_spill] sm:$0xff] %v4909_v10 }
 0x1a4   :  { %v4639_v12 = vpop.permute.xlu1 %704  ;;  %v4641_v13 = vpop.permute.xlu0 %702 }
 0x1a5   :  { %7902 = vst [vmem:[#allocation158_spill] sm:$0xff] %v4639_v12  ;;  %7903 = vst [vmem:[#allocation159_spill] sm:$0xff] %v4641_v13  ;;  %v4891_v12 = vld [vmem:[%s7593_s0 + $0x30] sm:$0xff] }
 0x1a6   :  { %948 = vrot.lane.b32.xlu1 %v3724_v18, %s3569_s11  ;;  %946 = vrot.lane.b32.xlu0 %v3729_v19, %s3569_s11 }
 0x1a8   :  { %v4647_v14 = vpop.permute.xlu1 %708  ;;  %v4649_v15 = vpop.permute.xlu0 %706 }
 0x1a9   :  { %7904 = vst [vmem:[#allocation160_spill] sm:$0xff] %v4647_v14  ;;  %7905 = vst [vmem:[#allocation161_spill] sm:$0xff] %v4649_v15  ;;  %v4873_v14 = vld [vmem:[%s7593_s0 + $0x20] sm:$0xff] }
 0x1aa   :  { %952 = vrot.lane.b32.xlu1 %v3738_v20, %s3569_s11  ;;  %950 = vrot.lane.b32.xlu0 %v3743_v21, %s3569_s11 }
 0x1ac   :  { %v4655_v16 = vpop.permute.xlu1 %712  ;;  %v4657_v17 = vpop.permute.xlu0 %710 }
 0x1ad   :  { %7906 = vst [vmem:[#allocation162_spill] sm:$0xff] %v4655_v16  ;;  %7907 = vst [vmem:[#allocation163_spill] sm:$0xff] %v4657_v17 }
 0x1ae   :  { %956 = vrot.lane.b32.xlu1 %v3752_v22, %s3569_s11  ;;  %954 = vrot.lane.b32.xlu0 %v3757_v23, %s3569_s11 }
 0x1b0   :  { %v4663_v18 = vpop.permute.xlu1 %716  ;;  %v4665_v19 = vpop.permute.xlu0 %714 }
 0x1b1   :  { %7908 = vst [vmem:[#allocation164_spill] sm:$0xff] %v4663_v18  ;;  %7909 = vst [vmem:[#allocation165_spill] sm:$0xff] %v4665_v19  ;;  %v7937_v19 = vld [vmem:[#allocation4_spill] sm:$0xff] }
 0x1b2   :  { %960 = vrot.lane.b32.xlu1 %v3766_v24, %s3569_s11  ;;  %958 = vrot.lane.b32.xlu0 %v3771_v25, %s3569_s11 }
 0x1b4   :  { %v4671_v20 = vpop.permute.xlu1 %720  ;;  %v4673_v21 = vpop.permute.xlu0 %718 }
 0x1b5   :  { %7910 = vst [vmem:[#allocation166_spill] sm:$0xff] %v4671_v20  ;;  %7911 = vst [vmem:[#allocation167_spill] sm:$0xff] %v4673_v21  ;;  %v5377_v21 = vld [vmem:[%s7593_s0 + $0x1e0] sm:$0xff] }
 0x1b6   :  { %964 = vrot.lane.b32.xlu1 %v3780_v26, %s3569_s11  ;;  %962 = vrot.lane.b32.xlu0 %v3785_v27, %s3569_s11  ;;  %8023 = vst [vmem:[#allocation271_spill] sm:$0xff] %v5377_v21 }
 0x1b8   :  { %v4679_v22 = vpop.permute.xlu1 %724  ;;  %v4681_v23 = vpop.permute.xlu0 %722 }
 0x1b9   :  { %7912 = vst [vmem:[#allocation168_spill] sm:$0xff] %v4679_v22  ;;  %7913 = vst [vmem:[#allocation169_spill] sm:$0xff] %v4681_v23  ;;  %v5323_v23 = vld [vmem:[%s7593_s0 + $0x1b0] sm:$0xff] }
 0x1ba   :  { %968 = vrot.lane.b32.xlu1 %v3794_v28, %s3569_s11  ;;  %966 = vrot.lane.b32.xlu0 %v3799_v29, %s3569_s11 }
 0x1bc   :  { %v4687_v24 = vpop.permute.xlu1 %728  ;;  %v4689_v25 = vpop.permute.xlu0 %726 }
 0x1bd   :  { %7914 = vst [vmem:[#allocation170_spill] sm:$0xff] %v4687_v24  ;;  %7915 = vst [vmem:[#allocation171_spill] sm:$0xff] %v4689_v25  ;;  %v5269_v25 = vld [vmem:[%s7593_s0 + $0x180] sm:$0xff] }
 0x1be   :  { %972 = vrot.lane.b32.xlu1 %v3808_v30, %s3569_s11  ;;  %970 = vrot.lane.b32.xlu0 %v3813_v31, %s3569_s11 }
 0x1c0   :  { %v4695_v26 = vpop.permute.xlu1 %732  ;;  %v4697_v27 = vpop.permute.xlu0 %730 }
 0x1c1   :  { %7916 = vst [vmem:[#allocation172_spill] sm:$0xff] %v4695_v26  ;;  %7917 = vst [vmem:[#allocation173_spill] sm:$0xff] %v4697_v27  ;;  %v5215_v27 = vld [vmem:[%s7593_s0 + $0x150] sm:$0xff] }
 0x1c2   :  { %976 = vrot.lane.b32.xlu1 %v3822_v32, %s3569_s11  ;;  %974 = vrot.lane.b32.xlu0 %v3827_v33, %s3569_s11 }
 0x1c4   :  { %v4703_v28 = vpop.permute.xlu1 %736  ;;  %v4705_v29 = vpop.permute.xlu0 %734 }
 0x1c5   :  { %7918 = vst [vmem:[#allocation174_spill] sm:$0xff] %v4703_v28  ;;  %7919 = vst [vmem:[#allocation175_spill] sm:$0xff] %v4705_v29 }
 0x1c6   :  { %980 = vrot.lane.b32.xlu1 %v3836_v34, %s3569_s11  ;;  %978 = vrot.lane.b32.xlu0 %v3841_v35, %s3569_s11 }
 0x1c8   :  { %v4711_v30 = vpop.permute.xlu1 %740  ;;  %v4713_v31 = vpop.permute.xlu0 %738 }
 0x1c9   :  { %7920 = vst [vmem:[#allocation176_spill] sm:$0xff] %v4711_v30  ;;  %7921 = vst [vmem:[#allocation177_spill] sm:$0xff] %v4713_v31  ;;  %v5107_v30 = vld [vmem:[%s7593_s0 + $0xf0] sm:$0xff]  ;;  %v5118_v31 = vld [vmem:[%s7593_s0 + $0x108] sm:$0xff] }
 0x1ca   :  { %984 = vrot.lane.b32.xlu1 %v3850_v36, %s3569_s11  ;;  %982 = vrot.lane.b32.xlu0 %v3855_v37, %s3569_s11 }
 0x1cc   :  { %v4719_v32 = vpop.permute.xlu1 %744  ;;  %v4721_v33 = vpop.permute.xlu0 %742 }
 0x1cd   :  { %7922 = vst [vmem:[#allocation178_spill] sm:$0xff] %v4719_v32  ;;  %7923 = vst [vmem:[#allocation179_spill] sm:$0xff] %v4721_v33 }
 0x1ce   :  { %988 = vrot.lane.b32.xlu1 %v3864_v38, %s3569_s11  ;;  %986 = vrot.lane.b32.xlu0 %v3869_v39, %s3569_s11 }
 0x1d0   :  { %v4727_v34 = vpop.permute.xlu1 %748  ;;  %v4729_v35 = vpop.permute.xlu0 %746 }
 0x1d1   :  { %7924 = vst [vmem:[#allocation180_spill] sm:$0xff] %v4727_v34  ;;  %7925 = vst [vmem:[#allocation181_spill] sm:$0xff] %v4729_v35  ;;  %v5035_v34 = vld [vmem:[%s7593_s0 + $0xb0] sm:$0xff] }
 0x1d2   :  { %992 = vrot.lane.b32.xlu1 %v3878_v40, %s3569_s11  ;;  %990 = vrot.lane.b32.xlu0 %v3883_v41, %s3569_s11 }
 0x1d4   :  { %v4735_v36 = vpop.permute.xlu1 %752  ;;  %v4737_v37 = vpop.permute.xlu0 %750 }
 0x1d5   :  { %7926 = vst [vmem:[#allocation182_spill] sm:$0xff] %v4735_v36  ;;  %7927 = vst [vmem:[#allocation183_spill] sm:$0xff] %v4737_v37  ;;  %v4981_v36 = vld [vmem:[%s7593_s0 + $0x80] sm:$0xff] }
 0x1d6   :  { %996 = vrot.lane.b32.xlu1 %v3892_v42, %s3569_s11  ;;  %994 = vrot.lane.b32.xlu0 %v3897_v43, %s3569_s11 }
 0x1d8   :  { %v4743_v38 = vpop.permute.xlu1 %756  ;;  %v4745_v39 = vpop.permute.xlu0 %754 }
 0x1d9   :  { %7928 = vst [vmem:[#allocation184_spill] sm:$0xff] %v4743_v38  ;;  %7929 = vst [vmem:[#allocation185_spill] sm:$0xff] %v4745_v39  ;;  %v4938_v38 = vld [vmem:[%s7593_s0 + $0x68] sm:$0xff] }
 0x1da   :  { %1000 = vrot.lane.b32.xlu1 %v3906_v44, %s3569_s11  ;;  %998 = vrot.lane.b32.xlu0 %v3911_v45, %s3569_s11  ;;  %v7934_v44 = vld [vmem:[#allocation3_spill] sm:$0xff] }
 0x1dc   :  { %v4751_v40 = vpop.permute.xlu1 %760  ;;  %v4753_v41 = vpop.permute.xlu0 %758 }
 0x1dd   :  { %7930 = vst [vmem:[#allocation186_spill] sm:$0xff] %v4751_v40  ;;  %7931 = vst [vmem:[#allocation187_spill] sm:$0xff] %v4753_v41  ;;  %v4920_v40 = vld [vmem:[%s7593_s0 + $0x58] sm:$0xff] }
 0x1de   :  { %1004 = vrot.lane.b32.xlu1 %v3920_v46, %s3569_s11  ;;  %1002 = vrot.lane.b32.xlu0 %v3925_v47, %s3569_s11  ;;  %v7938_v46 = vld [vmem:[#allocation5_spill] sm:$0xff]  ;;  %7966 = vst [vmem:[#allocation214_spill] sm:$0xff] %v4920_v40 }
 0x1e0   :  { %v4759_v42 = vpop.permute.xlu1 %764  ;;  %v4761_v43 = vpop.permute.xlu0 %762 }
 0x1e1   :  { %7932 = vst [vmem:[#allocation188_spill] sm:$0xff] %v4759_v42  ;;  %7933 = vst [vmem:[#allocation189_spill] sm:$0xff] %v4761_v43  ;;  %v4902_v42 = vld [vmem:[%s7593_s0 + $0x48] sm:$0xff] }
 0x1e2   :  { %1008 = vrot.lane.b32.xlu1 %v3934_v48, %s3569_s11  ;;  %1006 = vrot.lane.b32.xlu0 %v7934_v44, %s3569_s11  ;;  %v7941_v48 = vld [vmem:[#allocation6_spill] sm:$0xff]  ;;  %7962 = vst [vmem:[#allocation210_spill] sm:$0xff] %v4902_v42 }
 0x1e4   :  { %v4767_v45 = vpop.permute.xlu1 %768  ;;  %v4769_v18 = vpop.permute.xlu0 %766 }
 0x1e5   :  { %7935 = vst [vmem:[#allocation3_spill] sm:$0xff] %v4767_v45  ;;  %7936 = vst [vmem:[#allocation190_spill] sm:$0xff] %v4769_v18  ;;  %v4884_v45 = vld [vmem:[%s7593_s0 + $0x38] sm:$0xff] }
 0x1e6   :  { %1012 = vrot.lane.b32.xlu1 %v7937_v19, %s3569_s11  ;;  %1010 = vrot.lane.b32.xlu0 %v7938_v46, %s3569_s11 }
 0x1e8   :  { %v4775_v47 = vpop.permute.xlu1 %772  ;;  %v4777_v16 = vpop.permute.xlu0 %770 }
 0x1e9   :  { %7939 = vst [vmem:[#allocation4_spill] sm:$0xff] %v4775_v47  ;;  %7940 = vst [vmem:[#allocation5_spill] sm:$0xff] %v4777_v16  ;;  %v4866_v47 = vld [vmem:[%s7593_s0 + $0x28] sm:$0xff] }
 0x1ea   :  { %1016 = vrot.lane.b32.xlu1 %v3962_v52, %s3569_s11  ;;  %1014 = vrot.lane.b32.xlu0 %v7941_v48, %s3569_s11 }
 0x1ec   :  { %v4783_v44 = vpop.permute.xlu1 %776  ;;  %v4785_v17 = vpop.permute.xlu0 %774 }
 0x1ed   :  { %7942 = vst [vmem:[#allocation6_spill] sm:$0xff] %v4783_v44  ;;  %7943 = vst [vmem:[#allocation191_spill] sm:$0xff] %v4785_v17 }
 0x1ee   :  { %1020 = vrot.lane.b32.xlu1 %v7872_v1, %s3569_s11  ;;  %1018 = vrot.lane.b32.xlu0 %v7873_v50, %s3569_s11 }
 0x1f0   :  { %v4791_v19 = vpop.permute.xlu1 %780  ;;  %v4793_v46 = vpop.permute.xlu0 %778 }
 0x1f1   :  { %7944 = vst [vmem:[#allocation192_spill] sm:$0xff] %v4791_v19  ;;  %7945 = vst [vmem:[#allocation193_spill] sm:$0xff] %v4793_v46  ;;  %v4848_v19 = vld [vmem:[%s7593_s0 + $0x18] sm:$0xff]  ;;  %v4855_v46 = vld [vmem:[%s7593_s0 + $0x10] sm:$0xff] }
 0x1f2   :  { %1024 = vrot.lane.b32.xlu1 %v3990_v56, %s3569_s11  ;;  %1022 = vrot.lane.b32.xlu0 %v7876_v53, %s3569_s11 }
 0x1f4   :  { %v4799_v52 = vpop.permute.xlu1 %912  ;;  %v4801_v48 = vpop.permute.xlu0 %910 }
 0x1f5   :  { %7946 = vst [vmem:[#allocation194_spill] sm:$0xff] %v4799_v52  ;;  %7947 = vst [vmem:[#allocation195_spill] sm:$0xff] %v4801_v48  ;;  %v5341_v52 = vld [vmem:[%s7593_s0 + $0x1c0] sm:$0xff] }
 0x1f6   :  { %1028 = vrot.lane.b32.xlu1 %v7807_v63, %s3569_s11  ;;  %1026 = vrot.lane.b32.xlu0 %v7808_v54, %s3569_s11 }
 0x1f8   :  { %v4807_v1 = vpop.permute.xlu1 %916  ;;  %v4809_v50 = vpop.permute.xlu0 %914 }
 0x1f9   :  { %7948 = vst [vmem:[#allocation196_spill] sm:$0xff] %v4807_v1  ;;  %7949 = vst [vmem:[#allocation197_spill] sm:$0xff] %v4809_v50  ;;  %v5287_v1 = vld [vmem:[%s7593_s0 + $0x190] sm:$0xff] }
 0x1fa   :  { %1032 = vrot.lane.b32.xlu1 %v4022_v62, %s3569_s11  ;;  %1030 = vrot.lane.b32.xlu0 %v7811_v58, %s3569_s11  ;;  %v4830_v62 = vld [vmem:[%s7593_s0 + $0x8] sm:$0xff]  ;;  %v4837_v58 = vld [vmem:[%s7593_s0] sm:$0xff] }
 0x1fc   :  { %v4815_v53 = vpop.permute.xlu1 %920  ;;  %v4817_v56 = vpop.permute.xlu0 %918 }
 0x1fd   :  { %7950 = vst [vmem:[#allocation198_spill] sm:$0xff] %v4815_v53  ;;  %7951 = vst [vmem:[#allocation199_spill] sm:$0xff] %v4817_v56  ;;  %v5233_v53 = vld [vmem:[%s7593_s0 + $0x160] sm:$0xff] }
 0x1fe   :  { %1036 = vrot.lane.b32.xlu1 %v4040_v61, %s3569_s11  ;;  %1034 = vrot.lane.b32.xlu0 %v4045_v59, %s3569_s11  ;;  %s3573_s11 = smov 96  }
 0x200   :  { %v4823_v54 = vpop.permute.xlu1 %924  ;;  %v4825_v63 = vpop.permute.xlu0 %922 }
 0x201   :  { %7952 = vst [vmem:[#allocation200_spill] sm:$0xff] %v4823_v54  ;;  %7953 = vst [vmem:[#allocation201_spill] sm:$0xff] %v4825_v63  ;;  %v5179_v54 = vld [vmem:[%s7593_s0 + $0x130] sm:$0xff] }
 0x202   :  { %1168 = vrot.lane.b32.xlu1 %v4830_v62, %s3570_s14  ;;  %1166 = vrot.lane.b32.xlu0 %v4837_v58, %s3570_s14 }
 0x204   :  { %v4841_v59 = vpop.permute.xlu1 %928  ;;  %v4843_v61 = vpop.permute.xlu0 %926 }
 0x205   :  { %7954 = vst [vmem:[#allocation202_spill] sm:$0xff] %v4841_v59  ;;  %7955 = vst [vmem:[#allocation203_spill] sm:$0xff] %v4843_v61  ;;  %v5143_v61 = vld [vmem:[%s7593_s0 + $0x110] sm:$0xff] }
 0x206   :  { %1172 = vrot.lane.b32.xlu1 %v4848_v19, %s3570_s14  ;;  %1170 = vrot.lane.b32.xlu0 %v4855_v46, %s3570_s14 }
 0x208   :  { %v4859_v44 = vpop.permute.xlu1 %932  ;;  %v4861_v17 = vpop.permute.xlu0 %930 }
 0x209   :  { %7956 = vst [vmem:[#allocation204_spill] sm:$0xff] %v4859_v44  ;;  %7957 = vst [vmem:[#allocation205_spill] sm:$0xff] %v4861_v17  ;;  %v5100_v44 = vld [vmem:[%s7593_s0 + $0xf8] sm:$0xff] }
 0x20a   :  { %1176 = vrot.lane.b32.xlu1 %v4866_v47, %s3570_s14  ;;  %1174 = vrot.lane.b32.xlu0 %v4873_v14, %s3570_s14 }
 0x20c   :  { %v4877_v16 = vpop.permute.xlu1 %936  ;;  %v4879_v15 = vpop.permute.xlu0 %934 }
 0x20d   :  { %7958 = vst [vmem:[#allocation206_spill] sm:$0xff] %v4877_v16  ;;  %7959 = vst [vmem:[#allocation207_spill] sm:$0xff] %v4879_v15  ;;  %v5089_v15 = vld [vmem:[%s7593_s0 + $0xe0] sm:$0xff] }
 0x20e   :  { %1180 = vrot.lane.b32.xlu1 %v4884_v45, %s3570_s14  ;;  %1178 = vrot.lane.b32.xlu0 %v4891_v12, %s3570_s14 }
 0x210   :  { %v4895_v18 = vpop.permute.xlu1 %940  ;;  %v4897_v13 = vpop.permute.xlu0 %938 }
 0x211   :  { %7960 = vst [vmem:[#allocation208_spill] sm:$0xff] %v4895_v18  ;;  %7961 = vst [vmem:[#allocation209_spill] sm:$0xff] %v4897_v13  ;;  %v5053_v13 = vld [vmem:[%s7593_s0 + $0xc0] sm:$0xff] }
 0x212   :  { %1184 = vrot.lane.b32.xlu1 %v4902_v42, %s3570_s14  ;;  %1182 = vrot.lane.b32.xlu0 %v4909_v10, %s3570_s14 }
 0x214   :  { %v4913_v43 = vpop.permute.xlu1 %944  ;;  %v4915_v11 = vpop.permute.xlu0 %942 }
 0x215   :  { %7964 = vst [vmem:[#allocation212_spill] sm:$0xff] %v4913_v43  ;;  %7965 = vst [vmem:[#allocation213_spill] sm:$0xff] %v4915_v11  ;;  %v4999_v11 = vld [vmem:[%s7593_s0 + $0x90] sm:$0xff] }
 0x216   :  { %1188 = vrot.lane.b32.xlu1 %v4920_v40, %s3570_s14  ;;  %1186 = vrot.lane.b32.xlu0 %v4927_v8, %s3570_s14 }
 0x218   :  { %v4931_v41 = vpop.permute.xlu1 %948  ;;  %v4933_v9 = vpop.permute.xlu0 %946 }
 0x219   :  { %7967 = vst [vmem:[#allocation215_spill] sm:$0xff] %v4931_v41  ;;  %7968 = vst [vmem:[#allocation216_spill] sm:$0xff] %v4933_v9  ;;  %v4956_v9 = vld [vmem:[%s7593_s0 + $0x78] sm:$0xff] }
 0x21a   :  { %1192 = vrot.lane.b32.xlu1 %v4938_v38, %s3570_s14  ;;  %1190 = vrot.lane.b32.xlu0 %v4945_v6, %s3570_s14  ;;  %7971 = vst [vmem:[#allocation219_spill] sm:$0xff] %v4956_v9 }
 0x21c   :  { %v4949_v39 = vpop.permute.xlu1 %952  ;;  %v4951_v41 = vpop.permute.xlu0 %950 }
 0x21d   :  { %7969 = vst [vmem:[#allocation217_spill] sm:$0xff] %v4949_v39  ;;  %7970 = vst [vmem:[#allocation218_spill] sm:$0xff] %v4951_v41  ;;  %v4974_v41 = vld [vmem:[%s7593_s0 + $0x88] sm:$0xff] }
 0x21e   :  { %1196 = vrot.lane.b32.xlu1 %v4956_v9, %s3570_s14  ;;  %1194 = vrot.lane.b32.xlu0 %v4963_v7, %s3570_s14 }
 0x220   :  { %v4967_v43 = vpop.permute.xlu1 %956  ;;  %v4969_v39 = vpop.permute.xlu0 %954 }
 0x221   :  { %7972 = vst [vmem:[#allocation220_spill] sm:$0xff] %v4967_v43  ;;  %7973 = vst [vmem:[#allocation221_spill] sm:$0xff] %v4969_v39  ;;  %v4992_v39 = vld [vmem:[%s7593_s0 + $0x98] sm:$0xff] }
 0x222   :  { %1200 = vrot.lane.b32.xlu1 %v4974_v41, %s3570_s14  ;;  %1198 = vrot.lane.b32.xlu0 %v4981_v36, %s3570_s14  ;;  %7976 = vst [vmem:[#allocation224_spill] sm:$0xff] %v4992_v39 }
 0x224   :  { %v4985_v4 = vpop.permute.xlu1 %960  ;;  %v4987_v43 = vpop.permute.xlu0 %958 }
 0x225   :  { %7974 = vst [vmem:[#allocation222_spill] sm:$0xff] %v4985_v4  ;;  %7975 = vst [vmem:[#allocation223_spill] sm:$0xff] %v4987_v43  ;;  %v5010_v43 = vld [vmem:[%s7593_s0 + $0xa8] sm:$0xff] }
 0x226   :  { %1204 = vrot.lane.b32.xlu1 %v4992_v39, %s3570_s14  ;;  %1202 = vrot.lane.b32.xlu0 %v4999_v11, %s3570_s14  ;;  %7979 = vst [vmem:[#allocation227_spill] sm:$0xff] %v5010_v43 }
 0x228   :  { %v5003_v37 = vpop.permute.xlu1 %964  ;;  %v5005_v4 = vpop.permute.xlu0 %962 }
 0x229   :  { %7977 = vst [vmem:[#allocation225_spill] sm:$0xff] %v5003_v37  ;;  %7978 = vst [vmem:[#allocation226_spill] sm:$0xff] %v5005_v4  ;;  %v5028_v4 = vld [vmem:[%s7593_s0 + $0xb8] sm:$0xff] }
 0x22a   :  { %1208 = vrot.lane.b32.xlu1 %v5010_v43, %s3570_s14  ;;  %1206 = vrot.lane.b32.xlu0 %v5017_v5, %s3570_s14 }
 0x22c   :  { %v5021_v18 = vpop.permute.xlu1 %968  ;;  %v5023_v37 = vpop.permute.xlu0 %966 }
 0x22d   :  { %7980 = vst [vmem:[#allocation228_spill] sm:$0xff] %v5021_v18  ;;  %7981 = vst [vmem:[#allocation229_spill] sm:$0xff] %v5023_v37  ;;  %v5046_v37 = vld [vmem:[%s7593_s0 + $0xc8] sm:$0xff] }
 0x22e   :  { %1212 = vrot.lane.b32.xlu1 %v5028_v4, %s3570_s14  ;;  %1210 = vrot.lane.b32.xlu0 %v5035_v34, %s3570_s14 }
 0x230   :  { %v5039_v0 = vpop.permute.xlu1 %972  ;;  %v5041_v18 = vpop.permute.xlu0 %970 }
 0x231   :  { %7982 = vst [vmem:[#allocation230_spill] sm:$0xff] %v5039_v0  ;;  %7983 = vst [vmem:[#allocation231_spill] sm:$0xff] %v5041_v18  ;;  %v5064_v18 = vld [vmem:[%s7593_s0 + $0xd8] sm:$0xff] }
 0x232   :  { %1216 = vrot.lane.b32.xlu1 %v5046_v37, %s3570_s14  ;;  %1214 = vrot.lane.b32.xlu0 %v5053_v13, %s3570_s14  ;;  %7986 = vst [vmem:[#allocation234_spill] sm:$0xff] %v5064_v18 }
 0x234   :  { %v5057_v35 = vpop.permute.xlu1 %976  ;;  %v5059_v0 = vpop.permute.xlu0 %974 }
 0x235   :  { %7984 = vst [vmem:[#allocation232_spill] sm:$0xff] %v5057_v35  ;;  %7985 = vst [vmem:[#allocation233_spill] sm:$0xff] %v5059_v0  ;;  %v5359_v0 = vld [vmem:[%s7593_s0 + $0x1d0] sm:$0xff] }
 0x236   :  { %1220 = vrot.lane.b32.xlu1 %v5064_v18, %s3570_s14  ;;  %1218 = vrot.lane.b32.xlu0 %v5071_v2, %s3570_s14 }
 0x238   :  { %v5075_v16 = vpop.permute.xlu1 %980  ;;  %v5077_v32 = vpop.permute.xlu0 %978 }
 0x239   :  { %7987 = vst [vmem:[#allocation235_spill] sm:$0xff] %v5075_v16  ;;  %7988 = vst [vmem:[#allocation236_spill] sm:$0xff] %v5077_v32  ;;  %v5305_v32 = vld [vmem:[%s7593_s0 + $0x1a0] sm:$0xff] }
 0x23a   :  { %1224 = vrot.lane.b32.xlu1 %v5082_v3, %s3570_s14  ;;  %1222 = vrot.lane.b32.xlu0 %v5089_v15, %s3570_s14 }
 0x23c   :  { %v5093_v33 = vpop.permute.xlu1 %984  ;;  %v5095_v51 = vpop.permute.xlu0 %982 }
 0x23d   :  { %7989 = vst [vmem:[#allocation237_spill] sm:$0xff] %v5093_v33  ;;  %7990 = vst [vmem:[#allocation238_spill] sm:$0xff] %v5095_v51  ;;  %v5251_v51 = vld [vmem:[%s7593_s0 + $0x170] sm:$0xff] }
 0x23e   :  { %1228 = vrot.lane.b32.xlu1 %v5100_v44, %s3570_s14  ;;  %1226 = vrot.lane.b32.xlu0 %v5107_v30, %s3570_s14 }
 0x240   :  { %v5111_v49 = vpop.permute.xlu1 %988  ;;  %v5113_v17 = vpop.permute.xlu0 %986 }
 0x241   :  { %7991 = vst [vmem:[#allocation239_spill] sm:$0xff] %v5111_v49  ;;  %7992 = vst [vmem:[#allocation240_spill] sm:$0xff] %v5113_v17  ;;  %v5197_v17 = vld [vmem:[%s7593_s0 + $0x140] sm:$0xff] }
 0x242   :  { %1232 = vrot.lane.b32.xlu1 %v5118_v31, %s3570_s14  ;;  %1230 = vrot.lane.b32.xlu0 %v5125_v55, %s3570_s14 }
 0x244   :  { %v5129_v59 = vpop.permute.xlu1 %992  ;;  %v5131_v28 = vpop.permute.xlu0 %990 }
 0x245   :  { %7993 = vst [vmem:[#allocation241_spill] sm:$0xff] %v5129_v59  ;;  %7994 = vst [vmem:[#allocation242_spill] sm:$0xff] %v5131_v28  ;;  %v5154_v28 = vld [vmem:[%s7593_s0 + $0x128] sm:$0xff] }
 0x246   :  { %1236 = vrot.lane.b32.xlu1 %v5136_v57, %s3570_s14  ;;  %1234 = vrot.lane.b32.xlu0 %v5143_v61, %s3570_s14 }
 0x248   :  { %v5147_v29 = vpop.permute.xlu1 %996  ;;  %v5149_v59 = vpop.permute.xlu0 %994 }
 0x249   :  { %7995 = vst [vmem:[#allocation243_spill] sm:$0xff] %v5147_v29  ;;  %7996 = vst [vmem:[#allocation244_spill] sm:$0xff] %v5149_v59  ;;  %v5172_v59 = vld [vmem:[%s7593_s0 + $0x138] sm:$0xff] }
 0x24a   :  { %1240 = vrot.lane.b32.xlu1 %v5154_v28, %s3570_s14  ;;  %1238 = vrot.lane.b32.xlu0 %v5161_v60, %s3570_s14 }
 0x24c   :  { %v5165_v49 = vpop.permute.xlu1 %1000  ;;  %v5167_v29 = vpop.permute.xlu0 %998 }
 0x24d   :  { %7997 = vst [vmem:[#allocation245_spill] sm:$0xff] %v5165_v49  ;;  %7998 = vst [vmem:[#allocation246_spill] sm:$0xff] %v5167_v29  ;;  %v5190_v29 = vld [vmem:[%s7593_s0 + $0x148] sm:$0xff] }
 0x24e   :  { %1244 = vrot.lane.b32.xlu1 %v5172_v59, %s3570_s14  ;;  %1242 = vrot.lane.b32.xlu0 %v5179_v54, %s3570_s14 }
 0x250   :  { %v5183_v26 = vpop.permute.xlu1 %1004  ;;  %v5185_v49 = vpop.permute.xlu0 %1002 }
 0x251   :  { %7999 = vst [vmem:[#allocation247_spill] sm:$0xff] %v5183_v26  ;;  %8000 = vst [vmem:[#allocation248_spill] sm:$0xff] %v5185_v49  ;;  %v5208_v49 = vld [vmem:[%s7593_s0 + $0x158] sm:$0xff] }
 0x252   :  { %1248 = vrot.lane.b32.xlu1 %v5190_v29, %s3570_s14  ;;  %1246 = vrot.lane.b32.xlu0 %v5197_v17, %s3570_s14 }
 0x254   :  { %v5201_v63 = vpop.permute.xlu1 %1008  ;;  %v5203_v26 = vpop.permute.xlu0 %1006 }
 0x255   :  { %8001 = vst [vmem:[#allocation249_spill] sm:$0xff] %v5201_v63  ;;  %8002 = vst [vmem:[#allocation250_spill] sm:$0xff] %v5203_v26  ;;  %v5226_v26 = vld [vmem:[%s7593_s0 + $0x168] sm:$0xff] }
 0x256   :  { %1252 = vrot.lane.b32.xlu1 %v5208_v49, %s3570_s14  ;;  %1250 = vrot.lane.b32.xlu0 %v5215_v27, %s3570_s14 }
 0x258   :  { %v5219_v33 = vpop.permute.xlu1 %1012  ;;  %v5221_v63 = vpop.permute.xlu0 %1010 }
 0x259   :  { %8003 = vst [vmem:[#allocation251_spill] sm:$0xff] %v5219_v33  ;;  %8004 = vst [vmem:[#allocation252_spill] sm:$0xff] %v5221_v63  ;;  %v5244_v63 = vld [vmem:[%s7593_s0 + $0x178] sm:$0xff] }
 0x25a   :  { %1256 = vrot.lane.b32.xlu1 %v5226_v26, %s3570_s14  ;;  %1254 = vrot.lane.b32.xlu0 %v5233_v53, %s3570_s14 }
 0x25c   :  { %v5237_v24 = vpop.permute.xlu1 %1016  ;;  %v5239_v33 = vpop.permute.xlu0 %1014 }
 0x25d   :  { %8005 = vst [vmem:[#allocation253_spill] sm:$0xff] %v5237_v24  ;;  %8006 = vst [vmem:[#allocation254_spill] sm:$0xff] %v5239_v33  ;;  %v5262_v33 = vld [vmem:[%s7593_s0 + $0x188] sm:$0xff] }
 0x25e   :  { %1260 = vrot.lane.b32.xlu1 %v5244_v63, %s3570_s14  ;;  %1258 = vrot.lane.b32.xlu0 %v5251_v51, %s3570_s14 }
 0x260   :  { %v5255_v56 = vpop.permute.xlu1 %1020  ;;  %v5257_v24 = vpop.permute.xlu0 %1018 }
 0x261   :  { %8007 = vst [vmem:[#allocation255_spill] sm:$0xff] %v5255_v56  ;;  %8008 = vst [vmem:[#allocation256_spill] sm:$0xff] %v5257_v24  ;;  %v5280_v24 = vld [vmem:[%s7593_s0 + $0x198] sm:$0xff] }
 0x262   :  { %1264 = vrot.lane.b32.xlu1 %v5262_v33, %s3570_s14  ;;  %1262 = vrot.lane.b32.xlu0 %v5269_v25, %s3570_s14 }
 0x264   :  { %v5273_v16 = vpop.permute.xlu1 %1024  ;;  %v5275_v56 = vpop.permute.xlu0 %1022 }
 0x265   :  { %8009 = vst [vmem:[#allocation257_spill] sm:$0xff] %v5273_v16  ;;  %8010 = vst [vmem:[#allocation258_spill] sm:$0xff] %v5275_v56  ;;  %v5298_v56 = vld [vmem:[%s7593_s0 + $0x1a8] sm:$0xff] }
 0x266   :  { %1268 = vrot.lane.b32.xlu1 %v5280_v24, %s3570_s14  ;;  %1266 = vrot.lane.b32.xlu0 %v5287_v1, %s3570_s14 }
 0x268   :  { %v5291_v22 = vpop.permute.xlu1 %1028  ;;  %v5293_v16 = vpop.permute.xlu0 %1026 }
 0x269   :  { %8011 = vst [vmem:[#allocation259_spill] sm:$0xff] %v5291_v22  ;;  %8012 = vst [vmem:[#allocation260_spill] sm:$0xff] %v5293_v16  ;;  %v5316_v16 = vld [vmem:[%s7593_s0 + $0x1b8] sm:$0xff] }
 0x26a   :  { %1272 = vrot.lane.b32.xlu1 %v5298_v56, %s3570_s14  ;;  %1270 = vrot.lane.b32.xlu0 %v5305_v32, %s3570_s14 }
 0x26c   :  { %v5309_v50 = vpop.permute.xlu1 %1032  ;;  %v5311_v22 = vpop.permute.xlu0 %1030 }
 0x26d   :  { %8013 = vst [vmem:[#allocation261_spill] sm:$0xff] %v5309_v50  ;;  %8014 = vst [vmem:[#allocation262_spill] sm:$0xff] %v5311_v22  ;;  %v5334_v22 = vld [vmem:[%s7593_s0 + $0x1c8] sm:$0xff] }
 0x26e   :  { %1276 = vrot.lane.b32.xlu1 %v5316_v16, %s3570_s14  ;;  %1274 = vrot.lane.b32.xlu0 %v5323_v23, %s3570_s14 }
 0x270   :  { %v5327_v35 = vpop.permute.xlu1 %1036  ;;  %v5329_v50 = vpop.permute.xlu0 %1034 }
 0x271   :  { %8015 = vst [vmem:[#allocation263_spill] sm:$0xff] %v5327_v35  ;;  %8016 = vst [vmem:[#allocation264_spill] sm:$0xff] %v5329_v50  ;;  %v5352_v50 = vld [vmem:[%s7593_s0 + $0x1d8] sm:$0xff] }
 0x272   :  { %1280 = vrot.lane.b32.xlu1 %v5334_v22, %s3570_s14  ;;  %1278 = vrot.lane.b32.xlu0 %v5341_v52, %s3570_s14  ;;  %8019 = vst [vmem:[#allocation267_spill] sm:$0xff] %v5352_v50 }
 0x274   :  { %v5345_v20 = vpop.permute.xlu1 %1168  ;;  %v5347_v35 = vpop.permute.xlu0 %1166 }
 0x275   :  { %8017 = vst [vmem:[#allocation265_spill] sm:$0xff] %v5345_v20  ;;  %8018 = vst [vmem:[#allocation266_spill] sm:$0xff] %v5347_v35  ;;  %v5370_v35 = vld [vmem:[%s7593_s0 + $0x1e8] sm:$0xff] }
 0x276   :  { %1284 = vrot.lane.b32.xlu1 %v5352_v50, %s3570_s14  ;;  %1282 = vrot.lane.b32.xlu0 %v5359_v0, %s3570_s14  ;;  %8022 = vst [vmem:[#allocation270_spill] sm:$0xff] %v5370_v35 }
 0x278   :  { %v5363_v48 = vpop.permute.xlu1 %1172  ;;  %v5365_v20 = vpop.permute.xlu0 %1170 }
 0x279   :  { %8020 = vst [vmem:[#allocation268_spill] sm:$0xff] %v5363_v48  ;;  %8021 = vst [vmem:[#allocation269_spill] sm:$0xff] %v5365_v20  ;;  %v5388_v20 = vld [vmem:[%s7593_s0 + $0x1f8] sm:$0xff] }
 0x27a   :  { %1288 = vrot.lane.b32.xlu1 %v5370_v35, %s3570_s14  ;;  %1286 = vrot.lane.b32.xlu0 %v5377_v21, %s3570_s14  ;;  %8026 = vst [vmem:[#allocation274_spill] sm:$0xff] %v5388_v20  ;;  %v5395_v35 = vld [vmem:[%s7593_s0 + $0x1f0] sm:$0xff] }
 0x27b   :  { %8027 = vst [vmem:[#allocation275_spill] sm:$0xff] %v5395_v35 }
 0x27c   :  { %v5381_v50 = vpop.permute.xlu1 %1176  ;;  %v5383_v48 = vpop.permute.xlu0 %1174 }
 0x27d   :  { %8024 = vst [vmem:[#allocation272_spill] sm:$0xff] %v5381_v50  ;;  %8025 = vst [vmem:[#allocation273_spill] sm:$0xff] %v5383_v48 }
 0x27e   :  { %1292 = vrot.lane.b32.xlu1 %v5388_v20, %s3570_s14  ;;  %1290 = vrot.lane.b32.xlu0 %v5395_v35, %s3570_s14  ;;  %s3572_s14 = smov 100  }
 0x280   :  { %v5399_v21 = vpop.permute.xlu1 %1180  ;;  %v5401_v50 = vpop.permute.xlu0 %1178 }
 0x281   :  { %8028 = vst [vmem:[#allocation276_spill] sm:$0xff] %v5399_v21  ;;  %8029 = vst [vmem:[#allocation277_spill] sm:$0xff] %v5401_v50 }
 0x282   :  { %1424 = vrot.lane.b32.xlu1 %v4830_v62, %s3571_s16  ;;  %1422 = vrot.lane.b32.xlu0 %v4837_v58, %s3571_s16 }
 0x284   :  { %v5407_v48 = vpop.permute.xlu1 %1184  ;;  %v5409_v20 = vpop.permute.xlu0 %1182 }
 0x285   :  { %8030 = vst [vmem:[#allocation278_spill] sm:$0xff] %v5407_v48  ;;  %8031 = vst [vmem:[#allocation279_spill] sm:$0xff] %v5409_v20 }
 0x286   :  { %1428 = vrot.lane.b32.xlu1 %v4848_v19, %s3571_s16  ;;  %1426 = vrot.lane.b32.xlu0 %v4855_v46, %s3571_s16 }
 0x288   :  { %v5415_v21 = vpop.permute.xlu1 %1188  ;;  %v5417_v50 = vpop.permute.xlu0 %1186 }
 0x289   :  { %8032 = vst [vmem:[#allocation280_spill] sm:$0xff] %v5415_v21  ;;  %8033 = vst [vmem:[#allocation281_spill] sm:$0xff] %v5417_v50 }
 0x28a   :  { %1432 = vrot.lane.b32.xlu1 %v4866_v47, %s3571_s16  ;;  %1430 = vrot.lane.b32.xlu0 %v4873_v14, %s3571_s16 }
 0x28c   :  { %v5423_v35 = vpop.permute.xlu1 %1192  ;;  %v5425_v48 = vpop.permute.xlu0 %1190 }
 0x28d   :  { %8034 = vst [vmem:[#allocation282_spill] sm:$0xff] %v5423_v35  ;;  %8035 = vst [vmem:[#allocation283_spill] sm:$0xff] %v5425_v48 }
 0x28e   :  { %1436 = vrot.lane.b32.xlu1 %v4884_v45, %s3571_s16  ;;  %1434 = vrot.lane.b32.xlu0 %v4891_v12, %s3571_s16 }
 0x290   :  { %v5431_v20 = vpop.permute.xlu1 %1196  ;;  %v5433_v21 = vpop.permute.xlu0 %1194 }
 0x291   :  { %8036 = vst [vmem:[#allocation284_spill] sm:$0xff] %v5431_v20  ;;  %8037 = vst [vmem:[#allocation285_spill] sm:$0xff] %v5433_v21 }
 0x292   :  { %1440 = vrot.lane.b32.xlu1 %v4902_v42, %s3571_s16  ;;  %1438 = vrot.lane.b32.xlu0 %v4909_v10, %s3571_s16 }
 0x294   :  { %v5439_v50 = vpop.permute.xlu1 %1200  ;;  %v5441_v35 = vpop.permute.xlu0 %1198 }
 0x295   :  { %8038 = vst [vmem:[#allocation286_spill] sm:$0xff] %v5439_v50  ;;  %8039 = vst [vmem:[#allocation287_spill] sm:$0xff] %v5441_v35 }
 0x296   :  { %1444 = vrot.lane.b32.xlu1 %v4920_v40, %s3571_s16  ;;  %1442 = vrot.lane.b32.xlu0 %v4927_v8, %s3571_s16 }
 0x298   :  { %v5447_v48 = vpop.permute.xlu1 %1204  ;;  %v5449_v20 = vpop.permute.xlu0 %1202 }
 0x299   :  { %8040 = vst [vmem:[#allocation288_spill] sm:$0xff] %v5447_v48  ;;  %8041 = vst [vmem:[#allocation289_spill] sm:$0xff] %v5449_v20 }
 0x29a   :  { %1448 = vrot.lane.b32.xlu1 %v4938_v38, %s3571_s16  ;;  %1446 = vrot.lane.b32.xlu0 %v4945_v6, %s3571_s16 }
 0x29c   :  { %v5455_v21 = vpop.permute.xlu1 %1208  ;;  %v5457_v50 = vpop.permute.xlu0 %1206 }
 0x29d   :  { %8042 = vst [vmem:[#allocation290_spill] sm:$0xff] %v5455_v21  ;;  %8043 = vst [vmem:[#allocation291_spill] sm:$0xff] %v5457_v50 }
 0x29e   :  { %1452 = vrot.lane.b32.xlu1 %v4956_v9, %s3571_s16  ;;  %1450 = vrot.lane.b32.xlu0 %v4963_v7, %s3571_s16 }
 0x2a0   :  { %v5463_v35 = vpop.permute.xlu1 %1212  ;;  %v5465_v48 = vpop.permute.xlu0 %1210 }
 0x2a1   :  { %8044 = vst [vmem:[#allocation292_spill] sm:$0xff] %v5463_v35  ;;  %8045 = vst [vmem:[#allocation293_spill] sm:$0xff] %v5465_v48 }
 0x2a2   :  { %1456 = vrot.lane.b32.xlu1 %v4974_v41, %s3571_s16  ;;  %1454 = vrot.lane.b32.xlu0 %v4981_v36, %s3571_s16 }
 0x2a4   :  { %v5471_v20 = vpop.permute.xlu1 %1216  ;;  %v5473_v21 = vpop.permute.xlu0 %1214 }
 0x2a5   :  { %8046 = vst [vmem:[#allocation294_spill] sm:$0xff] %v5471_v20  ;;  %8047 = vst [vmem:[#allocation295_spill] sm:$0xff] %v5473_v21 }
 0x2a6   :  { %1460 = vrot.lane.b32.xlu1 %v4992_v39, %s3571_s16  ;;  %1458 = vrot.lane.b32.xlu0 %v4999_v11, %s3571_s16 }
 0x2a8   :  { %v5479_v50 = vpop.permute.xlu1 %1220  ;;  %v5481_v35 = vpop.permute.xlu0 %1218 }
 0x2a9   :  { %8048 = vst [vmem:[#allocation296_spill] sm:$0xff] %v5479_v50  ;;  %8049 = vst [vmem:[#allocation297_spill] sm:$0xff] %v5481_v35 }
 0x2aa   :  { %1464 = vrot.lane.b32.xlu1 %v5010_v43, %s3571_s16  ;;  %1462 = vrot.lane.b32.xlu0 %v5017_v5, %s3571_s16 }
 0x2ac   :  { %v5487_v48 = vpop.permute.xlu1 %1224  ;;  %v5489_v20 = vpop.permute.xlu0 %1222 }
 0x2ad   :  { %8050 = vst [vmem:[#allocation298_spill] sm:$0xff] %v5487_v48  ;;  %8051 = vst [vmem:[#allocation299_spill] sm:$0xff] %v5489_v20 }
 0x2ae   :  { %1468 = vrot.lane.b32.xlu1 %v5028_v4, %s3571_s16  ;;  %1466 = vrot.lane.b32.xlu0 %v5035_v34, %s3571_s16 }
 0x2b0   :  { %v5495_v21 = vpop.permute.xlu1 %1228  ;;  %v5497_v50 = vpop.permute.xlu0 %1226 }
 0x2b1   :  { %8052 = vst [vmem:[#allocation300_spill] sm:$0xff] %v5495_v21  ;;  %8053 = vst [vmem:[#allocation301_spill] sm:$0xff] %v5497_v50 }
 0x2b2   :  { %1472 = vrot.lane.b32.xlu1 %v5046_v37, %s3571_s16  ;;  %1470 = vrot.lane.b32.xlu0 %v5053_v13, %s3571_s16 }
 0x2b4   :  { %v5503_v35 = vpop.permute.xlu1 %1232  ;;  %v5505_v48 = vpop.permute.xlu0 %1230 }
 0x2b5   :  { %8054 = vst [vmem:[#allocation302_spill] sm:$0xff] %v5503_v35  ;;  %8055 = vst [vmem:[#allocation303_spill] sm:$0xff] %v5505_v48 }
 0x2b6   :  { %1476 = vrot.lane.b32.xlu1 %v5064_v18, %s3571_s16  ;;  %1474 = vrot.lane.b32.xlu0 %v5071_v2, %s3571_s16 }
 0x2b8   :  { %v5511_v20 = vpop.permute.xlu1 %1236  ;;  %v5513_v21 = vpop.permute.xlu0 %1234 }
 0x2b9   :  { %8056 = vst [vmem:[#allocation304_spill] sm:$0xff] %v5511_v20  ;;  %8057 = vst [vmem:[#allocation305_spill] sm:$0xff] %v5513_v21 }
 0x2ba   :  { %1480 = vrot.lane.b32.xlu1 %v5082_v3, %s3571_s16  ;;  %1478 = vrot.lane.b32.xlu0 %v5089_v15, %s3571_s16 }
 0x2bc   :  { %v5519_v50 = vpop.permute.xlu1 %1240  ;;  %v5521_v35 = vpop.permute.xlu0 %1238 }
 0x2bd   :  { %8058 = vst [vmem:[#allocation306_spill] sm:$0xff] %v5519_v50  ;;  %8059 = vst [vmem:[#allocation307_spill] sm:$0xff] %v5521_v35 }
 0x2be   :  { %1484 = vrot.lane.b32.xlu1 %v5100_v44, %s3571_s16  ;;  %1482 = vrot.lane.b32.xlu0 %v5107_v30, %s3571_s16 }
 0x2c0   :  { %v5527_v48 = vpop.permute.xlu1 %1244  ;;  %v5529_v20 = vpop.permute.xlu0 %1242 }
 0x2c1   :  { %8060 = vst [vmem:[#allocation308_spill] sm:$0xff] %v5527_v48  ;;  %8061 = vst [vmem:[#allocation309_spill] sm:$0xff] %v5529_v20 }
 0x2c2   :  { %1488 = vrot.lane.b32.xlu1 %v5118_v31, %s3571_s16  ;;  %1486 = vrot.lane.b32.xlu0 %v5125_v55, %s3571_s16 }
 0x2c4   :  { %v5535_v21 = vpop.permute.xlu1 %1248  ;;  %v5537_v50 = vpop.permute.xlu0 %1246 }
 0x2c5   :  { %8062 = vst [vmem:[#allocation310_spill] sm:$0xff] %v5535_v21  ;;  %8063 = vst [vmem:[#allocation311_spill] sm:$0xff] %v5537_v50 }
 0x2c6   :  { %1492 = vrot.lane.b32.xlu1 %v5136_v57, %s3571_s16  ;;  %1490 = vrot.lane.b32.xlu0 %v5143_v61, %s3571_s16 }
 0x2c8   :  { %v5543_v35 = vpop.permute.xlu1 %1252  ;;  %v5545_v48 = vpop.permute.xlu0 %1250 }
 0x2c9   :  { %8064 = vst [vmem:[#allocation312_spill] sm:$0xff] %v5543_v35  ;;  %8065 = vst [vmem:[#allocation313_spill] sm:$0xff] %v5545_v48 }
 0x2ca   :  { %1496 = vrot.lane.b32.xlu1 %v5154_v28, %s3571_s16  ;;  %1494 = vrot.lane.b32.xlu0 %v5161_v60, %s3571_s16 }
 0x2cc   :  { %v5551_v20 = vpop.permute.xlu1 %1256  ;;  %v5553_v21 = vpop.permute.xlu0 %1254 }
 0x2cd   :  { %8066 = vst [vmem:[#allocation314_spill] sm:$0xff] %v5551_v20  ;;  %8067 = vst [vmem:[#allocation315_spill] sm:$0xff] %v5553_v21 }
 0x2ce   :  { %1500 = vrot.lane.b32.xlu1 %v5172_v59, %s3571_s16  ;;  %1498 = vrot.lane.b32.xlu0 %v5179_v54, %s3571_s16 }
 0x2d0   :  { %v5559_v50 = vpop.permute.xlu1 %1260  ;;  %v5561_v35 = vpop.permute.xlu0 %1258 }
 0x2d1   :  { %8068 = vst [vmem:[#allocation316_spill] sm:$0xff] %v5559_v50  ;;  %8069 = vst [vmem:[#allocation317_spill] sm:$0xff] %v5561_v35 }
 0x2d2   :  { %1504 = vrot.lane.b32.xlu1 %v5190_v29, %s3571_s16  ;;  %1502 = vrot.lane.b32.xlu0 %v5197_v17, %s3571_s16 }
 0x2d4   :  { %v5567_v48 = vpop.permute.xlu1 %1264  ;;  %v5569_v20 = vpop.permute.xlu0 %1262 }
 0x2d5   :  { %8070 = vst [vmem:[#allocation318_spill] sm:$0xff] %v5567_v48  ;;  %8071 = vst [vmem:[#allocation319_spill] sm:$0xff] %v5569_v20 }
 0x2d6   :  { %1508 = vrot.lane.b32.xlu1 %v5208_v49, %s3571_s16  ;;  %1506 = vrot.lane.b32.xlu0 %v5215_v27, %s3571_s16 }
 0x2d8   :  { %v5575_v21 = vpop.permute.xlu1 %1268  ;;  %v5577_v50 = vpop.permute.xlu0 %1266 }
 0x2d9   :  { %8072 = vst [vmem:[#allocation320_spill] sm:$0xff] %v5575_v21  ;;  %8073 = vst [vmem:[#allocation321_spill] sm:$0xff] %v5577_v50 }
 0x2da   :  { %1512 = vrot.lane.b32.xlu1 %v5226_v26, %s3571_s16  ;;  %1510 = vrot.lane.b32.xlu0 %v5233_v53, %s3571_s16 }
 0x2dc   :  { %v5583_v35 = vpop.permute.xlu1 %1272  ;;  %v5585_v48 = vpop.permute.xlu0 %1270 }
 0x2dd   :  { %8074 = vst [vmem:[#allocation322_spill] sm:$0xff] %v5583_v35  ;;  %8075 = vst [vmem:[#allocation323_spill] sm:$0xff] %v5585_v48 }
 0x2de   :  { %1516 = vrot.lane.b32.xlu1 %v5244_v63, %s3571_s16  ;;  %1514 = vrot.lane.b32.xlu0 %v5251_v51, %s3571_s16 }
 0x2e0   :  { %v5591_v20 = vpop.permute.xlu1 %1276  ;;  %v5593_v21 = vpop.permute.xlu0 %1274 }
 0x2e1   :  { %8076 = vst [vmem:[#allocation324_spill] sm:$0xff] %v5591_v20  ;;  %8077 = vst [vmem:[#allocation325_spill] sm:$0xff] %v5593_v21 }
 0x2e2   :  { %1520 = vrot.lane.b32.xlu1 %v5262_v33, %s3571_s16  ;;  %1518 = vrot.lane.b32.xlu0 %v5269_v25, %s3571_s16 }
 0x2e4   :  { %v5599_v50 = vpop.permute.xlu1 %1280  ;;  %v5601_v35 = vpop.permute.xlu0 %1278 }
 0x2e5   :  { %8078 = vst [vmem:[#allocation326_spill] sm:$0xff] %v5599_v50  ;;  %8079 = vst [vmem:[#allocation327_spill] sm:$0xff] %v5601_v35 }
 0x2e6   :  { %1524 = vrot.lane.b32.xlu1 %v5280_v24, %s3571_s16  ;;  %1522 = vrot.lane.b32.xlu0 %v5287_v1, %s3571_s16 }
 0x2e8   :  { %v5607_v48 = vpop.permute.xlu1 %1284  ;;  %v5609_v20 = vpop.permute.xlu0 %1282 }
 0x2e9   :  { %8080 = vst [vmem:[#allocation328_spill] sm:$0xff] %v5607_v48  ;;  %8081 = vst [vmem:[#allocation329_spill] sm:$0xff] %v5609_v20 }
 0x2ea   :  { %1528 = vrot.lane.b32.xlu1 %v5298_v56, %s3571_s16  ;;  %1526 = vrot.lane.b32.xlu0 %v5305_v32, %s3571_s16 }
 0x2ec   :  { %v5615_v21 = vpop.permute.xlu1 %1288  ;;  %v5617_v50 = vpop.permute.xlu0 %1286 }
 0x2ed   :  { %8082 = vst [vmem:[#allocation330_spill] sm:$0xff] %v5615_v21  ;;  %8083 = vst [vmem:[#allocation331_spill] sm:$0xff] %v5617_v50 }
 0x2ee   :  { %1532 = vrot.lane.b32.xlu1 %v5316_v16, %s3571_s16  ;;  %1530 = vrot.lane.b32.xlu0 %v5323_v23, %s3571_s16 }
 0x2f0   :  { %v5623_v35 = vpop.permute.xlu1 %1292  ;;  %v5625_v48 = vpop.permute.xlu0 %1290 }
 0x2f1   :  { %8084 = vst [vmem:[#allocation332_spill] sm:$0xff] %v5623_v35  ;;  %8085 = vst [vmem:[#allocation333_spill] sm:$0xff] %v5625_v48 }
 0x2f2   :  { %1678 = vrot.lane.b32.xlu1 %v4837_v58, %s3572_s14  ;;  %1534 = vrot.lane.b32.xlu0 %v5341_v52, %s3571_s16 }
 0x2f4   :  { %v5631_v21 = vpop.permute.xlu1 %1424  ;;  %v5633_v50 = vpop.permute.xlu0 %1422 }
 0x2f5   :  { %8086 = vst [vmem:[#allocation334_spill] sm:$0xff] %v5631_v21  ;;  %8087 = vst [vmem:[#allocation335_spill] sm:$0xff] %v5633_v50 }
 0x2f6   :  { %1680 = vrot.lane.b32.xlu1 %v4830_v62, %s3572_s14  ;;  %1742 = vrot.lane.b32.xlu0 %v5125_v55, %s3572_s14 }
 0x2f8   :  { %v5639_v35 = vpop.permute.xlu1 %1428  ;;  %v5641_v48 = vpop.permute.xlu0 %1426 }
 0x2f9   :  { %8088 = vst [vmem:[#allocation336_spill] sm:$0xff] %v5639_v35  ;;  %8089 = vst [vmem:[#allocation337_spill] sm:$0xff] %v5641_v48 }
 0x2fa   :  { %1934 = vrot.lane.b32.xlu1 %v4837_v58, %s3573_s11  ;;  %1744 = vrot.lane.b32.xlu0 %v5118_v31, %s3572_s14 }
 0x2fc   :  { %v5647_v20 = vpop.permute.xlu1 %1432  ;;  %v5649_v21 = vpop.permute.xlu0 %1430 }
 0x2fd   :  { %8090 = vst [vmem:[#allocation338_spill] sm:$0xff] %v5647_v20  ;;  %8091 = vst [vmem:[#allocation339_spill] sm:$0xff] %v5649_v21 }
 0x2fe   :  { %1936 = vrot.lane.b32.xlu1 %v4830_v62, %s3573_s11  ;;  %1998 = vrot.lane.b32.xlu0 %v5125_v55, %s3573_s11 }
 0x300   :  { %v5655_v35 = vpop.permute.xlu1 %1436  ;;  %v5657_v48 = vpop.permute.xlu0 %1434 }
 0x301   :  { %8092 = vst [vmem:[#allocation340_spill] sm:$0xff] %v5655_v35  ;;  %8093 = vst [vmem:[#allocation341_spill] sm:$0xff] %v5657_v48 }
 0x302   :  { %1682 = vrot.lane.b32.xlu1 %v4855_v46, %s3572_s14  ;;  %2000 = vrot.lane.b32.xlu0 %v5118_v31, %s3573_s11 }
 0x304   :  { %v5663_v50 = vpop.permute.xlu1 %1440  ;;  %v5665_v20 = vpop.permute.xlu0 %1438 }
 0x305   :  { %8094 = vst [vmem:[#allocation342_spill] sm:$0xff] %v5663_v50  ;;  %8095 = vst [vmem:[#allocation343_spill] sm:$0xff] %v5665_v20 }
 0x306   :  { %1684 = vrot.lane.b32.xlu1 %v4848_v19, %s3572_s14  ;;  %1746 = vrot.lane.b32.xlu0 %v5143_v61, %s3572_s14 }
 0x308   :  { %v5671_v21 = vpop.permute.xlu1 %1444  ;;  %v5673_v35 = vpop.permute.xlu0 %1442 }
 0x309   :  { %8096 = vst [vmem:[#allocation344_spill] sm:$0xff] %v5671_v21  ;;  %8097 = vst [vmem:[#allocation345_spill] sm:$0xff] %v5673_v35 }
 0x30a   :  { %1938 = vrot.lane.b32.xlu1 %v4855_v46, %s3573_s11  ;;  %1748 = vrot.lane.b32.xlu0 %v5136_v57, %s3572_s14 }
 0x30c   :  { %v5679_v48 = vpop.permute.xlu1 %1448  ;;  %v5681_v50 = vpop.permute.xlu0 %1446 }
 0x30d   :  { %8098 = vst [vmem:[#allocation346_spill] sm:$0xff] %v5679_v48  ;;  %8099 = vst [vmem:[#allocation347_spill] sm:$0xff] %v5681_v50 }
 0x30e   :  { %1940 = vrot.lane.b32.xlu1 %v4848_v19, %s3573_s11  ;;  %2002 = vrot.lane.b32.xlu0 %v5143_v61, %s3573_s11 }
 0x310   :  { %v5687_v20 = vpop.permute.xlu1 %1452  ;;  %v5689_v21 = vpop.permute.xlu0 %1450 }
 0x311   :  { %8100 = vst [vmem:[#allocation348_spill] sm:$0xff] %v5687_v20  ;;  %8101 = vst [vmem:[#allocation349_spill] sm:$0xff] %v5689_v21 }
 0x312   :  { %1686 = vrot.lane.b32.xlu1 %v4873_v14, %s3572_s14  ;;  %2004 = vrot.lane.b32.xlu0 %v5136_v57, %s3573_s11 }
 0x314   :  { %v5695_v35 = vpop.permute.xlu1 %1456  ;;  %v5697_v48 = vpop.permute.xlu0 %1454 }
 0x315   :  { %8102 = vst [vmem:[#allocation350_spill] sm:$0xff] %v5695_v35  ;;  %8103 = vst [vmem:[#allocation351_spill] sm:$0xff] %v5697_v48 }
 0x316   :  { %1688 = vrot.lane.b32.xlu1 %v4866_v47, %s3572_s14  ;;  %1750 = vrot.lane.b32.xlu0 %v5161_v60, %s3572_s14 }
 0x318   :  { %v5703_v50 = vpop.permute.xlu1 %1460  ;;  %v5705_v20 = vpop.permute.xlu0 %1458 }
 0x319   :  { %8104 = vst [vmem:[#allocation352_spill] sm:$0xff] %v5703_v50  ;;  %8105 = vst [vmem:[#allocation353_spill] sm:$0xff] %v5705_v20 }
 0x31a   :  { %1942 = vrot.lane.b32.xlu1 %v4873_v14, %s3573_s11  ;;  %1752 = vrot.lane.b32.xlu0 %v5154_v28, %s3572_s14 }
 0x31c   :  { %v5711_v21 = vpop.permute.xlu1 %1464  ;;  %v5713_v35 = vpop.permute.xlu0 %1462 }
 0x31d   :  { %8106 = vst [vmem:[#allocation354_spill] sm:$0xff] %v5711_v21  ;;  %8107 = vst [vmem:[#allocation355_spill] sm:$0xff] %v5713_v35 }
 0x31e   :  { %1944 = vrot.lane.b32.xlu1 %v4866_v47, %s3573_s11  ;;  %2006 = vrot.lane.b32.xlu0 %v5161_v60, %s3573_s11 }
 0x320   :  { %v5719_v48 = vpop.permute.xlu1 %1468  ;;  %v5721_v50 = vpop.permute.xlu0 %1466 }
 0x321   :  { %8108 = vst [vmem:[#allocation356_spill] sm:$0xff] %v5719_v48  ;;  %8109 = vst [vmem:[#allocation357_spill] sm:$0xff] %v5721_v50 }
 0x322   :  { %1690 = vrot.lane.b32.xlu1 %v4891_v12, %s3572_s14  ;;  %2008 = vrot.lane.b32.xlu0 %v5154_v28, %s3573_s11 }
 0x324   :  { %v5727_v20 = vpop.permute.xlu1 %1472  ;;  %v5729_v21 = vpop.permute.xlu0 %1470 }
 0x325   :  { %8110 = vst [vmem:[#allocation358_spill] sm:$0xff] %v5727_v20  ;;  %8111 = vst [vmem:[#allocation359_spill] sm:$0xff] %v5729_v21 }
 0x326   :  { %1692 = vrot.lane.b32.xlu1 %v4884_v45, %s3572_s14  ;;  %1754 = vrot.lane.b32.xlu0 %v5179_v54, %s3572_s14 }
 0x328   :  { %v5735_v60 = vpop.permute.xlu1 %1476  ;;  %v5737_v48 = vpop.permute.xlu0 %1474 }
 0x329   :  { %8112 = vst [vmem:[#allocation360_spill] sm:$0xff] %v5735_v60  ;;  %8113 = vst [vmem:[#allocation361_spill] sm:$0xff] %v5737_v48 }
 0x32a   :  { %1946 = vrot.lane.b32.xlu1 %v4891_v12, %s3573_s11  ;;  %1756 = vrot.lane.b32.xlu0 %v5172_v59, %s3572_s14 }
 0x32c   :  { %v5743_v28 = vpop.permute.xlu1 %1480  ;;  %v5745_v20 = vpop.permute.xlu0 %1478 }
 0x32d   :  { %8114 = vst [vmem:[#allocation362_spill] sm:$0xff] %v5743_v28  ;;  %8115 = vst [vmem:[#allocation363_spill] sm:$0xff] %v5745_v20 }
 0x32e   :  { %1948 = vrot.lane.b32.xlu1 %v4884_v45, %s3573_s11  ;;  %2010 = vrot.lane.b32.xlu0 %v5179_v54, %s3573_s11 }
 0x330   :  { %v5751_v21 = vpop.permute.xlu1 %1484  ;;  %v5753_v60 = vpop.permute.xlu0 %1482 }
 0x331   :  { %8116 = vst [vmem:[#allocation364_spill] sm:$0xff] %v5751_v21  ;;  %8117 = vst [vmem:[#allocation365_spill] sm:$0xff] %v5753_v60 }
 0x332   :  { %1694 = vrot.lane.b32.xlu1 %v4909_v10, %s3572_s14  ;;  %2012 = vrot.lane.b32.xlu0 %v5172_v59, %s3573_s11 }
 0x334   :  { %v5759_v48 = vpop.permute.xlu1 %1488  ;;  %v5761_v28 = vpop.permute.xlu0 %1486 }
 0x336   :  { %1696 = vrot.lane.b32.xlu1 %v4902_v42, %s3572_s14  ;;  %1758 = vrot.lane.b32.xlu0 %v5197_v17, %s3572_s14 }
 0x338   :  { %v5767_v54 = vpop.permute.xlu1 %1492  ;;  %v5769_v21 = vpop.permute.xlu0 %1490 }
 0x339   :  { %8118 = vst [vmem:[#allocation366_spill] sm:$0xff] %v5767_v54 }
 0x33a   :  { %1950 = vrot.lane.b32.xlu1 %v4909_v10, %s3573_s11  ;;  %1760 = vrot.lane.b32.xlu0 %v5190_v29, %s3572_s14 }
 0x33c   :  { %v5775_v59 = vpop.permute.xlu1 %1496  ;;  %v5777_v60 = vpop.permute.xlu0 %1494 }
 0x33d   :  { %8119 = vst [vmem:[#allocation367_spill] sm:$0xff] %v5775_v59  ;;  %8120 = vst [vmem:[#allocation368_spill] sm:$0xff] %v5777_v60 }
 0x33e   :  { %1952 = vrot.lane.b32.xlu1 %v4902_v42, %s3573_s11  ;;  %2014 = vrot.lane.b32.xlu0 %v5197_v17, %s3573_s11 }
 0x340   :  { %v5783_v20 = vpop.permute.xlu1 %1500  ;;  %v5785_v50 = vpop.permute.xlu0 %1498 }
 0x341   :  { %8121 = vst [vmem:[#allocation369_spill] sm:$0xff] %v5783_v20  ;;  %8122 = vst [vmem:[#allocation370_spill] sm:$0xff] %v5785_v50 }
 0x342   :  { %1698 = vrot.lane.b32.xlu1 %v4927_v8, %s3572_s14  ;;  %2016 = vrot.lane.b32.xlu0 %v5190_v29, %s3573_s11 }
 0x344   :  { %v5791_v35 = vpop.permute.xlu1 %1504  ;;  %v5793_v59 = vpop.permute.xlu0 %1502 }
 0x345   :  { %8123 = vst [vmem:[#allocation371_spill] sm:$0xff] %v5791_v35  ;;  %8124 = vst [vmem:[#allocation372_spill] sm:$0xff] %v5793_v59 }
 0x346   :  { %1700 = vrot.lane.b32.xlu1 %v4920_v40, %s3572_s14  ;;  %1762 = vrot.lane.b32.xlu0 %v5215_v27, %s3572_s14 }
 0x348   :  { %v5799_v17 = vpop.permute.xlu1 %1508  ;;  %v5801_v20 = vpop.permute.xlu0 %1506 }
 0x349   :  { %8125 = vst [vmem:[#allocation373_spill] sm:$0xff] %v5799_v17  ;;  %8126 = vst [vmem:[#allocation374_spill] sm:$0xff] %v5801_v20 }
 0x34a   :  { %1954 = vrot.lane.b32.xlu1 %v4927_v8, %s3573_s11  ;;  %1764 = vrot.lane.b32.xlu0 %v5208_v49, %s3572_s14 }
 0x34c   :  { %v5807_v29 = vpop.permute.xlu1 %1512  ;;  %v5809_v35 = vpop.permute.xlu0 %1510 }
 0x34d   :  { %8127 = vst [vmem:[#allocation375_spill] sm:$0xff] %v5807_v29  ;;  %8128 = vst [vmem:[#allocation376_spill] sm:$0xff] %v5809_v35 }
 0x34e   :  { %1956 = vrot.lane.b32.xlu1 %v4920_v40, %s3573_s11  ;;  %2018 = vrot.lane.b32.xlu0 %v5215_v27, %s3573_s11  ;;  %v8229_v40 = vld [vmem:[#allocation195_spill] sm:$0xff] }
 0x350   :  { %v5815_v59 = vpop.permute.xlu1 %1516  ;;  %v5817_v17 = vpop.permute.xlu0 %1514 }
 0x351   :  { %8129 = vst [vmem:[#allocation377_spill] sm:$0xff] %v5815_v59  ;;  %8130 = vst [vmem:[#allocation378_spill] sm:$0xff] %v5817_v17 }
 0x352   :  { %1702 = vrot.lane.b32.xlu1 %v4945_v6, %s3572_s14  ;;  %2020 = vrot.lane.b32.xlu0 %v5208_v49, %s3573_s11 }
 0x354   :  { %v5823_v20 = vpop.permute.xlu1 %1520  ;;  %v5825_v29 = vpop.permute.xlu0 %1518 }
 0x355   :  { %8131 = vst [vmem:[#allocation379_spill] sm:$0xff] %v5823_v20  ;;  %8132 = vst [vmem:[#allocation380_spill] sm:$0xff] %v5825_v29 }
 0x356   :  { %1704 = vrot.lane.b32.xlu1 %v4938_v38, %s3572_s14  ;;  %1766 = vrot.lane.b32.xlu0 %v5233_v53, %s3572_s14 }
 0x358   :  { %v5831_v27 = vpop.permute.xlu1 %1524  ;;  %v5833_v59 = vpop.permute.xlu0 %1522 }
 0x359   :  { %8133 = vst [vmem:[#allocation381_spill] sm:$0xff] %v5831_v27  ;;  %8134 = vst [vmem:[#allocation382_spill] sm:$0xff] %v5833_v59 }
 0x35a   :  { %1958 = vrot.lane.b32.xlu1 %v4945_v6, %s3573_s11  ;;  %1768 = vrot.lane.b32.xlu0 %v5226_v26, %s3572_s14 }
 0x35c   :  { %v5839_v49 = vpop.permute.xlu1 %1528  ;;  %v5841_v20 = vpop.permute.xlu0 %1526 }
 0x35d   :  { %8135 = vst [vmem:[#allocation383_spill] sm:$0xff] %v5839_v49  ;;  %8136 = vst [vmem:[#allocation384_spill] sm:$0xff] %v5841_v20 }
 0x35e   :  { %1960 = vrot.lane.b32.xlu1 %v4938_v38, %s3573_s11  ;;  %2022 = vrot.lane.b32.xlu0 %v5233_v53, %s3573_s11 }
 0x360   :  { %v5847_v29 = vpop.permute.xlu1 %1532  ;;  %v5849_v27 = vpop.permute.xlu0 %1530 }
 0x361   :  { %8137 = vst [vmem:[#allocation385_spill] sm:$0xff] %v5847_v29  ;;  %8138 = vst [vmem:[#allocation386_spill] sm:$0xff] %v5849_v27 }
 0x362   :  { %1706 = vrot.lane.b32.xlu1 %v4963_v7, %s3572_s14  ;;  %2024 = vrot.lane.b32.xlu0 %v5226_v26, %s3573_s11 }
 0x364   :  { %v5855_v59 = vpop.permute.xlu1 %1678  ;;  %v5857_v49 = vpop.permute.xlu0 %1534 }
 0x365   :  { %8139 = vst [vmem:[#allocation387_spill] sm:$0xff] %v5857_v49 }
 0x366   :  { %1708 = vrot.lane.b32.xlu1 %v4956_v9, %s3572_s14  ;;  %1770 = vrot.lane.b32.xlu0 %v5251_v51, %s3572_s14 }
 0x368   :  { %v5863_v53 = vpop.permute.xlu1 %1680  ;;  %v5865_v29 = vpop.permute.xlu0 %1742 }
 0x36a   :  { %1962 = vrot.lane.b32.xlu1 %v4963_v7, %s3573_s11  ;;  %1772 = vrot.lane.b32.xlu0 %v5244_v63, %s3572_s14 }
 0x36c   :  { %v5871_v26 = vpop.permute.xlu1 %1934  ;;  %v5873_v27 = vpop.permute.xlu0 %1744 }
 0x36e   :  { %1964 = vrot.lane.b32.xlu1 %v4956_v9, %s3573_s11  ;;  %2026 = vrot.lane.b32.xlu0 %v5251_v51, %s3573_s11  ;;  %v8247_v9 = vld [vmem:[#allocation38_spill] sm:$0xff] }
 0x370   :  { %v5879_v49 = vpop.permute.xlu1 %1936  ;;  %v5881_v20 = vpop.permute.xlu0 %1998 }
 0x372   :  { %1710 = vrot.lane.b32.xlu1 %v4981_v36, %s3572_s14  ;;  %2028 = vrot.lane.b32.xlu0 %v5244_v63, %s3573_s11 }
 0x374   :  { %v5887_v17 = vpop.permute.xlu1 %1682  ;;  %v5889_v35 = vpop.permute.xlu0 %2000 }
 0x376   :  { %1712 = vrot.lane.b32.xlu1 %v4974_v41, %s3572_s14  ;;  %1774 = vrot.lane.b32.xlu0 %v5269_v25, %s3572_s14 }
 0x378   :  { %v5895_v51 = vpop.permute.xlu1 %1684  ;;  %v5897_v50 = vpop.permute.xlu0 %1746 }
 0x379   :  { %8140 = vst [vmem:[#allocation388_spill] sm:$0xff] %v5895_v51  ;;  %8141 = vst [vmem:[#allocation389_spill] sm:$0xff] %v5897_v50 }
 0x37a   :  { %1966 = vrot.lane.b32.xlu1 %v4981_v36, %s3573_s11  ;;  %1776 = vrot.lane.b32.xlu0 %v5262_v33, %s3572_s14 }
 0x37c   :  { %v5903_v63 = vpop.permute.xlu1 %1938  ;;  %v5905_v60 = vpop.permute.xlu0 %1748 }
 0x37d   :  { %8142 = vst [vmem:[#allocation390_spill] sm:$0xff] %v5903_v63  ;;  %8143 = vst [vmem:[#allocation391_spill] sm:$0xff] %v5905_v60 }
 0x37e   :  { %1968 = vrot.lane.b32.xlu1 %v4974_v41, %s3573_s11  ;;  %2030 = vrot.lane.b32.xlu0 %v5269_v25, %s3573_s11 }
 0x380   :  { %v5911_v54 = vpop.permute.xlu1 %1940  ;;  %v5913_v51 = vpop.permute.xlu0 %2002 }
 0x381   :  { %8144 = vst [vmem:[#allocation392_spill] sm:$0xff] %v5911_v54  ;;  %8145 = vst [vmem:[#allocation393_spill] sm:$0xff] %v5913_v51  ;;  %v8230_v51 = vld [vmem:[#allocation233_spill] sm:$0xff] }
 0x382   :  { %1714 = vrot.lane.b32.xlu1 %v4999_v11, %s3572_s14  ;;  %2032 = vrot.lane.b32.xlu0 %v5262_v33, %s3573_s11 }
 0x384   :  { %v5919_v50 = vpop.permute.xlu1 %1686  ;;  %v5921_v63 = vpop.permute.xlu0 %2004 }
 0x385   :  { %8146 = vst [vmem:[#allocation394_spill] sm:$0xff] %v5919_v50  ;;  %8147 = vst [vmem:[#allocation395_spill] sm:$0xff] %v5921_v63 }
 0x386   :  { %1716 = vrot.lane.b32.xlu1 %v4992_v39, %s3572_s14  ;;  %1778 = vrot.lane.b32.xlu0 %v5287_v1, %s3572_s14 }
 0x388   :  { %v5927_v25 = vpop.permute.xlu1 %1688  ;;  %v5929_v54 = vpop.permute.xlu0 %1750 }
 0x389   :  { %8148 = vst [vmem:[#allocation396_spill] sm:$0xff] %v5927_v25  ;;  %8149 = vst [vmem:[#allocation397_spill] sm:$0xff] %v5929_v54 }
 0x38a   :  { %1970 = vrot.lane.b32.xlu1 %v4999_v11, %s3573_s11  ;;  %1780 = vrot.lane.b32.xlu0 %v5280_v24, %s3572_s14 }
 0x38c   :  { %v5935_v33 = vpop.permute.xlu1 %1942  ;;  %v5937_v50 = vpop.permute.xlu0 %1752 }
 0x38d   :  { %8150 = vst [vmem:[#allocation398_spill] sm:$0xff] %v5935_v33  ;;  %8151 = vst [vmem:[#allocation399_spill] sm:$0xff] %v5937_v50  ;;  %v8213_v50 = vld [vmem:[#allocation107_spill] sm:$0xff] }
 0x38e   :  { %1972 = vrot.lane.b32.xlu1 %v4992_v39, %s3573_s11  ;;  %2034 = vrot.lane.b32.xlu0 %v5287_v1, %s3573_s11 }
 0x390   :  { %v5943_v63 = vpop.permute.xlu1 %1944  ;;  %v5945_v25 = vpop.permute.xlu0 %2006 }
 0x391   :  { %8152 = vst [vmem:[#allocation400_spill] sm:$0xff] %v5943_v63  ;;  %8153 = vst [vmem:[#allocation401_spill] sm:$0xff] %v5945_v25 }
 0x392   :  { %1718 = vrot.lane.b32.xlu1 %v5017_v5, %s3572_s14  ;;  %2036 = vrot.lane.b32.xlu0 %v5280_v24, %s3573_s11 }
 0x394   :  { %v5951_v54 = vpop.permute.xlu1 %1690  ;;  %v5953_v33 = vpop.permute.xlu0 %2008 }
 0x395   :  { %8154 = vst [vmem:[#allocation402_spill] sm:$0xff] %v5951_v54  ;;  %8155 = vst [vmem:[#allocation403_spill] sm:$0xff] %v5953_v33 }
 0x396   :  { %1720 = vrot.lane.b32.xlu1 %v5010_v43, %s3572_s14  ;;  %1782 = vrot.lane.b32.xlu0 %v5305_v32, %s3572_s14 }
 0x398   :  { %v5959_v1 = vpop.permute.xlu1 %1692  ;;  %v5961_v63 = vpop.permute.xlu0 %1754 }
 0x399   :  { %8156 = vst [vmem:[#allocation404_spill] sm:$0xff] %v5959_v1  ;;  %8157 = vst [vmem:[#allocation405_spill] sm:$0xff] %v5961_v63 }
 0x39a   :  { %1974 = vrot.lane.b32.xlu1 %v5017_v5, %s3573_s11  ;;  %1784 = vrot.lane.b32.xlu0 %v5298_v56, %s3572_s14 }
 0x39c   :  { %v5967_v24 = vpop.permute.xlu1 %1946  ;;  %v5969_v54 = vpop.permute.xlu0 %1756 }
 0x39d   :  { %8158 = vst [vmem:[#allocation406_spill] sm:$0xff] %v5967_v24  ;;  %8159 = vst [vmem:[#allocation407_spill] sm:$0xff] %v5969_v54  ;;  %v8209_v54 = vld [vmem:[#allocation16_spill] sm:$0xff] }
 0x39e   :  { %1976 = vrot.lane.b32.xlu1 %v5010_v43, %s3573_s11  ;;  %2038 = vrot.lane.b32.xlu0 %v5305_v32, %s3573_s11  ;;  %v8246_v43 = vld [vmem:[#allocation335_spill] sm:$0xff] }
 0x3a0   :  { %v5975_v33 = vpop.permute.xlu1 %1948  ;;  %v5977_v1 = vpop.permute.xlu0 %2010 }
 0x3a1   :  { %8160 = vst [vmem:[#allocation408_spill] sm:$0xff] %v5975_v33  ;;  %8161 = vst [vmem:[#allocation409_spill] sm:$0xff] %v5977_v1  ;;  %v8242_v1 = vld [vmem:[#allocation36_spill] sm:$0xff] }
 0x3a2   :  { %1722 = vrot.lane.b32.xlu1 %v5035_v34, %s3572_s14  ;;  %2040 = vrot.lane.b32.xlu0 %v5298_v56, %s3573_s11 }
 0x3a4   :  { %v5983_v63 = vpop.permute.xlu1 %1694  ;;  %v5985_v24 = vpop.permute.xlu0 %2012 }
 0x3a5   :  { %8162 = vst [vmem:[#allocation410_spill] sm:$0xff] %v5983_v63  ;;  %8163 = vst [vmem:[#allocation411_spill] sm:$0xff] %v5985_v24 }
 0x3a6   :  { %1724 = vrot.lane.b32.xlu1 %v5028_v4, %s3572_s14  ;;  %1786 = vrot.lane.b32.xlu0 %v5323_v23, %s3572_s14 }
 0x3a8   :  { %v5991_v32 = vpop.permute.xlu1 %1696  ;;  %v5993_v33 = vpop.permute.xlu0 %1758 }
 0x3a9   :  { %8164 = vst [vmem:[#allocation412_spill] sm:$0xff] %v5991_v32  ;;  %8165 = vst [vmem:[#allocation413_spill] sm:$0xff] %v5993_v33 }
 0x3aa   :  { %1978 = vrot.lane.b32.xlu1 %v5035_v34, %s3573_s11  ;;  %1788 = vrot.lane.b32.xlu0 %v5316_v16, %s3572_s14 }
 0x3ac   :  { %v5999_v56 = vpop.permute.xlu1 %1950  ;;  %v6001_v63 = vpop.permute.xlu0 %1760 }
 0x3ad   :  { %8166 = vst [vmem:[#allocation414_spill] sm:$0xff] %v5999_v56  ;;  %8167 = vst [vmem:[#allocation415_spill] sm:$0xff] %v6001_v63 }
 0x3ae   :  { %1536 = vrot.lane.b32.xlu1 %v5334_v22, %s3571_s16  ;;  %2042 = vrot.lane.b32.xlu0 %v5323_v23, %s3573_s11 }
 0x3b0   :  { %v6007_v24 = vpop.permute.xlu1 %1952  ;;  %v6009_v32 = vpop.permute.xlu0 %2014 }
 0x3b1   :  { %8168 = vst [vmem:[#allocation416_spill] sm:$0xff] %v6007_v24  ;;  %8169 = vst [vmem:[#allocation417_spill] sm:$0xff] %v6009_v32 }
 0x3b2   :  { %2044 = vrot.lane.b32.xlu1 %v5316_v16, %s3573_s11  ;;  %1980 = vrot.lane.b32.xlu0 %v5028_v4, %s3573_s11 }
 0x3b4   :  { %v6015_v33 = vpop.permute.xlu1 %1698  ;;  %v6017_v56 = vpop.permute.xlu0 %2016 }
 0x3b5   :  { %8170 = vst [vmem:[#allocation418_spill] sm:$0xff] %v6015_v33  ;;  %8171 = vst [vmem:[#allocation419_spill] sm:$0xff] %v6017_v56 }
 0x3b6   :  { %1790 = vrot.lane.b32.xlu1 %v5341_v52, %s3572_s14  ;;  %1726 = vrot.lane.b32.xlu0 %v5053_v13, %s3572_s14 }
 0x3b8   :  { %v6023_v23 = vpop.permute.xlu1 %1700  ;;  %v6025_v24 = vpop.permute.xlu0 %1762 }
 0x3b9   :  { %8172 = vst [vmem:[#allocation420_spill] sm:$0xff] %v6023_v23  ;;  %8173 = vst [vmem:[#allocation421_spill] sm:$0xff] %v6025_v24  ;;  %v8178_v24 = vld [vmem:[#allocation267_spill] sm:$0xff] }
 0x3ba   :  { %1792 = vrot.lane.b32.xlu1 %v5334_v22, %s3572_s14  ;;  %1728 = vrot.lane.b32.xlu0 %v5046_v37, %s3572_s14 }
 0x3bc   :  { %v6031_v16 = vpop.permute.xlu1 %1954  ;;  %v6033_v33 = vpop.permute.xlu0 %1764 }
 0x3bd   :  { %8174 = vst [vmem:[#allocation422_spill] sm:$0xff] %v6031_v16  ;;  %8175 = vst [vmem:[#allocation423_spill] sm:$0xff] %v6033_v33 }
 0x3be   :  { %1982 = vrot.lane.b32.xlu1 %v5053_v13, %s3573_s11  ;;  %1538 = vrot.lane.b32.xlu0 %v5359_v0, %s3571_s16 }
 0x3c0   :  { %v6039_v56 = vpop.permute.xlu1 %1956  ;;  %v6041_v23 = vpop.permute.xlu0 %2018 }
 0x3c1   :  { %8176 = vst [vmem:[#allocation424_spill] sm:$0xff] %v6039_v56  ;;  %8177 = vst [vmem:[#allocation425_spill] sm:$0xff] %v6041_v23 }
 0x3c2   :  { %1540 = vrot.lane.b32.xlu1 %v8178_v24, %s3571_s16  ;;  %2046 = vrot.lane.b32.xlu0 %v5341_v52, %s3573_s11 }
 0x3c4   :  { %v6047_v63 = vpop.permute.xlu1 %1702  ;;  %v6049_v16 = vpop.permute.xlu0 %2020 }
 0x3c5   :  { %8179 = vst [vmem:[#allocation267_spill] sm:$0xff] %v6047_v63  ;;  %8180 = vst [vmem:[#allocation426_spill] sm:$0xff] %v6049_v16 }
 0x3c6   :  { %2048 = vrot.lane.b32.xlu1 %v5334_v22, %s3573_s11  ;;  %1984 = vrot.lane.b32.xlu0 %v5046_v37, %s3573_s11 }
 0x3c8   :  { %v6055_v33 = vpop.permute.xlu1 %1704  ;;  %v6057_v56 = vpop.permute.xlu0 %1766 }
 0x3c9   :  { %8181 = vst [vmem:[#allocation427_spill] sm:$0xff] %v6055_v33  ;;  %8182 = vst [vmem:[#allocation428_spill] sm:$0xff] %v6057_v56  ;;  %v8187_v56 = vld [vmem:[#allocation271_spill] sm:$0xff] }
 0x3ca   :  { %1794 = vrot.lane.b32.xlu1 %v5359_v0, %s3572_s14  ;;  %1730 = vrot.lane.b32.xlu0 %v5071_v2, %s3572_s14 }
 0x3cc   :  { %v6063_v52 = vpop.permute.xlu1 %1958  ;;  %v6065_v63 = vpop.permute.xlu0 %1768 }
 0x3cd   :  { %8183 = vst [vmem:[#allocation429_spill] sm:$0xff] %v6063_v52  ;;  %8184 = vst [vmem:[#allocation430_spill] sm:$0xff] %v6065_v63  ;;  %v8190_v63 = vld [vmem:[#allocation270_spill] sm:$0xff] }
 0x3ce   :  { %1796 = vrot.lane.b32.xlu1 %v8178_v24, %s3572_s14  ;;  %1732 = vrot.lane.b32.xlu0 %v5064_v18, %s3572_s14 }
 0x3d0   :  { %v6071_v22 = vpop.permute.xlu1 %1960  ;;  %v6073_v33 = vpop.permute.xlu0 %2022 }
 0x3d1   :  { %8185 = vst [vmem:[#allocation431_spill] sm:$0xff] %v6071_v22  ;;  %8186 = vst [vmem:[#allocation432_spill] sm:$0xff] %v6073_v33  ;;  %v8206_v33 = vld [vmem:[#allocation46_spill] sm:$0xff] }
 0x3d2   :  { %1986 = vrot.lane.b32.xlu1 %v5071_v2, %s3573_s11  ;;  %1542 = vrot.lane.b32.xlu0 %v8187_v56, %s3571_s16  ;;  %v366_v32 = vmax.f32 %v5125_v55, %v8206_v33  ;;  %v8212_v33 = vld [vmem:[#allocation78_spill] sm:$0xff] }
 0x3d3   :  { %v8225_v55 = vld [vmem:[#allocation26_spill] sm:$0xff] }
 0x3d4   :  { %v6079_v16 = vpop.permute.xlu1 %1706  ;;  %v6081_v52 = vpop.permute.xlu0 %2024  ;;  %v622_v25 = vmax.f32 %v366_v32, %v8213_v50  ;;  %v8221_v50 = vld [vmem:[#allocation136_spill] sm:$0xff] }
 0x3d5   :  { %8188 = vst [vmem:[#allocation271_spill] sm:$0xff] %v6079_v16  ;;  %8189 = vst [vmem:[#allocation433_spill] sm:$0xff] %v6081_v52 }
 0x3d6   :  { %1544 = vrot.lane.b32.xlu1 %v8190_v63, %s3571_s16  ;;  %2050 = vrot.lane.b32.xlu0 %v5359_v0, %s3573_s11 }
 0x3d8   :  { %v6087_v23 = vpop.permute.xlu1 %1708  ;;  %v6089_v22 = vpop.permute.xlu0 %1770 }
 0x3d9   :  { %8191 = vst [vmem:[#allocation270_spill] sm:$0xff] %v6087_v23  ;;  %8192 = vst [vmem:[#allocation434_spill] sm:$0xff] %v6089_v22 }
 0x3da   :  { %2052 = vrot.lane.b32.xlu1 %v8178_v24, %s3573_s11  ;;  %1988 = vrot.lane.b32.xlu0 %v5064_v18, %s3573_s11 }
 0x3dc   :  { %v6095_v2 = vpop.permute.xlu1 %1962  ;;  %v6097_v16 = vpop.permute.xlu0 %1772 }
 0x3dd   :  { %8193 = vst [vmem:[#allocation435_spill] sm:$0xff] %v6095_v2  ;;  %8194 = vst [vmem:[#allocation436_spill] sm:$0xff] %v6097_v16  ;;  %v8199_v16 = vld [vmem:[#allocation275_spill] sm:$0xff] }
 0x3de   :  { %1798 = vrot.lane.b32.xlu1 %v8187_v56, %s3572_s14  ;;  %1734 = vrot.lane.b32.xlu0 %v5089_v15, %s3572_s14 }
 0x3e0   :  { %v6103_v0 = vpop.permute.xlu1 %1964  ;;  %v6105_v23 = vpop.permute.xlu0 %2026 }
 0x3e1   :  { %8195 = vst [vmem:[#allocation437_spill] sm:$0xff] %v6103_v0  ;;  %8196 = vst [vmem:[#allocation438_spill] sm:$0xff] %v6105_v23  ;;  %v8202_v23 = vld [vmem:[#allocation274_spill] sm:$0xff] }
 0x3e2   :  { %1800 = vrot.lane.b32.xlu1 %v8190_v63, %s3572_s14  ;;  %1736 = vrot.lane.b32.xlu0 %v5082_v3, %s3572_s14 }
 0x3e4   :  { %v6111_v24 = vpop.permute.xlu1 %1710  ;;  %v6113_v2 = vpop.permute.xlu0 %2028 }
 0x3e5   :  { %8197 = vst [vmem:[#allocation439_spill] sm:$0xff] %v6111_v24  ;;  %8198 = vst [vmem:[#allocation440_spill] sm:$0xff] %v6113_v2  ;;  %v8205_v2 = vld [vmem:[#allocation13_spill] sm:$0xff] }
 0x3e6   :  { %1990 = vrot.lane.b32.xlu1 %v5089_v15, %s3573_s11  ;;  %1546 = vrot.lane.b32.xlu0 %v8199_v16, %s3571_s16  ;;  %v334_v15 = vmax.f32 %v4837_v58, %v8205_v2  ;;  %v8211_v2 = vld [vmem:[#allocation18_spill] sm:$0xff] }
 0x3e8   :  { %v6119_v22 = vpop.permute.xlu1 %1712  ;;  %v6121_v0 = vpop.permute.xlu0 %1774 }
 0x3e9   :  { %8200 = vst [vmem:[#allocation275_spill] sm:$0xff] %v6119_v22  ;;  %8201 = vst [vmem:[#allocation441_spill] sm:$0xff] %v6121_v0  ;;  %v8207_v22 = vld [vmem:[#allocation12_spill] sm:$0xff] }
 0x3ea   :  { %1548 = vrot.lane.b32.xlu1 %v8202_v23, %s3571_s16  ;;  %2054 = vrot.lane.b32.xlu0 %v8187_v56, %s3573_s11  ;;  %v336_v0 = vmax.f32 %v4855_v46, %v8207_v22  ;;  %v8208_v56 = vld [vmem:[#allocation15_spill] sm:$0xff] }
 0x3eb   :  { %v8216_v46 = vld [vmem:[#allocation19_spill] sm:$0xff] }
 0x3ec   :  { %v6127_v52 = vpop.permute.xlu1 %1966  ;;  %v6129_v24 = vpop.permute.xlu0 %1776 }
 0x3ed   :  { %8203 = vst [vmem:[#allocation274_spill] sm:$0xff] %v6127_v52  ;;  %8204 = vst [vmem:[#allocation442_spill] sm:$0xff] %v6129_v24  ;;  %v335_v24 = vmax.f32 %v4830_v62, %v8209_v54  ;;  %v8217_v52 = vld [vmem:[#allocation20_spill] sm:$0xff] }
 0x3ee   :  { %2056 = vrot.lane.b32.xlu1 %v8190_v63, %s3573_s11  ;;  %1992 = vrot.lane.b32.xlu0 %v5082_v3, %s3573_s11  ;;  %v590_v63 = vmax.f32 %v334_v15, %v8212_v33  ;;  %v8222_v33 = vld [vmem:[#allocation167_spill] sm:$0xff]  ;;  %v8235_v15 = vld [vmem:[#allocation32_spill] sm:$0xff] }
 0x3f0   :  { %v6151_v3 = vpop.permute.xlu1 %1968  ;;  %v6153_v60 = vpop.permute.xlu0 %2030  ;;  %v846_v32 = vmax.f32 %v590_v63, %v8221_v50  ;;  %v8227_v50 = vld [vmem:[#allocation28_spill] sm:$0xff]  ;;  %v8240_v63 = vld [vmem:[#allocation34_spill] sm:$0xff] }
 0x3f1   :  { %8214 = vst [vmem:[#allocation13_spill] sm:$0xff] %v6151_v3  ;;  %8215 = vst [vmem:[#allocation46_spill] sm:$0xff] %v6153_v60  ;;  %v878_v3 = vmax.f32 %v622_v25, %v8222_v33  ;;  %v8233_v60 = vld [vmem:[#allocation30_spill] sm:$0xff]  ;;  %v8237_v33 = vld [vmem:[#allocation45_spill] sm:$0xff] }
 0x3f2   :  { %1802 = vrot.lane.b32.xlu1 %v8199_v16, %s3572_s14  ;;  %1738 = vrot.lane.b32.xlu0 %v5107_v30, %s3572_s14  ;;  %v1102_v42 = vmax.f32 %v846_v32, %v8229_v40  ;;  %v367_v32 = vmax.f32 %v5118_v31, %v8237_v33  ;;  %v8241_v25 = vld [vmem:[#allocation35_spill] sm:$0xff]  ;;  %v8243_v31 = vld [vmem:[#allocation77_spill] sm:$0xff] }
 0x3f3   :  { %v1134_v10 = vmax.f32 %v878_v3, %v8230_v51  ;;  %v8238_v3 = vld [vmem:[#allocation266_spill] sm:$0xff]  ;;  %v8239_v51 = vld [vmem:[#allocation303_spill] sm:$0xff]  ;;  %v591_v33 = vmax.f32 %v335_v24, %v8243_v31  ;;  %v8248_v31 = vld [vmem:[#allocation48_spill] sm:$0xff] }
 0x3f4   :  { %v6185_v62 = vpop.permute.xlu1 %1714  ;;  %v6187_v22 = vpop.permute.xlu0 %2032  ;;  %v1358_v40 = vmax.f32 %v1102_v42, %v8238_v3  ;;  %v8249_v42 = vld [vmem:[#allocation9_spill] sm:$0xff] }
 0x3f5   :  { %8231 = vst [vmem:[#allocation12_spill] sm:$0xff] %v6185_v62  ;;  %8232 = vst [vmem:[#allocation15_spill] sm:$0xff] %v6187_v22  ;;  %v1390_v62 = vmax.f32 %v1134_v10, %v8239_v51  ;;  %v8245_v51 = vld [vmem:[#allocation106_spill] sm:$0xff]  ;;  %v368_v10 = vmax.f32 %v5143_v61, %v8248_v31  ;;  %v8252_v61 = vld [vmem:[#allocation11_spill] sm:$0xff] }
 0x3f6   :  { %1804 = vrot.lane.b32.xlu1 %v8202_v23, %s3572_s14  ;;  %1740 = vrot.lane.b32.xlu0 %v5100_v44, %s3572_s14  ;;  %v623_v3 = vmax.f32 %v367_v32, %v8245_v51  ;;  %v1614_v58 = vmax.f32 %v1358_v40, %v8246_v43  ;;  %v2511_v22 = vld [vmem:[%s7594_s1] sm:$0xff]  ;;  %v847_v32 = vmax.f32 %v591_v33, %v8249_v42  ;;  %v8253_v33 = vld [vmem:[#allocation109_spill] sm:$0xff] }
 0x3f7   :  { %v1646_v44 = vmax.f32 %v1390_v62, %v5761_v28  ;;  %3360 = vmatprep.subr.mxu0 %v2511_v22  ;;  %3458 = vmatprep.subr.mxu1 %v2511_v22  ;;  %v8250_v40 = vld [vmem:[#allocation166_spill] sm:$0xff]  ;;  %v592_v31 = vmax.f32 %v336_v0, %v8252_v61  ;;  %v624_v42 = vmax.f32 %v368_v10, %v8253_v33  ;;  %v6251_v0 = vld [vmem:[%s7593_s0 + $0xd0] sm:$0xff]  ;;  %v8262_v33 = vld [vmem:[#allocation169_spill] sm:$0xff] }
 0x3f8   :  { %v6217_v39 = vpop.permute.xlu1 %1716  ;;  %v6219_v54 = vpop.permute.xlu0 %1778  ;;  %v879_v43 = vmax.f32 %v623_v3, %v8250_v40  ;;  %v1870_v28 = vmax.f32 %v1614_v58, %v5855_v59  ;;  %3361 = vmatpush3.msra.mxu0 %v2511_v22  ;;  %3459 = vmatpush3.msra.mxu1 %v2511_v22  ;;  %v8254_v3 = vld [vmem:[#allocation194_spill] sm:$0xff]  ;;  %v8255_v59 = vld [vmem:[#allocation232_spill] sm:$0xff]  ;;  %8256 = vst [vmem:[#allocation16_spill] sm:$0xff] %v6251_v0 }
 0x3f9   :  { %v1902_v62 = vmax.f32 %v1646_v44, %v5865_v29  ;;  %v1103_v40 = vmax.f32 %v847_v32, %v8254_v3  ;;  %v6258_v32 = vld [vmem:[%s7593_s0 + $0xe8] sm:$0xff]  ;;  %v880_v24 = vmax.f32 %v624_v42, %v8262_v33  ;;  %v8263_v3 = vld [vmem:[#allocation265_spill] sm:$0xff]  ;;  %v8264_v51 = vld [vmem:[#allocation302_spill] sm:$0xff]  ;;  %v8268_v42 = vmax.f32 %v4848_v19, %v8208_v56 }
 0x3fa   :  { %2058 = vrot.lane.b32.xlu1 %v8199_v16, %s3573_s11  ;;  %1994 = vrot.lane.b32.xlu0 %v5107_v30, %s3573_s11  ;;  %v1135_v58 = vmax.f32 %v879_v43, %v8255_v59  ;;  %v2126_v29 = vmax.f32 %v1870_v28, %v5871_v26  ;;  %8258 = vst [vmem:[#allocation18_spill] sm:$0xff] %v6258_v32  ;;  %v8260_v43 = vld [vmem:[#allocation47_spill] sm:$0xff]  ;;  %v8273_v33 = vld [vmem:[#allocation236_spill] sm:$0xff] }
 0x3fb   :  { %v2158_v16 = vmax.f32 %v1902_v62, %v5881_v20  ;;  %v369_v28 = vmax.f32 %v5136_v57, %v8260_v43  ;;  %v8261_v62 = vld [vmem:[#allocation138_spill] sm:$0xff]  ;;  %v1359_v59 = vmax.f32 %v1103_v40, %v8263_v3  ;;  %v8269_v40 = vld [vmem:[#allocation108_spill] sm:$0xff]  ;;  %v1136_v26 = vmax.f32 %v880_v24, %v8273_v33  ;;  %v8279_v33 = vld [vmem:[#allocation305_spill] sm:$0xff] }
 0x3fc   :  { %v6244_v44 = vpop.permute.xlu1 %1970  ;;  %v6246_v30 = vpop.permute.xlu0 %1780  ;;  %v848_v61 = vmax.f32 %v592_v31, %v8261_v62  ;;  %v1391_v18 = vmax.f32 %v1135_v58, %v8264_v51  ;;  %v6273_v20 = vld [vmem:[%s7593_s0 + $0xe0] sm:$0xff]  ;;  %v8270_v58 = vld [vmem:[#allocation197_spill] sm:$0xff] }
 0x3fd   :  { %8265 = vst [vmem:[#allocation78_spill] sm:$0xff] %v6273_v20  ;;  %v8267_v31 = vld [vmem:[#allocation10_spill] sm:$0xff]  ;;  %v625_v51 = vmax.f32 %v369_v28, %v8269_v40 }
 0x3fe   :  { %2318 = vrot.lane.b32.xlu1 %v2158_v16, %s3574_s19  ;;  %2254 = vrot.lane.b32.xlu0 %v2126_v29, %s3574_s19  ;;  %v593_v3 = vmax.f32 %v8268_v42, %v8267_v31  ;;  %v1104_v43 = vmax.f32 %v848_v61, %v8270_v58  ;;  %v6286_v29 = vld [vmem:[%s7593_s0 + $0xf8] sm:$0xff]  ;;  %v8274_v57 = vld [vmem:[#allocation334_spill] sm:$0xff]  ;;  %v1647_v22 = vmax.f32 %v1391_v18, %v5759_v48  ;;  %v8277_v58 = vld [vmem:[#allocation168_spill] sm:$0xff] }
 0x3ff   :  { %8271 = vst [vmem:[#allocation107_spill] sm:$0xff] %v6286_v29  ;;  %v1615_v32 = vmax.f32 %v1359_v59, %v8274_v57  ;;  %v3537_v28 = vld [vmem:[%s7593_s0 + $0x120] sm:$0xff]  ;;  %v8276_v42 = vld [vmem:[#allocation137_spill] sm:$0xff]  ;;  %v881_v62 = vmax.f32 %v625_v51, %v8277_v58  ;;  %v1392_v59 = vmax.f32 %v1136_v26, %v8279_v33  ;;  %v8280_v57 = vld [vmem:[#allocation79_spill] sm:$0xff] }
 0x400   :  { %v6293_v19 = vpop.permute.xlu1 %1972  ;;  %v6295_v56 = vpop.permute.xlu0 %2034  ;;  %v8275_v61 = vld [vmem:[#allocation50_spill] sm:$0xff]  ;;  %v849_v40 = vmax.f32 %v593_v3, %v8276_v42  ;;  %v8278_v16 = vld [vmem:[#allocation269_spill] sm:$0xff]  ;;  %v1903_v48 = vmax.f32 %v1647_v22, %v5873_v27  ;;  %v8281_v3 = vmax.f32 %v4873_v14, %v8211_v2  ;;  %v8282_v51 = vld [vmem:[#allocation111_spill] sm:$0xff] }
 0x401   :  { %v370_v31 = vmax.f32 %v3537_v28, %v8275_v61  ;;  %v1360_v24 = vmax.f32 %v1104_v43, %v8278_v16  ;;  %v1871_v18 = vmax.f32 %v1615_v32, %v5863_v53  ;;  %v8283_v43 = vld [vmem:[#allocation196_spill] sm:$0xff]  ;;  %v8284_v26 = vld [vmem:[#allocation235_spill] sm:$0xff]  ;;  %v8285_v53 = vld [vmem:[#allocation337_spill] sm:$0xff]  ;;  %v1648_v27 = vmax.f32 %v1392_v59, %v5769_v21 }
 0x402   :  { %2060 = vrot.lane.b32.xlu1 %v8202_v23, %s3573_s11  ;;  %1996 = vrot.lane.b32.xlu0 %v6286_v29, %s3573_s11  ;;  %v594_v28 = vmax.f32 %v8281_v3, %v8280_v57  ;;  %v1105_v16 = vmax.f32 %v849_v40, %v8283_v43  ;;  %v1137_v33 = vmax.f32 %v881_v62, %v8284_v26  ;;  %v3538_v14 = vld [vmem:[%s7593_s0 + $0x128] sm:$0xff]  ;;  %v8286_v2 = vld [vmem:[#allocation49_spill] sm:$0xff]  ;;  %v8287_v40 = vld [vmem:[#allocation140_spill] sm:$0xff] }
 0x403   :  { %v626_v58 = vmax.f32 %v370_v31, %v8282_v51  ;;  %v1616_v32 = vmax.f32 %v1360_v24, %v8285_v53  ;;  %v2127_v23 = vmax.f32 %v1871_v18, %v5879_v49  ;;  %v2159_v22 = vmax.f32 %v1903_v48, %v5889_v35  ;;  %v8288_v57 = vld [vmem:[#allocation171_spill] sm:$0xff]  ;;  %v8289_v3 = vld [vmem:[#allocation268_spill] sm:$0xff]  ;;  %v8291_v18 = vld [vmem:[#allocation389_spill] sm:$0xff] }
 0x404   :  { %v6322_v61 = vpop.permute.xlu1 %1718  ;;  %v6324_v42 = vpop.permute.xlu0 %2036  ;;  %v371_v31 = vmax.f32 %v3538_v14, %v8286_v2  ;;  %v850_v62 = vmax.f32 %v594_v28, %v8287_v40  ;;  %v1361_v21 = vmax.f32 %v1105_v16, %v8289_v3  ;;  %v8290_v59 = vld [vmem:[#allocation304_spill] sm:$0xff]  ;;  %v1904_v48 = vmax.f32 %v1648_v27, %v8291_v18  ;;  %v8292_v51 = vld [vmem:[#allocation14_spill] sm:$0xff]  ;;  %v8293_v53 = vld [vmem:[#allocation17_spill] sm:$0xff] }
 0x405   :  { %v882_v24 = vmax.f32 %v626_v58, %v8288_v57  ;;  %v1393_v49 = vmax.f32 %v1137_v33, %v8290_v59  ;;  %v1872_v35 = vmax.f32 %v1616_v32, %v5887_v17  ;;  %v8294_v14 = vmax.f32 %v4866_v47, %v8293_v53  ;;  %v8295_v28 = vld [vmem:[#allocation110_spill] sm:$0xff]  ;;  %v8296_v58 = vld [vmem:[#allocation199_spill] sm:$0xff]  ;;  %v8298_v33 = vld [vmem:[#allocation336_spill] sm:$0xff] }
 0x406   :  { %2320 = vrot.lane.b32.xlu1 %v2159_v22, %s3574_s19  ;;  %2256 = vrot.lane.b32.xlu0 %v2127_v23, %s3574_s19  ;;  %v627_v40 = vmax.f32 %v371_v31, %v8295_v28  ;;  %v1106_v57 = vmax.f32 %v850_v62, %v8296_v58  ;;  %v8297_v16 = vld [vmem:[#allocation238_spill] sm:$0xff]  ;;  %v1617_v59 = vmax.f32 %v1361_v21, %v8298_v33  ;;  %v8301_v22 = vld [vmem:[#allocation393_spill] sm:$0xff]  ;;  %v3539_v47 = vld [vmem:[%s7593_s0 + $0x130] sm:$0xff] }
 0x407   :  { %v595_v2 = vmax.f32 %v8294_v14, %v8292_v51  ;;  %v1138_v3 = vmax.f32 %v882_v24, %v8297_v16  ;;  %v8299_v17 = vld [vmem:[#allocation366_spill] sm:$0xff]  ;;  %v2160_v43 = vmax.f32 %v1904_v48, %v8301_v22  ;;  %v8302_v31 = vld [vmem:[#allocation52_spill] sm:$0xff]  ;;  %v8303_v51 = vld [vmem:[#allocation139_spill] sm:$0xff] }
 0x408   :  { %v1649_v32 = vmax.f32 %v1393_v49, %v8299_v17  ;;  %v8300_v27 = vld [vmem:[#allocation390_spill] sm:$0xff]  ;;  %v6349_v23 = vpop.permute.xlu1 %1720  ;;  %v6351_v26 = vpop.permute.xlu0 %1782  ;;  %v372_v62 = vmax.f32 %v3539_v47, %v8302_v31  ;;  %v8305_v14 = vld [vmem:[#allocation273_spill] sm:$0xff]  ;;  %v8306_v28 = vld [vmem:[#allocation307_spill] sm:$0xff]  ;;  %v8310_v47 = vmax.f32 %v4891_v12, %v8217_v52 }
 0x409   :  { %v2128_v18 = vmax.f32 %v1872_v35, %v8300_v27  ;;  %v851_v24 = vmax.f32 %v595_v2, %v8303_v51  ;;  %v8304_v53 = vld [vmem:[#allocation170_spill] sm:$0xff]  ;;  %v1362_v49 = vmax.f32 %v1106_v57, %v8305_v14  ;;  %v1394_v35 = vmax.f32 %v1138_v3, %v8306_v28  ;;  %v8307_v33 = vld [vmem:[#allocation388_spill] sm:$0xff]  ;;  %v8308_v17 = vld [vmem:[#allocation391_spill] sm:$0xff] }
 0x40a   :  { %v883_v21 = vmax.f32 %v627_v40, %v8304_v53  ;;  %v1873_v48 = vmax.f32 %v1617_v59, %v8307_v33  ;;  %v1905_v27 = vmax.f32 %v1649_v32, %v8308_v17  ;;  %2322 = vrot.lane.b32.xlu1 %v2160_v43, %s3574_s19  ;;  %v8309_v22 = vld [vmem:[#allocation81_spill] sm:$0xff]  ;;  %v8312_v40 = vld [vmem:[#allocation198_spill] sm:$0xff]  ;;  %v8314_v3 = vld [vmem:[#allocation339_spill] sm:$0xff] }
 0x40b   :  { %2258 = vrot.lane.b32.xlu0 %v2128_v18, %s3574_s19  ;;  %v596_v31 = vmax.f32 %v8310_v47, %v8309_v22  ;;  %v8311_v2 = vld [vmem:[#allocation113_spill] sm:$0xff]  ;;  %v1107_v53 = vmax.f32 %v851_v24, %v8312_v40  ;;  %v1618_v28 = vmax.f32 %v1362_v49, %v8314_v3  ;;  %v8315_v59 = vld [vmem:[#allocation368_spill] sm:$0xff]  ;;  %v8317_v43 = vld [vmem:[#allocation395_spill] sm:$0xff] }
 0x40c   :  { %v628_v51 = vmax.f32 %v372_v62, %v8311_v2  ;;  %v8313_v57 = vld [vmem:[#allocation237_spill] sm:$0xff]  ;;  %v1650_v33 = vmax.f32 %v1394_v35, %v8315_v59  ;;  %v8316_v32 = vld [vmem:[#allocation392_spill] sm:$0xff]  ;;  %v2161_v58 = vmax.f32 %v1905_v27, %v8317_v43  ;;  %v6376_v18 = vpop.permute.xlu1 %1974  ;;  %v6378_v16 = vpop.permute.xlu0 %1784  ;;  %v8318_v52 = vld [vmem:[#allocation51_spill] sm:$0xff] }
 0x40d   :  { %v1139_v14 = vmax.f32 %v883_v21, %v8313_v57  ;;  %v2129_v17 = vmax.f32 %v1873_v48, %v8316_v32  ;;  %v3540_v12 = vld [vmem:[%s7593_s0 + $0x138] sm:$0xff]  ;;  %v8319_v24 = vld [vmem:[#allocation142_spill] sm:$0xff]  ;;  %v8321_v47 = vld [vmem:[#allocation272_spill] sm:$0xff] }
 0x40e   :  { %v373_v62 = vmax.f32 %v3540_v12, %v8318_v52  ;;  %v852_v21 = vmax.f32 %v596_v31, %v8319_v24  ;;  %v8320_v22 = vld [vmem:[#allocation173_spill] sm:$0xff]  ;;  %v1363_v35 = vmax.f32 %v1107_v53, %v8321_v47  ;;  %v8322_v2 = vld [vmem:[#allocation306_spill] sm:$0xff]  ;;  %2324 = vrot.lane.b32.xlu1 %v2161_v58, %s3574_s19  ;;  %v8325_v43 = vld [vmem:[#allocation80_spill] sm:$0xff]  ;;  %v8326_v12 = vmax.f32 %v4884_v45, %v8216_v46 }
 0x40f   :  { %v884_v49 = vmax.f32 %v628_v51, %v8320_v22  ;;  %v1395_v48 = vmax.f32 %v1139_v14, %v8322_v2  ;;  %v8323_v3 = vld [vmem:[#allocation394_spill] sm:$0xff]  ;;  %v8324_v59 = vld [vmem:[#allocation397_spill] sm:$0xff]  ;;  %2260 = vrot.lane.b32.xlu0 %v2129_v17, %s3574_s19  ;;  %v8327_v31 = vld [vmem:[#allocation112_spill] sm:$0xff] }
 0x410   :  { %v1874_v27 = vmax.f32 %v1618_v28, %v8323_v3  ;;  %v1906_v32 = vmax.f32 %v1650_v33, %v8324_v59  ;;  %v597_v52 = vmax.f32 %v8326_v12, %v8325_v43  ;;  %v629_v24 = vmax.f32 %v373_v62, %v8327_v31  ;;  %v8328_v51 = vld [vmem:[#allocation201_spill] sm:$0xff]  ;;  %v8329_v53 = vld [vmem:[#allocation240_spill] sm:$0xff]  ;;  %v8330_v14 = vld [vmem:[#allocation338_spill] sm:$0xff]  ;;  %v6403_v17 = vpop.permute.xlu1 %1976  ;;  %v6405_v57 = vpop.permute.xlu0 %2038 }
 0x411   :  { %v1108_v22 = vmax.f32 %v852_v21, %v8328_v51  ;;  %v1140_v47 = vmax.f32 %v884_v49, %v8329_v53  ;;  %v1619_v2 = vmax.f32 %v1363_v35, %v8330_v14  ;;  %v8331_v28 = vld [vmem:[#allocation367_spill] sm:$0xff]  ;;  %v8332_v33 = vld [vmem:[#allocation398_spill] sm:$0xff]  ;;  %v8333_v58 = vld [vmem:[#allocation401_spill] sm:$0xff] }
 0x412   :  { %v1651_v3 = vmax.f32 %v1395_v48, %v8331_v28  ;;  %v2130_v59 = vmax.f32 %v1874_v27, %v8332_v33  ;;  %v2162_v40 = vmax.f32 %v1906_v32, %v8333_v58  ;;  %v3541_v45 = vld [vmem:[%s7593_s0 + $0x140] sm:$0xff]  ;;  %v8335_v21 = vld [vmem:[#allocation141_spill] sm:$0xff]  ;;  %v8336_v43 = vld [vmem:[#allocation172_spill] sm:$0xff] }
 0x413   :  { %v8334_v46 = vld [vmem:[#allocation54_spill] sm:$0xff]  ;;  %v853_v49 = vmax.f32 %v597_v52, %v8335_v21  ;;  %v885_v35 = vmax.f32 %v629_v24, %v8336_v43  ;;  %v8337_v12 = vld [vmem:[#allocation277_spill] sm:$0xff]  ;;  %v8339_v14 = vld [vmem:[#allocation396_spill] sm:$0xff] }
 0x414   :  { %v374_v62 = vmax.f32 %v3541_v45, %v8334_v46  ;;  %v1364_v48 = vmax.f32 %v1108_v22, %v8337_v12  ;;  %v8338_v31 = vld [vmem:[#allocation309_spill] sm:$0xff]  ;;  %v1875_v32 = vmax.f32 %v1619_v2, %v8339_v14  ;;  %v8340_v28 = vld [vmem:[#allocation399_spill] sm:$0xff]  ;;  %2326 = vrot.lane.b32.xlu1 %v2162_v40, %s3574_s19  ;;  %2262 = vrot.lane.b32.xlu0 %v2130_v59, %s3574_s19  ;;  %v8343_v53 = vld [vmem:[#allocation22_spill] sm:$0xff]  ;;  %v6430_v59 = vpop.permute.xlu1 %1722  ;;  %v6432_v20 = vpop.permute.xlu0 %2040 }
 0x415   :  { %v1396_v27 = vmax.f32 %v1140_v47, %v8338_v31  ;;  %v1907_v33 = vmax.f32 %v1651_v3, %v8340_v28  ;;  %v8341_v58 = vld [vmem:[#allocation83_spill] sm:$0xff]  ;;  %v8346_v24 = vld [vmem:[#allocation200_spill] sm:$0xff]  ;;  %v8348_v47 = vld [vmem:[#allocation341_spill] sm:$0xff] }
 0x416   :  { %v8342_v51 = vld [vmem:[#allocation211_spill] sm:$0xff]  ;;  %v1109_v43 = vmax.f32 %v853_v49, %v8346_v24  ;;  %v1620_v31 = vmax.f32 %v1364_v48, %v8348_v47  ;;  %v8349_v2 = vld [vmem:[#allocation370_spill] sm:$0xff]  ;;  %v8350_v3 = vld [vmem:[#allocation400_spill] sm:$0xff] }
 0x417   :  { %v8344_v45 = vmax.f32 %v8342_v51, %v8343_v53  ;;  %v8345_v52 = vld [vmem:[#allocation115_spill] sm:$0xff]  ;;  %v1652_v14 = vmax.f32 %v1396_v27, %v8349_v2  ;;  %v2131_v28 = vmax.f32 %v1875_v32, %v8350_v3  ;;  %v8352_v53 = vld [vmem:[#allocation53_spill] sm:$0xff]  ;;  %v8357_v47 = vld [vmem:[#allocation402_spill] sm:$0xff] }
 0x418   :  { %v630_v21 = vmax.f32 %v374_v62, %v8345_v52  ;;  %v8347_v22 = vld [vmem:[#allocation239_spill] sm:$0xff]  ;;  %v8356_v52 = vld [vmem:[#allocation308_spill] sm:$0xff]  ;;  %v8358_v2 = vld [vmem:[#allocation405_spill] sm:$0xff]  ;;  %v6459_v0 = vpop.permute.xlu0 %1786 }
 0x419   :  { %v598_v46 = vmax.f32 %v8344_v45, %v8341_v58  ;;  %v1141_v12 = vmax.f32 %v885_v35, %v8347_v22  ;;  %v8351_v40 = vld [vmem:[#allocation403_spill] sm:$0xff]  ;;  %v8355_v45 = vld [vmem:[#allocation276_spill] sm:$0xff]  ;;  %v1908_v3 = vmax.f32 %v1652_v14, %v8358_v2  ;;  %2264 = vrot.lane.b32.xlu0 %v2131_v28, %s3574_s19  ;;  %v8360_v24 = vld [vmem:[#allocation210_spill] sm:$0xff]  ;;  %v6457_v28 = vpop.permute.xlu1 %1724 }
 0x41a   :  { %v2163_v29 = vmax.f32 %v1907_v33, %v8351_v40  ;;  %v3542_v51 = vld [vmem:[%s7593_s0 + $0x148] sm:$0xff]  ;;  %v1365_v27 = vmax.f32 %v1109_v43, %v8355_v45  ;;  %v1876_v33 = vmax.f32 %v1620_v31, %v8357_v47  ;;  %v8359_v40 = vld [vmem:[#allocation82_spill] sm:$0xff]  ;;  %v8361_v22 = vld [vmem:[#allocation21_spill] sm:$0xff]  ;;  %8370 = vst [vmem:[#allocation19_spill] sm:$0xff] %v6457_v28 }
 0x41b   :  { %v375_v62 = vmax.f32 %v3542_v51, %v8352_v53  ;;  %v8353_v49 = vld [vmem:[#allocation143_spill] sm:$0xff]  ;;  %v1397_v32 = vmax.f32 %v1141_v12, %v8356_v52  ;;  %v8362_v51 = vmax.f32 %v8360_v24, %v8361_v22  ;;  %v8365_v43 = vld [vmem:[#allocation242_spill] sm:$0xff]  ;;  %v8366_v12 = vld [vmem:[#allocation340_spill] sm:$0xff] }
 0x41c   :  { %v854_v35 = vmax.f32 %v598_v46, %v8353_v49  ;;  %v8354_v58 = vld [vmem:[#allocation175_spill] sm:$0xff]  ;;  %2328 = vrot.lane.b32.xlu1 %v2163_v29, %s3574_s19  ;;  %v8363_v46 = vld [vmem:[#allocation114_spill] sm:$0xff]  ;;  %v1621_v52 = vmax.f32 %v1365_v27, %v8366_v12  ;;  %v8367_v31 = vld [vmem:[#allocation369_spill] sm:$0xff]  ;;  %v6486_v28 = vpop.permute.xlu0 %1788 }
 0x41d   :  { %v886_v48 = vmax.f32 %v630_v21, %v8354_v58  ;;  %v599_v53 = vmax.f32 %v8362_v51, %v8359_v40  ;;  %v631_v49 = vmax.f32 %v375_v62, %v8363_v46  ;;  %v8364_v21 = vld [vmem:[#allocation203_spill] sm:$0xff]  ;;  %v1653_v47 = vmax.f32 %v1397_v32, %v8367_v31  ;;  %v8368_v14 = vld [vmem:[#allocation406_spill] sm:$0xff]  ;;  %v8369_v29 = vld [vmem:[#allocation409_spill] sm:$0xff]  ;;  %8389 = vst [vmem:[#allocation136_spill] sm:$0xff] %v6486_v28 }
 0x41e   :  { %v1110_v58 = vmax.f32 %v854_v35, %v8364_v21  ;;  %v2132_v2 = vmax.f32 %v1876_v33, %v8368_v14  ;;  %v2164_v10 = vmax.f32 %v1908_v3, %v8369_v29  ;;  %v3543_v24 = vld [vmem:[%s7593_s0 + $0x150] sm:$0xff]  ;;  %v8372_v35 = vld [vmem:[#allocation2_spill] sm:$0xff]  ;;  %v8374_v51 = vld [vmem:[#allocation279_spill] sm:$0xff] }
 0x41f   :  { %v1142_v45 = vmax.f32 %v886_v48, %v8365_v43  ;;  %v8371_v22 = vld [vmem:[#allocation56_spill] sm:$0xff]  ;;  %v855_v48 = vmax.f32 %v599_v53, %v8372_v35  ;;  %v8373_v40 = vld [vmem:[#allocation174_spill] sm:$0xff]  ;;  %v8375_v46 = vld [vmem:[#allocation311_spill] sm:$0xff] }
 0x420   :  { %v376_v62 = vmax.f32 %v3543_v24, %v8371_v22  ;;  %v887_v27 = vmax.f32 %v631_v49, %v8373_v40  ;;  %v1366_v32 = vmax.f32 %v1110_v58, %v8374_v51  ;;  %v8376_v12 = vld [vmem:[#allocation404_spill] sm:$0xff]  ;;  %v8377_v31 = vld [vmem:[#allocation407_spill] sm:$0xff]  ;;  %2330 = vrot.lane.b32.xlu1 %v2164_v10, %s3574_s19  ;;  %2266 = vrot.lane.b32.xlu0 %v2132_v2, %s3574_s19  ;;  %v8378_v29 = vld [vmem:[#allocation85_spill] sm:$0xff]  ;;  %v6484_v2 = vpop.permute.xlu1 %1978 }
 0x421   :  { %v1398_v33 = vmax.f32 %v1142_v45, %v8375_v46  ;;  %v1877_v3 = vmax.f32 %v1621_v52, %v8376_v12  ;;  %v1909_v14 = vmax.f32 %v1653_v47, %v8377_v31  ;;  %v8379_v21 = vld [vmem:[#allocation24_spill] sm:$0xff]  ;;  %v8381_v53 = vld [vmem:[#allocation117_spill] sm:$0xff]  ;;  %v8382_v49 = vld [vmem:[#allocation202_spill] sm:$0xff]  ;;  %8388 = vst [vmem:[#allocation20_spill] sm:$0xff] %v6484_v2  ;;  %v6513_v2 = vpop.permute.xlu0 %2042 }
 0x422   :  { %v8380_v24 = vmax.f32 %v4927_v8, %v8379_v21  ;;  %v632_v35 = vmax.f32 %v376_v62, %v8381_v53  ;;  %v1111_v40 = vmax.f32 %v855_v48, %v8382_v49  ;;  %v8383_v58 = vld [vmem:[#allocation241_spill] sm:$0xff]  ;;  %v8384_v45 = vld [vmem:[#allocation343_spill] sm:$0xff]  ;;  %v8385_v52 = vld [vmem:[#allocation372_spill] sm:$0xff] }
 0x423   :  { %v1143_v51 = vmax.f32 %v887_v27, %v8383_v58  ;;  %v1622_v46 = vmax.f32 %v1366_v32, %v8384_v45  ;;  %v1654_v12 = vmax.f32 %v1398_v33, %v8385_v52  ;;  %v8386_v47 = vld [vmem:[#allocation408_spill] sm:$0xff]  ;;  %v8387_v10 = vld [vmem:[#allocation411_spill] sm:$0xff]  ;;  %v3544_v8 = vld [vmem:[%s7593_s0 + $0x158] sm:$0xff] }
 0x424   :  { %v600_v22 = vmax.f32 %v8380_v24, %v8378_v29  ;;  %v2133_v31 = vmax.f32 %v1877_v3, %v8386_v47  ;;  %v2165_v43 = vmax.f32 %v1909_v14, %v8387_v10  ;;  %v8390_v21 = vld [vmem:[#allocation55_spill] sm:$0xff]  ;;  %v8391_v48 = vld [vmem:[#allocation145_spill] sm:$0xff]  ;;  %v8393_v24 = vld [vmem:[#allocation278_spill] sm:$0xff] }
 0x425   :  { %v377_v62 = vmax.f32 %v3544_v8, %v8390_v21  ;;  %v8392_v29 = vld [vmem:[#allocation177_spill] sm:$0xff]  ;;  %v1367_v33 = vmax.f32 %v1111_v40, %v8393_v24  ;;  %v8394_v53 = vld [vmem:[#allocation310_spill] sm:$0xff]  ;;  %v8397_v10 = vld [vmem:[#allocation84_spill] sm:$0xff] }
 0x426   :  { %v856_v27 = vmax.f32 %v600_v22, %v8391_v48  ;;  %v888_v32 = vmax.f32 %v632_v35, %v8392_v29  ;;  %v1399_v3 = vmax.f32 %v1143_v51, %v8394_v53  ;;  %v8395_v45 = vld [vmem:[#allocation410_spill] sm:$0xff]  ;;  %v8396_v52 = vld [vmem:[#allocation413_spill] sm:$0xff]  ;;  %2332 = vrot.lane.b32.xlu1 %v2165_v43, %s3574_s19  ;;  %2268 = vrot.lane.b32.xlu0 %v2133_v31, %s3574_s19  ;;  %v8399_v58 = vld [vmem:[#allocation23_spill] sm:$0xff]  ;;  %v6511_v31 = vpop.permute.xlu1 %1536 }
 0x427   :  { %v1878_v14 = vmax.f32 %v1622_v46, %v8395_v45  ;;  %v1910_v47 = vmax.f32 %v1654_v12, %v8396_v52  ;;  %v8398_v49 = vld [vmem:[#allocation214_spill] sm:$0xff]  ;;  %v8401_v22 = vld [vmem:[#allocation116_spill] sm:$0xff]  ;;  %v8402_v35 = vld [vmem:[#allocation205_spill] sm:$0xff]  ;;  %8408 = vst [vmem:[#allocation167_spill] sm:$0xff] %v6511_v31 }
 0x428   :  { %v8400_v8 = vmax.f32 %v8398_v49, %v8399_v58  ;;  %v633_v48 = vmax.f32 %v377_v62, %v8401_v22  ;;  %v1112_v29 = vmax.f32 %v856_v27, %v8402_v35  ;;  %v8403_v40 = vld [vmem:[#allocation244_spill] sm:$0xff]  ;;  %v8404_v51 = vld [vmem:[#allocation342_spill] sm:$0xff]  ;;  %v8405_v46 = vld [vmem:[#allocation371_spill] sm:$0xff] }
 0x429   :  { %v1144_v24 = vmax.f32 %v888_v32, %v8403_v40  ;;  %v1623_v53 = vmax.f32 %v1367_v33, %v8404_v51  ;;  %v1655_v45 = vmax.f32 %v1399_v3, %v8405_v46  ;;  %v8406_v12 = vld [vmem:[#allocation414_spill] sm:$0xff]  ;;  %v8407_v43 = vld [vmem:[#allocation417_spill] sm:$0xff]  ;;  %v8410_v27 = vld [vmem:[#allocation144_spill] sm:$0xff]  ;;  %v6540_v40 = vpop.permute.xlu0 %1980 }
 0x42a   :  { %v601_v21 = vmax.f32 %v8400_v8, %v8397_v10  ;;  %v2134_v52 = vmax.f32 %v1878_v14, %v8406_v12  ;;  %v2166_v28 = vmax.f32 %v1910_v47, %v8407_v43  ;;  %v3545_v49 = vld [vmem:[%s7593_s0 + $0x160] sm:$0xff]  ;;  %v8411_v10 = vld [vmem:[#allocation176_spill] sm:$0xff]  ;;  %v8412_v8 = vld [vmem:[#allocation281_spill] sm:$0xff] }
 0x42b   :  { %v8409_v58 = vld [vmem:[#allocation58_spill] sm:$0xff]  ;;  %v889_v33 = vmax.f32 %v633_v48, %v8411_v10  ;;  %v1368_v3 = vmax.f32 %v1112_v29, %v8412_v8  ;;  %v8413_v22 = vld [vmem:[#allocation313_spill] sm:$0xff]  ;;  %v8414_v51 = vld [vmem:[#allocation412_spill] sm:$0xff] }
 0x42c   :  { %v378_v62 = vmax.f32 %v3545_v49, %v8409_v58  ;;  %v857_v32 = vmax.f32 %v601_v21, %v8410_v27  ;;  %v1400_v14 = vmax.f32 %v1144_v24, %v8413_v22  ;;  %v1879_v47 = vmax.f32 %v1623_v53, %v8414_v51  ;;  %v8415_v46 = vld [vmem:[#allocation415_spill] sm:$0xff]  ;;  %2334 = vrot.lane.b32.xlu1 %v2166_v28, %s3574_s19  ;;  %v8419_v48 = vld [vmem:[#allocation204_spill] sm:$0xff]  ;;  %v8421_v24 = vld [vmem:[#allocation345_spill] sm:$0xff] }
 0x42d   :  { %v1911_v12 = vmax.f32 %v1655_v45, %v8415_v46  ;;  %2270 = vrot.lane.b32.xlu0 %v2134_v52, %s3574_s19  ;;  %v8416_v43 = vld [vmem:[#allocation87_spill] sm:$0xff]  ;;  %v8417_v49 = vmax.f32 %v4945_v6, %v8225_v55  ;;  %v1624_v22 = vmax.f32 %v1368_v3, %v8421_v24  ;;  %v8422_v53 = vld [vmem:[#allocation374_spill] sm:$0xff]  ;;  %v8423_v45 = vld [vmem:[#allocation416_spill] sm:$0xff]  ;;  %v6538_v52 = vpop.permute.xlu1 %2044  ;;  %v6567_v31 = vpop.permute.xlu0 %1726 }
 0x42e   :  { %v8418_v21 = vld [vmem:[#allocation119_spill] sm:$0xff]  ;;  %v1113_v10 = vmax.f32 %v857_v32, %v8419_v48  ;;  %v1656_v51 = vmax.f32 %v1400_v14, %v8422_v53  ;;  %v2135_v46 = vmax.f32 %v1879_v47, %v8423_v45  ;;  %v8425_v55 = vld [vmem:[#allocation57_spill] sm:$0xff]  ;;  %v8430_v24 = vld [vmem:[#allocation418_spill] sm:$0xff] }
 0x42f   :  { %v602_v58 = vmax.f32 %v8417_v49, %v8416_v43  ;;  %v634_v27 = vmax.f32 %v378_v62, %v8418_v21  ;;  %v8420_v29 = vld [vmem:[#allocation243_spill] sm:$0xff]  ;;  %v8428_v49 = vld [vmem:[#allocation280_spill] sm:$0xff]  ;;  %v8431_v53 = vld [vmem:[#allocation421_spill] sm:$0xff] }
 0x430   :  { %v1145_v8 = vmax.f32 %v889_v33, %v8420_v29  ;;  %v8424_v28 = vld [vmem:[#allocation419_spill] sm:$0xff]  ;;  %v1369_v14 = vmax.f32 %v1113_v10, %v8428_v49  ;;  %v8429_v21 = vld [vmem:[#allocation312_spill] sm:$0xff]  ;;  %v1912_v45 = vmax.f32 %v1656_v51, %v8431_v53  ;;  %v8433_v48 = vld [vmem:[#allocation25_spill] sm:$0xff] }
 0x431   :  { %v2167_v35 = vmax.f32 %v1911_v12, %v8424_v28  ;;  %v3546_v6 = vld [vmem:[%s7593_s0 + $0x168] sm:$0xff]  ;;  %v1880_v12 = vmax.f32 %v1624_v22, %v8430_v24  ;;  %2272 = vrot.lane.b32.xlu0 %v2135_v46, %s3574_s19  ;;  %v8432_v28 = vld [vmem:[#allocation86_spill] sm:$0xff]  ;;  %v8439_v22 = vld [vmem:[#allocation373_spill] sm:$0xff]  ;;  %v6565_v46 = vpop.permute.xlu1 %1790 }
 0x432   :  { %v379_v62 = vmax.f32 %v3546_v6, %v8425_v55  ;;  %v8426_v32 = vld [vmem:[#allocation147_spill] sm:$0xff]  ;;  %v1401_v47 = vmax.f32 %v1145_v8, %v8429_v21  ;;  %v8434_v6 = vmax.f32 %v4938_v38, %v8433_v48  ;;  %v8437_v10 = vld [vmem:[#allocation246_spill] sm:$0xff]  ;;  %v8438_v8 = vld [vmem:[#allocation344_spill] sm:$0xff] }
 0x433   :  { %v858_v33 = vmax.f32 %v602_v58, %v8426_v32  ;;  %v8427_v43 = vld [vmem:[#allocation179_spill] sm:$0xff]  ;;  %2336 = vrot.lane.b32.xlu1 %v2167_v35, %s3574_s19  ;;  %v8435_v58 = vld [vmem:[#allocation118_spill] sm:$0xff]  ;;  %v1625_v21 = vmax.f32 %v1369_v14, %v8438_v8  ;;  %v8441_v35 = vld [vmem:[#allocation425_spill] sm:$0xff] }
 0x434   :  { %v890_v3 = vmax.f32 %v634_v27, %v8427_v43  ;;  %v603_v55 = vmax.f32 %v8434_v6, %v8432_v28  ;;  %v635_v32 = vmax.f32 %v379_v62, %v8435_v58  ;;  %v8436_v27 = vld [vmem:[#allocation207_spill] sm:$0xff]  ;;  %v1657_v24 = vmax.f32 %v1401_v47, %v8439_v22  ;;  %v8440_v51 = vld [vmem:[#allocation422_spill] sm:$0xff]  ;;  %v3547_v38 = vld [vmem:[%s7593_s0 + $0x170] sm:$0xff] }
 0x435   :  { %v1114_v43 = vmax.f32 %v858_v33, %v8436_v27  ;;  %v2136_v53 = vmax.f32 %v1880_v12, %v8440_v51  ;;  %v2168_v29 = vmax.f32 %v1912_v45, %v8441_v35  ;;  %v8442_v48 = vld [vmem:[#allocation60_spill] sm:$0xff]  ;;  %v8443_v33 = vld [vmem:[#allocation146_spill] sm:$0xff]  ;;  %v8445_v6 = vld [vmem:[#allocation283_spill] sm:$0xff] }
 0x436   :  { %v1146_v49 = vmax.f32 %v890_v3, %v8437_v10  ;;  %v380_v62 = vmax.f32 %v3547_v38, %v8442_v48  ;;  %v859_v3 = vmax.f32 %v603_v55, %v8443_v33  ;;  %v8444_v28 = vld [vmem:[#allocation178_spill] sm:$0xff]  ;;  %v8446_v58 = vld [vmem:[#allocation315_spill] sm:$0xff]  ;;  %v8447_v8 = vld [vmem:[#allocation420_spill] sm:$0xff]  ;;  %v8450_v38 = vmax.f32 %v4963_v7, %v8227_v50  ;;  %v6594_v10 = vpop.permute.xlu0 %1728 }
 0x437   :  { %v891_v14 = vmax.f32 %v635_v32, %v8444_v28  ;;  %v1370_v47 = vmax.f32 %v1114_v43, %v8445_v6  ;;  %v1881_v45 = vmax.f32 %v1625_v21, %v8447_v8  ;;  %v8448_v22 = vld [vmem:[#allocation423_spill] sm:$0xff]  ;;  %2338 = vrot.lane.b32.xlu1 %v2168_v29, %s3574_s19  ;;  %2274 = vrot.lane.b32.xlu0 %v2136_v53, %s3574_s19  ;;  %v8449_v35 = vld [vmem:[#allocation89_spill] sm:$0xff]  ;;  %v8452_v32 = vld [vmem:[#allocation206_spill] sm:$0xff]  ;;  %v6592_v53 = vpop.permute.xlu1 %1792 }
 0x438   :  { %v1402_v12 = vmax.f32 %v1146_v49, %v8446_v58  ;;  %v1913_v51 = vmax.f32 %v1657_v24, %v8448_v22  ;;  %v604_v48 = vmax.f32 %v8450_v38, %v8449_v35  ;;  %v8451_v55 = vld [vmem:[#allocation121_spill] sm:$0xff]  ;;  %v1115_v28 = vmax.f32 %v859_v3, %v8452_v32  ;;  %v8454_v49 = vld [vmem:[#allocation347_spill] sm:$0xff]  ;;  %v8455_v21 = vld [vmem:[#allocation376_spill] sm:$0xff]  ;;  %8458 = vst [vmem:[#allocation26_spill] sm:$0xff] %v6592_v53 }
 0x439   :  { %v636_v33 = vmax.f32 %v380_v62, %v8451_v55  ;;  %v8453_v43 = vld [vmem:[#allocation245_spill] sm:$0xff]  ;;  %v1626_v58 = vmax.f32 %v1370_v47, %v8454_v49  ;;  %v8456_v24 = vld [vmem:[#allocation424_spill] sm:$0xff]  ;;  %v8457_v29 = vld [vmem:[#allocation426_spill] sm:$0xff]  ;;  %8459 = vst [vmem:[#allocation28_spill] sm:$0xff] %v6594_v10 }
 0x43a   :  { %v1147_v6 = vmax.f32 %v891_v14, %v8453_v43  ;;  %v1658_v8 = vmax.f32 %v1402_v12, %v8455_v21  ;;  %v2137_v22 = vmax.f32 %v1881_v45, %v8456_v24  ;;  %v2169_v27 = vmax.f32 %v1913_v51, %v8457_v29  ;;  %v3548_v7 = vld [vmem:[%s7593_s0 + $0x178] sm:$0xff]  ;;  %v8460_v50 = vld [vmem:[#allocation59_spill] sm:$0xff]  ;;  %v8463_v38 = vld [vmem:[#allocation282_spill] sm:$0xff]  ;;  %v6621_v53 = vpop.permute.xlu0 %1538 }
 0x43b   :  { %v381_v62 = vmax.f32 %v3548_v7, %v8460_v50  ;;  %v8461_v3 = vld [vmem:[#allocation149_spill] sm:$0xff]  ;;  %v1371_v12 = vmax.f32 %v1115_v28, %v8463_v38  ;;  %v8464_v55 = vld [vmem:[#allocation314_spill] sm:$0xff]  ;;  %v8465_v49 = vld [vmem:[#allocation267_spill] sm:$0xff] }
 0x43c   :  { %v860_v14 = vmax.f32 %v604_v48, %v8461_v3  ;;  %v8462_v35 = vld [vmem:[#allocation181_spill] sm:$0xff]  ;;  %v1403_v45 = vmax.f32 %v1147_v6, %v8464_v55  ;;  %v1882_v51 = vmax.f32 %v1626_v58, %v8465_v49  ;;  %v8466_v21 = vld [vmem:[#allocation428_spill] sm:$0xff]  ;;  %2340 = vrot.lane.b32.xlu1 %v2169_v27, %s3574_s19  ;;  %2276 = vrot.lane.b32.xlu0 %v2137_v22, %s3574_s19  ;;  %v8468_v32 = vld [vmem:[#allocation219_spill] sm:$0xff]  ;;  %v6619_v22 = vpop.permute.xlu1 %1982 }
 0x43d   :  { %v892_v47 = vmax.f32 %v636_v33, %v8462_v35  ;;  %v1914_v24 = vmax.f32 %v1658_v8, %v8466_v21  ;;  %v8467_v29 = vld [vmem:[#allocation88_spill] sm:$0xff]  ;;  %v8469_v43 = vld [vmem:[#allocation27_spill] sm:$0xff]  ;;  %v8472_v33 = vld [vmem:[#allocation209_spill] sm:$0xff] }
 0x43e   :  { %v8470_v7 = vmax.f32 %v8468_v32, %v8469_v43  ;;  %v8471_v48 = vld [vmem:[#allocation120_spill] sm:$0xff]  ;;  %v1116_v35 = vmax.f32 %v860_v14, %v8472_v33  ;;  %v8474_v6 = vld [vmem:[#allocation346_spill] sm:$0xff]  ;;  %v8475_v58 = vld [vmem:[#allocation375_spill] sm:$0xff] }
 0x43f   :  { %v637_v3 = vmax.f32 %v381_v62, %v8471_v48  ;;  %v8473_v28 = vld [vmem:[#allocation248_spill] sm:$0xff]  ;;  %v1627_v55 = vmax.f32 %v1371_v12, %v8474_v6  ;;  %v1659_v49 = vmax.f32 %v1403_v45, %v8475_v58  ;;  %v8476_v8 = vld [vmem:[#allocation429_spill] sm:$0xff]  ;;  %v3549_v32 = vld [vmem:[%s7593_s0 + $0x180] sm:$0xff] }
 0x440   :  { %v605_v50 = vmax.f32 %v8470_v7, %v8467_v29  ;;  %v1148_v38 = vmax.f32 %v892_v47, %v8473_v28  ;;  %v2138_v21 = vmax.f32 %v1882_v51, %v8476_v8  ;;  %v8477_v27 = vld [vmem:[#allocation432_spill] sm:$0xff]  ;;  %v8478_v43 = vld [vmem:[#allocation62_spill] sm:$0xff]  ;;  %v8481_v7 = vld [vmem:[#allocation285_spill] sm:$0xff]  ;;  %v6648_v28 = vpop.permute.xlu0 %2046 }
 0x441   :  { %v2170_v10 = vmax.f32 %v1914_v24, %v8477_v27  ;;  %v382_v62 = vmax.f32 %v3549_v32, %v8478_v43  ;;  %v8479_v14 = vld [vmem:[#allocation148_spill] sm:$0xff]  ;;  %v1372_v45 = vmax.f32 %v1116_v35, %v8481_v7  ;;  %v8482_v48 = vld [vmem:[#allocation317_spill] sm:$0xff]  ;;  %v8483_v6 = vld [vmem:[#allocation427_spill] sm:$0xff]  ;;  %v8486_v32 = vmax.f32 %v4981_v36, %v8233_v60 }
 0x442   :  { %v861_v47 = vmax.f32 %v605_v50, %v8479_v14  ;;  %v8480_v29 = vld [vmem:[#allocation180_spill] sm:$0xff]  ;;  %v1404_v51 = vmax.f32 %v1148_v38, %v8482_v48  ;;  %v1883_v24 = vmax.f32 %v1627_v55, %v8483_v6  ;;  %v8484_v58 = vld [vmem:[#allocation430_spill] sm:$0xff]  ;;  %2278 = vrot.lane.b32.xlu0 %v2138_v21, %s3574_s19  ;;  %v8485_v27 = vld [vmem:[#allocation91_spill] sm:$0xff]  ;;  %v6646_v21 = vpop.permute.xlu1 %1540 }
 0x443   :  { %v893_v12 = vmax.f32 %v637_v3, %v8480_v29  ;;  %v1915_v8 = vmax.f32 %v1659_v49, %v8484_v58  ;;  %2342 = vrot.lane.b32.xlu1 %v2170_v10, %s3574_s19  ;;  %v606_v43 = vmax.f32 %v8486_v32, %v8485_v27  ;;  %v8487_v50 = vld [vmem:[#allocation123_spill] sm:$0xff]  ;;  %v8488_v3 = vld [vmem:[#allocation208_spill] sm:$0xff]  ;;  %v8490_v38 = vld [vmem:[#allocation349_spill] sm:$0xff]  ;;  %8494 = vst [vmem:[#allocation30_spill] sm:$0xff] %v6646_v21 }
 0x444   :  { %v638_v14 = vmax.f32 %v382_v62, %v8487_v50  ;;  %v1117_v29 = vmax.f32 %v861_v47, %v8488_v3  ;;  %v8489_v35 = vld [vmem:[#allocation247_spill] sm:$0xff]  ;;  %v1628_v48 = vmax.f32 %v1372_v45, %v8490_v38  ;;  %v8491_v55 = vld [vmem:[#allocation378_spill] sm:$0xff]  ;;  %v8493_v10 = vld [vmem:[#allocation433_spill] sm:$0xff]  ;;  %v6675_v21 = vpop.permute.xlu0 %1984 }
 0x445   :  { %v1149_v7 = vmax.f32 %v893_v12, %v8489_v35  ;;  %v1660_v6 = vmax.f32 %v1404_v51, %v8491_v55  ;;  %v8492_v49 = vld [vmem:[#allocation431_spill] sm:$0xff]  ;;  %v2171_v33 = vmax.f32 %v1915_v8, %v8493_v10  ;;  %v8495_v60 = vld [vmem:[#allocation61_spill] sm:$0xff]  ;;  %v8498_v32 = vld [vmem:[#allocation284_spill] sm:$0xff] }
 0x446   :  { %v2139_v58 = vmax.f32 %v1883_v24, %v8492_v49  ;;  %v3550_v36 = vld [vmem:[%s7593_s0 + $0x188] sm:$0xff]  ;;  %v1373_v51 = vmax.f32 %v1117_v29, %v8498_v32  ;;  %v8499_v50 = vld [vmem:[#allocation316_spill] sm:$0xff]  ;;  %v8501_v55 = vld [vmem:[#allocation434_spill] sm:$0xff] }
 0x447   :  { %v383_v62 = vmax.f32 %v3550_v36, %v8495_v60  ;;  %v8496_v47 = vld [vmem:[#allocation151_spill] sm:$0xff]  ;;  %v1405_v24 = vmax.f32 %v1149_v7, %v8499_v50  ;;  %v1916_v49 = vmax.f32 %v1660_v6, %v8501_v55  ;;  %2344 = vrot.lane.b32.xlu1 %v2171_v33, %s3574_s19  ;;  %v8502_v10 = vld [vmem:[#allocation90_spill] sm:$0xff]  ;;  %v8503_v3 = vld [vmem:[#allocation29_spill] sm:$0xff] }
 0x448   :  { %v862_v12 = vmax.f32 %v606_v43, %v8496_v47  ;;  %v8497_v27 = vld [vmem:[#allocation183_spill] sm:$0xff]  ;;  %2280 = vrot.lane.b32.xlu0 %v2139_v58, %s3574_s19  ;;  %v8504_v36 = vmax.f32 %v4974_v41, %v8503_v3  ;;  %v8505_v43 = vld [vmem:[#allocation122_spill] sm:$0xff]  ;;  %v8508_v7 = vld [vmem:[#allocation348_spill] sm:$0xff]  ;;  %v6673_v58 = vpop.permute.xlu1 %2048 }
 0x449   :  { %v894_v45 = vmax.f32 %v638_v14, %v8497_v27  ;;  %v8500_v38 = vld [vmem:[#allocation271_spill] sm:$0xff]  ;;  %v639_v47 = vmax.f32 %v383_v62, %v8505_v43  ;;  %v8506_v14 = vld [vmem:[#allocation213_spill] sm:$0xff]  ;;  %v8507_v29 = vld [vmem:[#allocation250_spill] sm:$0xff]  ;;  %v1629_v50 = vmax.f32 %v1373_v51, %v8508_v7 }
 0x44a   :  { %v1884_v8 = vmax.f32 %v1628_v48, %v8500_v38  ;;  %v607_v60 = vmax.f32 %v8504_v36, %v8502_v10  ;;  %v1118_v27 = vmax.f32 %v862_v12, %v8506_v14  ;;  %v8509_v48 = vld [vmem:[#allocation377_spill] sm:$0xff]  ;;  %v8510_v6 = vld [vmem:[#allocation435_spill] sm:$0xff]  ;;  %v8511_v33 = vld [vmem:[#allocation438_spill] sm:$0xff] }
 0x44b   :  { %v1150_v32 = vmax.f32 %v894_v45, %v8507_v29  ;;  %v1661_v38 = vmax.f32 %v1405_v24, %v8509_v48  ;;  %v2172_v35 = vmax.f32 %v1916_v49, %v8511_v33  ;;  %v3551_v41 = vld [vmem:[%s7593_s0 + $0x190] sm:$0xff]  ;;  %v8513_v12 = vld [vmem:[#allocation150_spill] sm:$0xff]  ;;  %v8515_v36 = vld [vmem:[#allocation287_spill] sm:$0xff]  ;;  %v6702_v29 = vpop.permute.xlu0 %1730 }
 0x44c   :  { %v2140_v55 = vmax.f32 %v1884_v8, %v8510_v6  ;;  %v8512_v3 = vld [vmem:[#allocation64_spill] sm:$0xff]  ;;  %v863_v45 = vmax.f32 %v607_v60, %v8513_v12  ;;  %v8514_v10 = vld [vmem:[#allocation182_spill] sm:$0xff]  ;;  %v1374_v24 = vmax.f32 %v1118_v27, %v8515_v36  ;;  %v8516_v43 = vld [vmem:[#allocation319_spill] sm:$0xff]  ;;  %8529 = vst [vmem:[#allocation45_spill] sm:$0xff] %v6702_v29 }
 0x44d   :  { %v384_v62 = vmax.f32 %v3551_v41, %v8512_v3  ;;  %v895_v51 = vmax.f32 %v639_v47, %v8514_v10  ;;  %v1406_v8 = vmax.f32 %v1150_v32, %v8516_v43  ;;  %v8517_v7 = vld [vmem:[#allocation270_spill] sm:$0xff]  ;;  %v8518_v48 = vld [vmem:[#allocation436_spill] sm:$0xff]  ;;  %2346 = vrot.lane.b32.xlu1 %v2172_v35, %s3574_s19  ;;  %v8519_v33 = vld [vmem:[#allocation93_spill] sm:$0xff]  ;;  %v8520_v41 = vmax.f32 %v4999_v11, %v8235_v15 }
 0x44e   :  { %v1885_v49 = vmax.f32 %v1629_v50, %v8517_v7  ;;  %v1917_v6 = vmax.f32 %v1661_v38, %v8518_v48  ;;  %2282 = vrot.lane.b32.xlu0 %v2140_v55, %s3574_s19  ;;  %v8521_v60 = vld [vmem:[#allocation125_spill] sm:$0xff]  ;;  %v8522_v47 = vld [vmem:[#allocation212_spill] sm:$0xff]  ;;  %v8524_v32 = vld [vmem:[#allocation351_spill] sm:$0xff]  ;;  %v6700_v55 = vpop.permute.xlu1 %1794 }
 0x44f   :  { %v608_v3 = vmax.f32 %v8520_v41, %v8519_v33  ;;  %v640_v12 = vmax.f32 %v384_v62, %v8521_v60  ;;  %v1119_v10 = vmax.f32 %v863_v45, %v8522_v47  ;;  %v8523_v27 = vld [vmem:[#allocation249_spill] sm:$0xff]  ;;  %v1630_v43 = vmax.f32 %v1374_v24, %v8524_v32  ;;  %v8525_v50 = vld [vmem:[#allocation380_spill] sm:$0xff]  ;;  %8528 = vst [vmem:[#allocation32_spill] sm:$0xff] %v6700_v55  ;;  %v8530_v15 = vld [vmem:[#allocation63_spill] sm:$0xff]  ;;  %v6729_v55 = vpop.permute.xlu0 %1732 }
 0x450   :  { %v1151_v36 = vmax.f32 %v895_v51, %v8523_v27  ;;  %v1662_v7 = vmax.f32 %v1406_v8, %v8525_v50  ;;  %v8526_v38 = vld [vmem:[#allocation437_spill] sm:$0xff]  ;;  %v8527_v35 = vld [vmem:[#allocation440_spill] sm:$0xff]  ;;  %v8533_v41 = vld [vmem:[#allocation286_spill] sm:$0xff] }
 0x451   :  { %v2141_v48 = vmax.f32 %v1885_v49, %v8526_v38  ;;  %v2173_v14 = vmax.f32 %v1917_v6, %v8527_v35  ;;  %v3552_v11 = vld [vmem:[%s7593_s0 + $0x198] sm:$0xff]  ;;  %v1375_v8 = vmax.f32 %v1119_v10, %v8533_v41  ;;  %v8534_v60 = vld [vmem:[#allocation318_spill] sm:$0xff]  ;;  %v8535_v32 = vld [vmem:[#allocation439_spill] sm:$0xff] }
 0x452   :  { %v385_v62 = vmax.f32 %v3552_v11, %v8530_v15  ;;  %v8531_v45 = vld [vmem:[#allocation153_spill] sm:$0xff]  ;;  %v1407_v49 = vmax.f32 %v1151_v36, %v8534_v60  ;;  %v1886_v6 = vmax.f32 %v1630_v43, %v8535_v32  ;;  %v8537_v35 = vld [vmem:[#allocation92_spill] sm:$0xff]  ;;  %v8539_v27 = vld [vmem:[#allocation31_spill] sm:$0xff] }
 0x453   :  { %v864_v51 = vmax.f32 %v608_v3, %v8531_v45  ;;  %v8532_v33 = vld [vmem:[#allocation185_spill] sm:$0xff]  ;;  %2348 = vrot.lane.b32.xlu1 %v2173_v14, %s3574_s19  ;;  %2284 = vrot.lane.b32.xlu0 %v2141_v48, %s3574_s19  ;;  %v8538_v47 = vld [vmem:[#allocation224_spill] sm:$0xff]  ;;  %v8544_v36 = vld [vmem:[#allocation350_spill] sm:$0xff]  ;;  %v6727_v48 = vpop.permute.xlu1 %1796 }
 0x454   :  { %v896_v24 = vmax.f32 %v640_v12, %v8532_v33  ;;  %v8536_v50 = vld [vmem:[#allocation441_spill] sm:$0xff]  ;;  %v8540_v11 = vmax.f32 %v8538_v47, %v8539_v27  ;;  %v8541_v3 = vld [vmem:[#allocation124_spill] sm:$0xff]  ;;  %v1631_v60 = vmax.f32 %v1375_v8, %v8544_v36  ;;  %v8545_v43 = vld [vmem:[#allocation379_spill] sm:$0xff] }
 0x455   :  { %v1918_v38 = vmax.f32 %v1662_v7, %v8536_v50  ;;  %v641_v45 = vmax.f32 %v385_v62, %v8541_v3  ;;  %v8542_v12 = vld [vmem:[#allocation216_spill] sm:$0xff]  ;;  %v1663_v32 = vmax.f32 %v1407_v49, %v8545_v43  ;;  %v8546_v7 = vld [vmem:[#allocation274_spill] sm:$0xff]  ;;  %v8552_v3 = vld [vmem:[#allocation321_spill] sm:$0xff] }
 0x456   :  { %v609_v15 = vmax.f32 %v8540_v11, %v8537_v35  ;;  %v1120_v33 = vmax.f32 %v864_v51, %v8542_v12  ;;  %v8543_v10 = vld [vmem:[#allocation252_spill] sm:$0xff]  ;;  %v2142_v50 = vmax.f32 %v1886_v6, %v8546_v7  ;;  %v8547_v14 = vld [vmem:[#allocation46_spill] sm:$0xff]  ;;  %v8551_v11 = vld [vmem:[#allocation289_spill] sm:$0xff] }
 0x457   :  { %v1152_v41 = vmax.f32 %v896_v24, %v8543_v10  ;;  %v2174_v29 = vmax.f32 %v1918_v38, %v8547_v14  ;;  %v3553_v47 = vld [vmem:[%s7593_s0 + $0x1a0] sm:$0xff]  ;;  %v8549_v51 = vld [vmem:[#allocation152_spill] sm:$0xff]  ;;  %v8553_v36 = vld [vmem:[#allocation275_spill] sm:$0xff]  ;;  %v6756_v10 = vpop.permute.xlu0 %1542 }
 0x458   :  { %v8548_v27 = vld [vmem:[#allocation66_spill] sm:$0xff]  ;;  %v865_v24 = vmax.f32 %v609_v15, %v8549_v51  ;;  %v8550_v35 = vld [vmem:[#allocation184_spill] sm:$0xff]  ;;  %v1376_v49 = vmax.f32 %v1120_v33, %v8551_v11  ;;  %v1887_v38 = vmax.f32 %v1631_v60, %v8553_v36  ;;  %2286 = vrot.lane.b32.xlu0 %v2142_v50, %s3574_s19  ;;  %v8555_v14 = vld [vmem:[#allocation95_spill] sm:$0xff]  ;;  %v6754_v50 = vpop.permute.xlu1 %1986 }
 0x459   :  { %v386_v62 = vmax.f32 %v3553_v47, %v8548_v27  ;;  %v897_v8 = vmax.f32 %v641_v45, %v8550_v35  ;;  %v1408_v6 = vmax.f32 %v1152_v41, %v8552_v3  ;;  %v8554_v43 = vld [vmem:[#allocation442_spill] sm:$0xff]  ;;  %2350 = vrot.lane.b32.xlu1 %v2174_v29, %s3574_s19  ;;  %v8556_v47 = vmax.f32 %v5017_v5, %v8240_v63  ;;  %v8557_v15 = vld [vmem:[#allocation127_spill] sm:$0xff]  ;;  %v8560_v41 = vld [vmem:[#allocation353_spill] sm:$0xff] }
 0x45a   :  { %v1919_v7 = vmax.f32 %v1663_v32, %v8554_v43  ;;  %v8558_v45 = vld [vmem:[#allocation215_spill] sm:$0xff]  ;;  %v1632_v3 = vmax.f32 %v1376_v49, %v8560_v41  ;;  %v8561_v60 = vld [vmem:[#allocation382_spill] sm:$0xff]  ;;  %v8562_v32 = vld [vmem:[#allocation13_spill] sm:$0xff] }
 0x45b   :  { %v610_v27 = vmax.f32 %v8556_v47, %v8555_v14  ;;  %v642_v51 = vmax.f32 %v386_v62, %v8557_v15  ;;  %v1121_v35 = vmax.f32 %v865_v24, %v8558_v45  ;;  %v8559_v33 = vld [vmem:[#allocation251_spill] sm:$0xff]  ;;  %v1664_v36 = vmax.f32 %v1408_v6, %v8561_v60  ;;  %v8564_v63 = vld [vmem:[#allocation65_spill] sm:$0xff]  ;;  %v8567_v47 = vld [vmem:[#allocation288_spill] sm:$0xff] }
 0x45c   :  { %v1153_v11 = vmax.f32 %v897_v8, %v8559_v33  ;;  %v2143_v43 = vmax.f32 %v1887_v38, %v8562_v32  ;;  %v8563_v29 = vld [vmem:[#allocation15_spill] sm:$0xff]  ;;  %v8568_v15 = vld [vmem:[#allocation320_spill] sm:$0xff]  ;;  %v8570_v32 = vld [vmem:[#allocation94_spill] sm:$0xff] }
 0x45d   :  { %v2175_v12 = vmax.f32 %v1919_v7, %v8563_v29  ;;  %v3554_v5 = vld [vmem:[%s7593_s0 + $0x1a8] sm:$0xff]  ;;  %v1377_v6 = vmax.f32 %v1121_v35, %v8567_v47  ;;  %v8569_v41 = vld [vmem:[#allocation12_spill] sm:$0xff]  ;;  %v1920_v60 = vmax.f32 %v1664_v36, %v6219_v54  ;;  %v8572_v45 = vld [vmem:[#allocation33_spill] sm:$0xff]  ;;  %v6781_v36 = vpop.permute.xlu1 %1544 }
 0x45e   :  { %v387_v62 = vmax.f32 %v3554_v5, %v8564_v63  ;;  %v8565_v24 = vld [vmem:[#allocation155_spill] sm:$0xff]  ;;  %v1409_v38 = vmax.f32 %v1153_v11, %v8568_v15  ;;  %v1888_v7 = vmax.f32 %v1632_v3, %v8569_v41  ;;  %2288 = vrot.lane.b32.xlu0 %v2143_v43, %s3574_s19  ;;  %v8576_v35 = vld [vmem:[#allocation254_spill] sm:$0xff]  ;;  %v8577_v11 = vld [vmem:[#allocation352_spill] sm:$0xff]  ;;  %v6783_v43 = vpop.permute.xlu0 %2050 }
 0x45f   :  { %v866_v8 = vmax.f32 %v610_v27, %v8565_v24  ;;  %v8566_v14 = vld [vmem:[#allocation187_spill] sm:$0xff]  ;;  %2352 = vrot.lane.b32.xlu1 %v2175_v12, %s3574_s19  ;;  %v8574_v27 = vld [vmem:[#allocation126_spill] sm:$0xff]  ;;  %v1633_v15 = vmax.f32 %v1377_v6, %v8577_v11  ;;  %v8578_v3 = vld [vmem:[#allocation381_spill] sm:$0xff]  ;;  %v2176_v12 = vmax.f32 %v1920_v60, %v6295_v56  ;;  %v8585_v11 = vmax.f32 %v5035_v34, %v8242_v1 }
 0x460   :  { %v898_v49 = vmax.f32 %v642_v51, %v8566_v14  ;;  %v8571_v29 = vld [vmem:[#allocation227_spill] sm:$0xff]  ;;  %v643_v24 = vmax.f32 %v387_v62, %v8574_v27  ;;  %v8575_v51 = vld [vmem:[#allocation218_spill] sm:$0xff]  ;;  %v1665_v41 = vmax.f32 %v1409_v38, %v8578_v3  ;;  %v2144_v54 = vmax.f32 %v1888_v7, %v6244_v44  ;;  %v8579_v62 = vld [vmem:[#allocation68_spill] sm:$0xff] }
 0x461   :  { %v8573_v5 = vmax.f32 %v8571_v29, %v8572_v45  ;;  %v1122_v14 = vmax.f32 %v866_v8, %v8575_v51  ;;  %v3555_v45 = vld [vmem:[%s7593_s0 + $0x1b0] sm:$0xff]  ;;  %v8581_v29 = vld [vmem:[#allocation186_spill] sm:$0xff]  ;;  %v8583_v27 = vld [vmem:[#allocation323_spill] sm:$0xff]  ;;  %v1889_v56 = vmax.f32 %v1633_v15, %v6217_v39 }
 0x462   :  { %v1154_v47 = vmax.f32 %v898_v49, %v8576_v35  ;;  %v388_v8 = vmax.f32 %v3555_v45, %v8579_v62  ;;  %v899_v6 = vmax.f32 %v643_v24, %v8581_v29  ;;  %v1921_v7 = vmax.f32 %v1665_v41, %v6246_v30  ;;  %2290 = vrot.lane.b32.xlu0 %v2144_v54, %s3574_s19  ;;  %v8584_v60 = vld [vmem:[#allocation97_spill] sm:$0xff]  ;;  %v8590_v39 = vld [vmem:[#allocation384_spill] sm:$0xff]  ;;  %v6808_v54 = vpop.permute.xlu1 %2052  ;;  %v8591_v1 = vld [vmem:[#allocation67_spill] sm:$0xff] }
 0x463   :  { %v611_v63 = vmax.f32 %v8573_v5, %v8570_v32  ;;  %v8580_v32 = vld [vmem:[#allocation154_spill] sm:$0xff]  ;;  %v8582_v5 = vld [vmem:[#allocation291_spill] sm:$0xff]  ;;  %2354 = vrot.lane.b32.xlu1 %v2176_v12, %s3574_s19  ;;  %v612_v3 = vmax.f32 %v8585_v11, %v8584_v60  ;;  %v8587_v24 = vld [vmem:[#allocation217_spill] sm:$0xff]  ;;  %v2145_v30 = vmax.f32 %v1889_v56, %v6293_v19  ;;  %v6810_v12 = vpop.permute.xlu0 %1988  ;;  %v8597_v11 = vmax.f32 %v5028_v4, %v8241_v25 }
 0x464   :  { %v1378_v38 = vmax.f32 %v1122_v14, %v8582_v5  ;;  %v1410_v44 = vmax.f32 %v1154_v47, %v8583_v27  ;;  %v8588_v14 = vld [vmem:[#allocation253_spill] sm:$0xff]  ;;  %v8589_v47 = vld [vmem:[#allocation355_spill] sm:$0xff]  ;;  %v2177_v41 = vmax.f32 %v1921_v7, %v6324_v42  ;;  %v8594_v27 = vld [vmem:[#allocation290_spill] sm:$0xff] }
 0x465   :  { %v867_v49 = vmax.f32 %v611_v63, %v8580_v32  ;;  %v8586_v63 = vld [vmem:[#allocation129_spill] sm:$0xff]  ;;  %v1155_v32 = vmax.f32 %v899_v6, %v8588_v14  ;;  %v8595_v60 = vld [vmem:[#allocation322_spill] sm:$0xff]  ;;  %v8596_v7 = vld [vmem:[#allocation96_spill] sm:$0xff] }
 0x466   :  { %v644_v45 = vmax.f32 %v388_v8, %v8586_v63  ;;  %v1634_v29 = vmax.f32 %v1378_v38, %v8589_v47  ;;  %v1666_v15 = vmax.f32 %v1410_v44, %v8590_v39  ;;  %v3556_v34 = vld [vmem:[%s7593_s0 + $0x1b8] sm:$0xff]  ;;  %2292 = vrot.lane.b32.xlu0 %v2145_v30, %s3574_s19  ;;  %v613_v63 = vmax.f32 %v8597_v11, %v8596_v7  ;;  %v6835_v30 = vpop.permute.xlu1 %1798  ;;  %v3557_v4 = vld [vmem:[%s7593_s0 + $0x1c0] sm:$0xff]  ;;  %v8610_v11 = vld [vmem:[#allocation131_spill] sm:$0xff] }
 0x467   :  { %v1123_v62 = vmax.f32 %v867_v49, %v8587_v24  ;;  %v389_v8 = vmax.f32 %v3556_v34, %v8591_v1  ;;  %v8592_v49 = vld [vmem:[#allocation157_spill] sm:$0xff]  ;;  %v1411_v19 = vmax.f32 %v1155_v32, %v8595_v60  ;;  %2356 = vrot.lane.b32.xlu1 %v2177_v41, %s3574_s19  ;;  %v8601_v32 = vld [vmem:[#allocation354_spill] sm:$0xff]  ;;  %v6837_v41 = vpop.permute.xlu0 %1734 }
 0x468   :  { %v868_v6 = vmax.f32 %v612_v3, %v8592_v49  ;;  %v8593_v5 = vld [vmem:[#allocation189_spill] sm:$0xff]  ;;  %v1890_v42 = vmax.f32 %v1634_v29, %v6322_v61  ;;  %v1922_v56 = vmax.f32 %v1666_v15, %v6351_v26  ;;  %v8598_v3 = vld [vmem:[#allocation128_spill] sm:$0xff]  ;;  %v8602_v61 = vld [vmem:[#allocation383_spill] sm:$0xff] }
 0x469   :  { %v900_v38 = vmax.f32 %v644_v45, %v8593_v5  ;;  %v1379_v44 = vmax.f32 %v1123_v62, %v8594_v27  ;;  %v645_v47 = vmax.f32 %v389_v8, %v8598_v3  ;;  %v8599_v45 = vld [vmem:[#allocation221_spill] sm:$0xff]  ;;  %v8600_v62 = vld [vmem:[#allocation256_spill] sm:$0xff]  ;;  %v1667_v29 = vmax.f32 %v1411_v19, %v8602_v61  ;;  %v8603_v25 = vld [vmem:[#allocation70_spill] sm:$0xff] }
 0x46a   :  { %v1124_v39 = vmax.f32 %v868_v6, %v8599_v45  ;;  %v2146_v26 = vmax.f32 %v1890_v42, %v6376_v18  ;;  %v2178_v15 = vmax.f32 %v1922_v56, %v6405_v57  ;;  %v390_v8 = vmax.f32 %v3557_v4, %v8603_v25  ;;  %v8604_v49 = vld [vmem:[#allocation156_spill] sm:$0xff]  ;;  %v8606_v27 = vld [vmem:[#allocation293_spill] sm:$0xff]  ;;  %v8608_v42 = vld [vmem:[#allocation99_spill] sm:$0xff] }
 0x46b   :  { %v1156_v34 = vmax.f32 %v900_v38, %v8600_v62  ;;  %v1635_v1 = vmax.f32 %v1379_v44, %v8601_v32  ;;  %v869_v6 = vmax.f32 %v613_v63, %v8604_v49  ;;  %v8605_v5 = vld [vmem:[#allocation188_spill] sm:$0xff]  ;;  %v8607_v60 = vld [vmem:[#allocation325_spill] sm:$0xff]  ;;  %v1923_v19 = vmax.f32 %v1667_v29, %v6378_v16  ;;  %v8616_v25 = vld [vmem:[#allocation159_spill] sm:$0xff] }
 0x46c   :  { %v901_v38 = vmax.f32 %v645_v47, %v8605_v5  ;;  %v1380_v44 = vmax.f32 %v1124_v39, %v8606_v27  ;;  %2294 = vrot.lane.b32.xlu0 %v2146_v26, %s3574_s19  ;;  %2358 = vrot.lane.b32.xlu1 %v2178_v15, %s3574_s19  ;;  %v8609_v56 = vmax.f32 %v5053_v13, %v8247_v9  ;;  %v8611_v3 = vld [vmem:[#allocation220_spill] sm:$0xff]  ;;  %v8612_v39 = vld [vmem:[#allocation255_spill] sm:$0xff]  ;;  %v6862_v26 = vpop.permute.xlu1 %1800  ;;  %v6864_v15 = vpop.permute.xlu0 %1736  ;;  %v8615_v13 = vld [vmem:[#allocation69_spill] sm:$0xff] }
 0x46d   :  { %v1412_v18 = vmax.f32 %v1156_v34, %v8607_v60  ;;  %v1891_v57 = vmax.f32 %v1635_v1, %v6349_v23  ;;  %v646_v63 = vmax.f32 %v390_v8, %v8610_v11  ;;  %v1125_v47 = vmax.f32 %v869_v6, %v8611_v3  ;;  %v8613_v34 = vld [vmem:[#allocation357_spill] sm:$0xff]  ;;  %v8614_v23 = vld [vmem:[#allocation386_spill] sm:$0xff]  ;;  %v3558_v9 = vld [vmem:[%s7593_s0 + $0x1c8] sm:$0xff] }
 0x46e   :  { %v614_v7 = vmax.f32 %v8609_v56, %v8608_v42  ;;  %v1157_v32 = vmax.f32 %v901_v38, %v8612_v39  ;;  %v1636_v61 = vmax.f32 %v1380_v44, %v8613_v34  ;;  %v2179_v29 = vmax.f32 %v1923_v19, %v6432_v20  ;;  %v8617_v49 = vld [vmem:[#allocation190_spill] sm:$0xff]  ;;  %v8618_v5 = vld [vmem:[#allocation292_spill] sm:$0xff] }
 0x46f   :  { %v1668_v1 = vmax.f32 %v1412_v18, %v8614_v23  ;;  %v2147_v16 = vmax.f32 %v1891_v57, %v6403_v17  ;;  %v391_v4 = vmax.f32 %v3558_v9, %v8615_v13  ;;  %v902_v6 = vmax.f32 %v646_v63, %v8617_v49  ;;  %v8619_v27 = vld [vmem:[#allocation324_spill] sm:$0xff]  ;;  %v8620_v60 = vld [vmem:[#allocation98_spill] sm:$0xff]  ;;  %v8621_v18 = vld [vmem:[#allocation37_spill] sm:$0xff] }
 0x470   :  { %v870_v8 = vmax.f32 %v614_v7, %v8616_v25  ;;  %v1381_v38 = vmax.f32 %v1125_v47, %v8618_v5  ;;  %v1413_v17 = vmax.f32 %v1157_v32, %v8619_v27  ;;  %v1892_v20 = vmax.f32 %v1636_v61, %v6430_v59  ;;  %2360 = vrot.lane.b32.xlu1 %v2179_v29, %s3574_s19  ;;  %v8623_v42 = vld [vmem:[#allocation130_spill] sm:$0xff]  ;;  %v8624_v7 = vld [vmem:[#allocation223_spill] sm:$0xff]  ;;  %v8626_v32 = vld [vmem:[#allocation356_spill] sm:$0xff]  ;;  %v6891_v29 = vpop.permute.xlu0 %1546 }
 0x471   :  { %v1924_v44 = vmax.f32 %v1668_v1, %v6459_v0  ;;  %2296 = vrot.lane.b32.xlu0 %v2147_v16, %s3574_s19  ;;  %v8622_v57 = vmax.f32 %v5046_v37, %v8621_v18  ;;  %v647_v56 = vmax.f32 %v391_v4, %v8623_v42  ;;  %v8625_v63 = vld [vmem:[#allocation258_spill] sm:$0xff]  ;;  %v8627_v59 = vld [vmem:[#allocation385_spill] sm:$0xff]  ;;  %v8628_v0 = vld [vmem:[#allocation20_spill] sm:$0xff]  ;;  %v6889_v16 = vpop.permute.xlu1 %1990 }
 0x472   :  { %v1126_v11 = vmax.f32 %v870_v8, %v8624_v7  ;;  %v1158_v47 = vmax.f32 %v902_v6, %v8625_v63  ;;  %v1637_v34 = vmax.f32 %v1381_v38, %v8626_v32  ;;  %v1669_v61 = vmax.f32 %v1413_v17, %v8627_v59  ;;  %v3559_v37 = vld [vmem:[%s7593_s0 + $0x1d0] sm:$0xff]  ;;  %v8630_v4 = vld [vmem:[#allocation158_spill] sm:$0xff]  ;;  %v8631_v8 = vld [vmem:[#allocation3_spill] sm:$0xff] }
 0x473   :  { %v615_v19 = vmax.f32 %v8622_v57, %v8620_v60  ;;  %v2148_v23 = vmax.f32 %v1892_v20, %v8628_v0  ;;  %v2180_v1 = vmax.f32 %v1924_v44, %v6513_v2  ;;  %v8629_v9 = vld [vmem:[#allocation72_spill] sm:$0xff]  ;;  %v903_v49 = vmax.f32 %v647_v56, %v8631_v8  ;;  %v8632_v6 = vld [vmem:[#allocation295_spill] sm:$0xff]  ;;  %v8636_v60 = vld [vmem:[#allocation101_spill] sm:$0xff] }
 0x474   :  { %v392_v13 = vmax.f32 %v3559_v37, %v8629_v9  ;;  %v1382_v5 = vmax.f32 %v1126_v11, %v8632_v6  ;;  %v8633_v38 = vld [vmem:[#allocation327_spill] sm:$0xff]  ;;  %v8635_v20 = vld [vmem:[#allocation136_spill] sm:$0xff]  ;;  %v8641_v56 = vld [vmem:[#allocation222_spill] sm:$0xff]  ;;  %v6918_v8 = vpop.permute.xlu0 %2054 }
 0x475   :  { %v871_v25 = vmax.f32 %v615_v19, %v8630_v4  ;;  %v1414_v27 = vmax.f32 %v1158_v47, %v8633_v38  ;;  %v8634_v17 = vld [vmem:[#allocation19_spill] sm:$0xff]  ;;  %v1925_v44 = vmax.f32 %v1669_v61, %v8635_v20  ;;  %2298 = vrot.lane.b32.xlu0 %v2148_v23, %s3574_s19  ;;  %2362 = vrot.lane.b32.xlu1 %v2180_v1, %s3574_s19  ;;  %v8637_v18 = vld [vmem:[#allocation16_spill] sm:$0xff]  ;;  %v8640_v19 = vld [vmem:[#allocation133_spill] sm:$0xff]  ;;  %v6916_v1 = vpop.permute.xlu1 %1548 }
 0x476   :  { %v1893_v2 = vmax.f32 %v1637_v34, %v8634_v17  ;;  %v8638_v57 = vld [vmem:[#allocation40_spill] sm:$0xff]  ;;  %v648_v59 = vmax.f32 %v392_v13, %v8640_v19  ;;  %v8642_v11 = vld [vmem:[#allocation257_spill] sm:$0xff]  ;;  %v8643_v47 = vld [vmem:[#allocation359_spill] sm:$0xff] }
 0x477   :  { %v8639_v42 = vmax.f32 %v8637_v18, %v8638_v57  ;;  %v1127_v0 = vmax.f32 %v871_v25, %v8641_v56  ;;  %v1159_v37 = vmax.f32 %v903_v49, %v8642_v11  ;;  %v1638_v9 = vmax.f32 %v1382_v5, %v8643_v47  ;;  %v8644_v34 = vld [vmem:[#allocation387_spill] sm:$0xff]  ;;  %v3560_v13 = vld [vmem:[%s7593_s0 + $0x1d8] sm:$0xff]  ;;  %v8648_v20 = vld [vmem:[#allocation294_spill] sm:$0xff] }
 0x478   :  { %v1670_v4 = vmax.f32 %v1414_v27, %v8644_v34  ;;  %v2181_v61 = vmax.f32 %v1925_v44, %v6538_v52  ;;  %v2149_v23 = vmax.f32 %v1893_v2, %v6540_v40  ;;  %v8645_v6 = vld [vmem:[#allocation71_spill] sm:$0xff]  ;;  %v8646_v38 = vld [vmem:[#allocation161_spill] sm:$0xff]  ;;  %v8650_v44 = vld [vmem:[#allocation100_spill] sm:$0xff] }
 0x479   :  { %v616_v32 = vmax.f32 %v8639_v42, %v8636_v60  ;;  %v393_v25 = vmax.f32 %v3560_v13, %v8645_v6  ;;  %v8647_v17 = vld [vmem:[#allocation5_spill] sm:$0xff]  ;;  %v1383_v27 = vmax.f32 %v1127_v0, %v8648_v20  ;;  %v8649_v60 = vld [vmem:[#allocation326_spill] sm:$0xff]  ;;  %v1894_v2 = vmax.f32 %v1638_v9, %v6567_v31  ;;  %v8652_v57 = vld [vmem:[#allocation39_spill] sm:$0xff] }
 0x47a   :  { %v904_v5 = vmax.f32 %v648_v59, %v8647_v17  ;;  %v1415_v52 = vmax.f32 %v1159_v37, %v8649_v60  ;;  %v1926_v40 = vmax.f32 %v1670_v4, %v6565_v46  ;;  %2364 = vrot.lane.b32.xlu1 %v2181_v61, %s3574_s19  ;;  %2300 = vrot.lane.b32.xlu0 %v2149_v23, %s3574_s19  ;;  %v8651_v18 = vld [vmem:[#allocation234_spill] sm:$0xff]  ;;  %v8656_v0 = vld [vmem:[#allocation260_spill] sm:$0xff]  ;;  %v8658_v46 = vld [vmem:[#allocation167_spill] sm:$0xff]  ;;  %v6943_v61 = vpop.permute.xlu1 %2056  ;;  %v6945_v23 = vpop.permute.xlu0 %1992 }
 0x47b   :  { %v872_v49 = vmax.f32 %v616_v32, %v8646_v38  ;;  %v8653_v42 = vmax.f32 %v8651_v18, %v8652_v57  ;;  %v8654_v32 = vld [vmem:[#allocation132_spill] sm:$0xff]  ;;  %v8655_v59 = vld [vmem:[#allocation226_spill] sm:$0xff]  ;;  %v2150_v31 = vmax.f32 %v1894_v2, %v6619_v22  ;;  %v8662_v60 = vld [vmem:[#allocation297_spill] sm:$0xff] }
 0x47c   :  { %v649_v47 = vmax.f32 %v393_v25, %v8654_v32  ;;  %v1160_v13 = vmax.f32 %v904_v5, %v8656_v0  ;;  %v8657_v37 = vld [vmem:[#allocation358_spill] sm:$0xff]  ;;  %v1671_v4 = vmax.f32 %v1415_v52, %v8658_v46  ;;  %v2182_v9 = vmax.f32 %v1926_v40, %v6648_v28  ;;  %v3561_v25 = vld [vmem:[%s7593_s0 + $0xf0] sm:$0xff]  ;;  %v8667_v32 = vld [vmem:[#allocation103_spill] sm:$0xff] }
 0x47d   :  { %v617_v19 = vmax.f32 %v8653_v42, %v8650_v44  ;;  %v1128_v34 = vmax.f32 %v872_v49, %v8655_v59  ;;  %v1639_v6 = vmax.f32 %v1383_v27, %v8657_v37  ;;  %v8659_v38 = vld [vmem:[#allocation44_spill] sm:$0xff]  ;;  %v8663_v44 = vld [vmem:[#allocation329_spill] sm:$0xff]  ;;  %v8664_v2 = vld [vmem:[#allocation26_spill] sm:$0xff] }
 0x47e   :  { %v364_v49 = vmax.f32 %v3561_v25, %v8659_v38  ;;  %v8660_v17 = vld [vmem:[#allocation160_spill] sm:$0xff]  ;;  %v1416_v22 = vmax.f32 %v1160_v13, %v8663_v44  ;;  %v1927_v28 = vmax.f32 %v1671_v4, %v8664_v2  ;;  %2302 = vrot.lane.b32.xlu0 %v2150_v31, %s3574_s19  ;;  %2366 = vrot.lane.b32.xlu1 %v2182_v9, %s3574_s19  ;;  %v3562_v57 = vld [vmem:[%s7593_s0 + $0x1e0] sm:$0xff]  ;;  %v8671_v13 = vld [vmem:[#allocation225_spill] sm:$0xff]  ;;  %v6975_v44 = vpop.permute.xlu0 %1738 }
 0x47f   :  { %v873_v5 = vmax.f32 %v617_v19, %v8660_v17  ;;  %v8661_v20 = vld [vmem:[#allocation4_spill] sm:$0xff]  ;;  %v1384_v52 = vmax.f32 %v1128_v34, %v8662_v60  ;;  %v8666_v42 = vld [vmem:[#allocation74_spill] sm:$0xff]  ;;  %v8672_v4 = vld [vmem:[#allocation259_spill] sm:$0xff]  ;;  %v6973_v60 = vpop.permute.xlu1 %1802 }
 0x480   :  { %v905_v27 = vmax.f32 %v649_v47, %v8661_v20  ;;  %v8665_v40 = vld [vmem:[#allocation28_spill] sm:$0xff]  ;;  %v394_v19 = vmax.f32 %v3562_v57, %v8666_v42  ;;  %v8668_v47 = vld [vmem:[#allocation78_spill] sm:$0xff]  ;;  %v1672_v31 = vmax.f32 %v1416_v22, %v6621_v53  ;;  %v2183_v9 = vmax.f32 %v1927_v28, %v6673_v58  ;;  %v3563_v2 = vld [vmem:[%s7593_s0 + $0x1e8] sm:$0xff] }
 0x481   :  { %v1895_v18 = vmax.f32 %v1639_v6, %v8665_v40  ;;  %v8669_v37 = vld [vmem:[#allocation42_spill] sm:$0xff]  ;;  %v1129_v25 = vmax.f32 %v873_v5, %v8671_v13  ;;  %v8673_v6 = vld [vmem:[#allocation361_spill] sm:$0xff]  ;;  %v8675_v57 = vld [vmem:[#allocation135_spill] sm:$0xff] }
 0x482   :  { %v8670_v34 = vmax.f32 %v8668_v47, %v8669_v37  ;;  %v1161_v38 = vmax.f32 %v905_v27, %v8672_v4  ;;  %v1640_v17 = vmax.f32 %v1384_v52, %v8673_v6  ;;  %v8674_v40 = vld [vmem:[#allocation73_spill] sm:$0xff]  ;;  %v650_v27 = vmax.f32 %v394_v19, %v8675_v57  ;;  %v8676_v42 = vld [vmem:[#allocation163_spill] sm:$0xff]  ;;  %v8678_v22 = vld [vmem:[#allocation328_spill] sm:$0xff]  ;;  %2368 = vrot.lane.b32.xlu1 %v2183_v9, %s3574_s19 }
 0x483   :  { %v2151_v20 = vmax.f32 %v1895_v18, %v6675_v21  ;;  %v395_v5 = vmax.f32 %v3563_v2, %v8674_v40  ;;  %v8679_v28 = vld [vmem:[#allocation32_spill] sm:$0xff]  ;;  %v8680_v18 = vld [vmem:[#allocation45_spill] sm:$0xff]  ;;  %v8682_v6 = vld [vmem:[#allocation102_spill] sm:$0xff] }
 0x484   :  { %v618_v46 = vmax.f32 %v8670_v34, %v8667_v32  ;;  %v8677_v32 = vld [vmem:[#allocation296_spill] sm:$0xff]  ;;  %v1417_v58 = vmax.f32 %v1161_v38, %v8678_v22  ;;  %v1928_v21 = vmax.f32 %v1672_v31, %v8679_v28  ;;  %v1896_v47 = vmax.f32 %v1640_v17, %v8680_v18  ;;  %v3564_v37 = vld [vmem:[%s7593_s0 + $0x1f8] sm:$0xff]  ;;  %v8681_v34 = vld [vmem:[#allocation75_spill] sm:$0xff]  ;;  %v7003_v18 = vpop.permute.xlu1 %1804 }
 0x485   :  { %v1385_v53 = vmax.f32 %v1129_v25, %v8677_v32  ;;  %2304 = vrot.lane.b32.xlu0 %v2151_v20, %s3574_s19  ;;  %v397_v19 = vmax.f32 %v3564_v37, %v8681_v34  ;;  %v8684_v2 = vld [vmem:[#allocation41_spill] sm:$0xff]  ;;  %v8686_v38 = vld [vmem:[#allocation191_spill] sm:$0xff]  ;;  %v8688_v17 = vld [vmem:[#allocation360_spill] sm:$0xff]  ;;  %v7005_v37 = vpop.permute.xlu0 %1740 }
 0x486   :  { %v874_v52 = vmax.f32 %v618_v46, %v8676_v42  ;;  %v8683_v46 = vld [vmem:[#allocation18_spill] sm:$0xff]  ;;  %v906_v57 = vmax.f32 %v650_v27, %v8686_v38  ;;  %v8687_v31 = vld [vmem:[#allocation229_spill] sm:$0xff]  ;;  %v2152_v20 = vmax.f32 %v1896_v47, %v6754_v50  ;;  %v2184_v28 = vmax.f32 %v1928_v21, %v6783_v43  ;;  %v3565_v34 = vld [vmem:[%s7593_s0 + $0x1f0] sm:$0xff] }
 0x487   :  { %v8685_v25 = vmax.f32 %v8683_v46, %v8684_v2  ;;  %v1641_v32 = vmax.f32 %v1385_v53, %v8688_v17  ;;  %v8689_v9 = vld [vmem:[#allocation30_spill] sm:$0xff]  ;;  %v8694_v38 = vld [vmem:[#allocation299_spill] sm:$0xff]  ;;  %v8695_v47 = vld [vmem:[#allocation105_spill] sm:$0xff] }
 0x488   :  { %v1130_v42 = vmax.f32 %v874_v52, %v8687_v31  ;;  %v1673_v22 = vmax.f32 %v1417_v58, %v8689_v9  ;;  %v8691_v46 = vld [vmem:[#allocation134_spill] sm:$0xff]  ;;  %2370 = vrot.lane.b32.xlu1 %v2184_v28, %s3574_s19  ;;  %v620_v17 = vmax.f32 %v364_v49, %v8695_v47  ;;  %v8696_v9 = vld [vmem:[#allocation8_spill] sm:$0xff]  ;;  %v8702_v28 = vld [vmem:[#allocation107_spill] sm:$0xff] }
 0x489   :  { %v619_v40 = vmax.f32 %v8685_v25, %v8682_v6  ;;  %v8690_v6 = vld [vmem:[#allocation76_spill] sm:$0xff]  ;;  %v651_v52 = vmax.f32 %v395_v5, %v8691_v46  ;;  %v8692_v2 = vld [vmem:[#allocation162_spill] sm:$0xff]  ;;  %v1897_v21 = vmax.f32 %v1641_v32, %v6729_v55  ;;  %2306 = vrot.lane.b32.xlu0 %v2152_v20, %s3574_s19  ;;  %v8698_v46 = vld [vmem:[#allocation331_spill] sm:$0xff]  ;;  %v2059_v32 = vpop.permute.xlu1 %2058 }
 0x48a   :  { %v396_v27 = vmax.f32 %v3565_v34, %v8690_v6  ;;  %v8693_v25 = vld [vmem:[#allocation262_spill] sm:$0xff]  ;;  %v1386_v50 = vmax.f32 %v1130_v42, %v8694_v38  ;;  %v1929_v43 = vmax.f32 %v1673_v22, %v6727_v48  ;;  %v1995_v22 = vpop.permute.xlu0 %1994  ;;  %v8701_v20 = vld [vmem:[#allocation104_spill] sm:$0xff]  ;;  %v8703_v38 = vld [vmem:[#allocation43_spill] sm:$0xff] }
 0x48b   :  { %v875_v53 = vmax.f32 %v619_v40, %v8692_v2  ;;  %v1162_v58 = vmax.f32 %v906_v57, %v8693_v25  ;;  %v8697_v6 = vld [vmem:[#allocation6_spill] sm:$0xff]  ;;  %v8699_v2 = vld [vmem:[#allocation228_spill] sm:$0xff]  ;;  %v8700_v25 = vld [vmem:[#allocation363_spill] sm:$0xff]  ;;  %v2153_v55 = vmax.f32 %v1897_v21, %v6810_v12  ;;  %v8704_v49 = vmax.f32 %v8702_v28, %v8703_v38 }
 0x48c   :  { %v652_v34 = vmax.f32 %v396_v27, %v8696_v9  ;;  %v907_v5 = vmax.f32 %v651_v52, %v8697_v6  ;;  %v1642_v42 = vmax.f32 %v1386_v50, %v8700_v25  ;;  %v2185_v48 = vmax.f32 %v1929_v43, %v6808_v54  ;;  %v8705_v27 = vld [vmem:[#allocation165_spill] sm:$0xff]  ;;  %v8708_v25 = vld [vmem:[#allocation298_spill] sm:$0xff]  ;;  %v8709_v12 = vld [vmem:[#allocation7_spill] sm:$0xff] }
 0x48d   :  { %v1418_v40 = vmax.f32 %v1162_v58, %v8698_v46  ;;  %v1131_v57 = vmax.f32 %v875_v53, %v8699_v2  ;;  %v621_v47 = vmax.f32 %v8704_v49, %v8701_v20  ;;  %v876_v9 = vmax.f32 %v620_v17, %v8705_v27  ;;  %v8706_v52 = vld [vmem:[#allocation261_spill] sm:$0xff]  ;;  %2308 = vrot.lane.b32.xlu0 %v2153_v55, %s3574_s19  ;;  %v8710_v21 = vld [vmem:[#allocation330_spill] sm:$0xff]  ;;  %v8715_v27 = vld [vmem:[#allocation195_spill] sm:$0xff] }
 0x48e   :  { %v1163_v6 = vmax.f32 %v907_v5, %v8706_v52  ;;  %v8707_v53 = vld [vmem:[#allocation193_spill] sm:$0xff]  ;;  %v1898_v54 = vmax.f32 %v1642_v42, %v6837_v41  ;;  %2372 = vrot.lane.b32.xlu1 %v2185_v48, %s3574_s19  ;;  %v653_v43 = vmax.f32 %v397_v19, %v8709_v12  ;;  %v8711_v5 = vld [vmem:[#allocation231_spill] sm:$0xff]  ;;  %v8713_v28 = vld [vmem:[#allocation362_spill] sm:$0xff]  ;;  %v2319_v42 = vpop.permute.xlu1 %2318  ;;  %v2255_v48 = vpop.permute.xlu0 %2254 }
 0x48f   :  { %v1674_v58 = vmax.f32 %v1418_v40, %v6756_v10  ;;  %v908_v46 = vmax.f32 %v652_v34, %v8707_v53  ;;  %v1387_v50 = vmax.f32 %v1131_v57, %v8708_v25  ;;  %v1132_v10 = vmax.f32 %v876_v9, %v8711_v5  ;;  %v8712_v40 = vld [vmem:[#allocation264_spill] sm:$0xff]  ;;  %v8714_v19 = vld [vmem:[#allocation233_spill] sm:$0xff] }
 0x490   :  { %v1419_v20 = vmax.f32 %v1163_v6, %v8710_v21  ;;  %v2154_v41 = vmax.f32 %v1898_v54, %v6889_v16  ;;  %v2479_v49 = vsel %vm2446_vm0, %v8714_v19, %v2319_v42  ;;  %v8716_v6 = vld [vmem:[#allocation164_spill] sm:$0xff]  ;;  %v8719_v25 = vld [vmem:[#allocation333_spill] sm:$0xff]  ;;  %v8720_v54 = vld [vmem:[#allocation230_spill] sm:$0xff] }
 0x491   :  { %v1930_v17 = vmax.f32 %v1674_v58, %v6835_v30  ;;  %v1164_v34 = vmax.f32 %v908_v46, %v8712_v40  ;;  %v1643_v57 = vmax.f32 %v1387_v50, %v8713_v28  ;;  %v2447_v30 = vsel %vm2446_vm0, %v8715_v27, %v2255_v48  ;;  %v8717_v58 = vld [vmem:[#allocation301_spill] sm:$0xff]  ;;  %3410 = vmatprep.mubr.msk.f32.mxu1 %vm2519_vm1, %v2479_v49  ;;  %v8718_v16 = vld [vmem:[#allocation192_spill] sm:$0xff] }
 0x492   :  { %v1675_v55 = vmax.f32 %v1419_v20, %v6781_v36  ;;  %v877_v9 = vmax.f32 %v621_v47, %v8716_v6  ;;  %v1388_v53 = vmax.f32 %v1132_v10, %v8717_v58  ;;  %2310 = vrot.lane.b32.xlu0 %v2154_v41, %s3574_s19  ;;  %v909_v36 = vmax.f32 %v653_v43, %v8718_v16  ;;  %v8721_v12 = vld [vmem:[#allocation365_spill] sm:$0xff]  ;;  %v2061_v20 = vpop.permute.xlu1 %2060  ;;  %v8722_v10 = vld [vmem:[#allocation263_spill] sm:$0xff]  ;;  %v8724_v42 = vld [vmem:[#allocation332_spill] sm:$0xff] }
 0x493   :  { %v2186_v38 = vmax.f32 %v1930_v17, %v6918_v8  ;;  %v1899_v46 = vmax.f32 %v1643_v57, %v6864_v15  ;;  %v1420_v8 = vmax.f32 %v1164_v34, %v8719_v25  ;;  %3362 = vmatprep.mubr.msk.f32.mxu0 %vm2519_vm1, %v2447_v30  ;;  %v1997_v17 = vpop.permute.xlu0 %1996  ;;  %v8723_v57 = vld [vmem:[#allocation300_spill] sm:$0xff] }
 0x494   :  { %v1931_v50 = vmax.f32 %v1675_v55, %v6862_v26  ;;  %v1133_v47 = vmax.f32 %v877_v9, %v8720_v54  ;;  %v1644_v21 = vmax.f32 %v1388_v53, %v8721_v12  ;;  %v1165_v28 = vmax.f32 %v909_v36, %v8722_v10  ;;  %v8726_v30 = vld [vmem:[#allocation232_spill] sm:$0xff]  ;;  %v8729_v36 = vld [vmem:[#allocation197_spill] sm:$0xff] }
 0x495   :  { %2374 = vrot.lane.b32.xlu1 %v2186_v38, %s3574_s19  ;;  %v2155_v15 = vmax.f32 %v1899_v46, %v6945_v23  ;;  %v1676_v43 = vmax.f32 %v1420_v8, %v6891_v29  ;;  %v8725_v23 = vld [vmem:[#allocation364_spill] sm:$0xff]  ;;  %v8730_v8 = vld [vmem:[#allocation235_spill] sm:$0xff] }
 0x496   :  { %v2187_v34 = vmax.f32 %v1931_v50, %v6943_v61  ;;  %v1389_v26 = vmax.f32 %v1133_v47, %v8723_v57  ;;  %v1900_v41 = vmax.f32 %v1644_v21, %v6975_v44  ;;  %v1421_v48 = vmax.f32 %v1165_v28, %v8724_v42  ;;  %v2321_v49 = vpop.permute.xlu1 %2320  ;;  %v8727_v44 = vld [vmem:[#allocation194_spill] sm:$0xff]  ;;  %v8728_v46 = vld [vmem:[#allocation236_spill] sm:$0xff]  ;;  %v8733_v28 = vld [vmem:[#allocation199_spill] sm:$0xff] }
 0x497   :  { %2312 = vrot.lane.b32.xlu0 %v2155_v15, %s3574_s19  ;;  %v1932_v55 = vmax.f32 %v1676_v43, %v6973_v60  ;;  %v2257_v27 = vpop.permute.xlu0 %2256  ;;  %v2480_v6 = vsel %vm2446_vm0, %v8726_v30, %v2321_v49  ;;  %v8731_v47 = vld [vmem:[#allocation196_spill] sm:$0xff]  ;;  %v8735_v42 = vld [vmem:[#allocation198_spill] sm:$0xff]  ;;  %v8737_v49 = vld [vmem:[#allocation201_spill] sm:$0xff] }
 0x498   :  { %v1645_v38 = vmax.f32 %v1389_v26, %v8725_v23  ;;  %v2156_v19 = vmax.f32 %v1900_v41, %v1995_v22  ;;  %v1677_v29 = vmax.f32 %v1421_v48, %v6916_v1  ;;  %v2448_v9 = vsel %vm2446_vm0, %v8727_v44, %v2257_v27  ;;  %3411 = vmatmul.mubr.msk.f32.vlgmr.msra.gmra.mrb[0].mxu1 %vm2519_vm1, %v2480_v6  ;;  %v8734_v26 = vld [vmem:[#allocation237_spill] sm:$0xff]  ;;  %v8738_v30 = vld [vmem:[#allocation239_spill] sm:$0xff]  ;;  %v8739_v44 = vld [vmem:[#allocation200_spill] sm:$0xff] }
 0x499   :  { %2376 = vrot.lane.b32.xlu1 %v2187_v34, %s3574_s19  ;;  %v2188_v61 = vmax.f32 %v1932_v55, %v2059_v32  ;;  %3363 = vmatmul.mubr.msk.f32.vlgmr.msra.gmra.mrb[0].mxu0 %vm2519_vm1, %v2448_v9 }
 0x49a   :  { %v1901_v58 = vmax.f32 %v1645_v38, %v7005_v37  ;;  %v1933_v60 = vmax.f32 %v1677_v29, %v7003_v18  ;;  %v2323_v32 = vpop.permute.xlu1 %2322  ;;  %v8736_v38 = vld [vmem:[#allocation240_spill] sm:$0xff] }
 0x49b   :  { %2314 = vrot.lane.b32.xlu0 %v2156_v19, %s3574_s19  ;;  %v2259_v22 = vpop.permute.xlu0 %2258  ;;  %v2481_v16 = vsel %vm2446_vm0, %v8728_v46, %v2323_v32 }
 0x49c   :  { %v2157_v1 = vmax.f32 %v1901_v58, %v1997_v17  ;;  %v2189_v53 = vmax.f32 %v1933_v60, %v2061_v20  ;;  %v2449_v37 = vsel %vm2446_vm0, %v8729_v36, %v2259_v22  ;;  %3413 = vmatprep.mubr.msk.f32.mxu1 %vm2519_vm1, %v2481_v16  ;;  %v8732_v20 = vld [vmem:[#allocation238_spill] sm:$0xff]  ;;  %v8741_v22 = vld [vmem:[#allocation203_spill] sm:$0xff]  ;;  %v8742_v36 = vld [vmem:[#allocation241_spill] sm:$0xff] }
 0x49d   :  { %2378 = vrot.lane.b32.xlu1 %v2188_v61, %s3574_s19  ;;  %3365 = vmatprep.mubr.msk.f32.mxu0 %vm2519_vm1, %v2449_v37 }
 0x49e   :  { %v2325_v18 = vpop.permute.xlu1 %2324 }
 0x49f   :  { %2316 = vrot.lane.b32.xlu0 %v2157_v1, %s3574_s19  ;;  %v2261_v25 = vpop.permute.xlu0 %2260  ;;  %v2482_v50 = vsel %vm2446_vm0, %v8730_v8, %v2325_v18  ;;  %v8740_v1 = vld [vmem:[#allocation242_spill] sm:$0xff] }
 0x4a0   :  { %v2450_v12 = vsel %vm2446_vm0, %v8731_v47, %v2261_v25  ;;  %3414 = vmatmul.mubr.msk.f32.gmra.mrb[2].mxu1 %vm2519_vm1, %v2482_v50  ;;  %v8743_v18 = vld [vmem:[#allocation202_spill] sm:$0xff]  ;;  %v8744_v47 = vld [vmem:[#allocation244_spill] sm:$0xff] }
 0x4a1   :  { %2380 = vrot.lane.b32.xlu1 %v2189_v53, %s3574_s19  ;;  %3366 = vmatmul.mubr.msk.f32.gmra.mrb[2].mxu0 %vm2519_vm1, %v2450_v12 }
 0x4a2   :  { %v2327_v21 = vpop.permute.xlu1 %2326 }
 0x4a3   :  { %v2263_v15 = vpop.permute.xlu0 %2262  ;;  %v2483_v17 = vsel %vm2446_vm0, %v8732_v20, %v2327_v21  ;;  %v8745_v21 = vld [vmem:[#allocation205_spill] sm:$0xff] }
 0x4a4   :  { %v2451_v43 = vsel %vm2446_vm0, %v8733_v28, %v2263_v15  ;;  %3416 = vmatprep.mubr.msk.f32.mxu1 %vm2519_vm1, %v2483_v17  ;;  %v8746_v28 = vld [vmem:[#allocation243_spill] sm:$0xff] }
 0x4a5   :  { %3368 = vmatprep.mubr.msk.f32.mxu0 %vm2519_vm1, %v2451_v43 }
 0x4a6   :  { %v2329_v34 = vpop.permute.xlu1 %2328 }
 0x4a7   :  { %v2265_v57 = vpop.permute.xlu0 %2264  ;;  %v2484_v41 = vsel %vm2446_vm0, %v8734_v26, %v2329_v34  ;;  %v8747_v34 = vld [vmem:[#allocation204_spill] sm:$0xff] }
 0x4a8   :  { %v2452_v48 = vsel %vm2446_vm0, %v8735_v42, %v2265_v57  ;;  %3417 = vmatmul.mubr.msk.f32.gmra.mrb[4].mxu1 %vm2519_vm1, %v2484_v41  ;;  %v8748_v42 = vld [vmem:[#allocation246_spill] sm:$0xff] }
 0x4a9   :  { %3369 = vmatmul.mubr.msk.f32.gmra.mrb[4].mxu0 %vm2519_vm1, %v2452_v48 }
 0x4aa   :  { %v2331_v55 = vpop.permute.xlu1 %2330 }
 0x4ab   :  { %v2267_v23 = vpop.permute.xlu0 %2266  ;;  %v2485_v19 = vsel %vm2446_vm0, %v8736_v38, %v2331_v55  ;;  %v8749_v55 = vld [vmem:[#allocation207_spill] sm:$0xff] }
 0x4ac   :  { %v2453_v27 = vsel %vm2446_vm0, %v8737_v49, %v2267_v23  ;;  %3419 = vmatprep.mubr.msk.f32.mxu1 %vm2519_vm1, %v2485_v19  ;;  %v8750_v49 = vld [vmem:[#allocation245_spill] sm:$0xff] }
 0x4ad   :  { %3371 = vmatprep.mubr.msk.f32.mxu0 %vm2519_vm1, %v2453_v27 }
 0x4ae   :  { %v2333_v29 = vpop.permute.xlu1 %2332 }
 0x4af   :  { %v2269_v61 = vpop.permute.xlu0 %2268  ;;  %v2486_v6 = vsel %vm2446_vm0, %v8738_v30, %v2333_v29  ;;  %v8751_v29 = vld [vmem:[#allocation206_spill] sm:$0xff] }
 0x4b0   :  { %v2454_v9 = vsel %vm2446_vm0, %v8739_v44, %v2269_v61  ;;  %3420 = vmatmul.mubr.msk.f32.gmra.mrb[6].mxu1 %vm2519_vm1, %v2486_v6  ;;  %v8752_v44 = vld [vmem:[#allocation248_spill] sm:$0xff] }
 0x4b1   :  { %3372 = vmatmul.mubr.msk.f32.gmra.mrb[6].mxu0 %vm2519_vm1, %v2454_v9 }
 0x4b2   :  { %v2335_v58 = vpop.permute.xlu1 %2334 }
 0x4b3   :  { %v2271_v60 = vpop.permute.xlu0 %2270  ;;  %v2487_v32 = vsel %vm2446_vm0, %v8740_v1, %v2335_v58  ;;  %v8753_v58 = vld [vmem:[#allocation209_spill] sm:$0xff] }
 0x4b4   :  { %v2455_v53 = vsel %vm2446_vm0, %v8741_v22, %v2271_v60  ;;  %3422 = vmatprep.mubr.msk.f32.mxu1 %vm2519_vm1, %v2487_v32  ;;  %v8754_v22 = vld [vmem:[#allocation247_spill] sm:$0xff] }
 0x4b5   :  { %3374 = vmatprep.mubr.msk.f32.mxu0 %vm2519_vm1, %v2455_v53 }
 0x4b6   :  { %v2337_v46 = vpop.permute.xlu1 %2336 }
 0x4b7   :  { %v2273_v16 = vpop.permute.xlu0 %2272  ;;  %v2488_v37 = vsel %vm2446_vm0, %v8742_v36, %v2337_v46  ;;  %v8755_v46 = vld [vmem:[#allocation208_spill] sm:$0xff] }
 0x4b8   :  { %v2456_v25 = vsel %vm2446_vm0, %v8743_v18, %v2273_v16  ;;  %3423 = vmatmul.mubr.msk.f32.gmra.mrb[8].mxu1 %vm2519_vm1, %v2488_v37  ;;  %v8756_v18 = vld [vmem:[#allocation250_spill] sm:$0xff] }
 0x4b9   :  { %3375 = vmatmul.mubr.msk.f32.gmra.mrb[8].mxu0 %vm2519_vm1, %v2456_v25 }
 0x4ba   :  { %v2339_v8 = vpop.permute.xlu1 %2338 }
 0x4bb   :  { %v2275_v50 = vpop.permute.xlu0 %2274  ;;  %v2489_v12 = vsel %vm2446_vm0, %v8744_v47, %v2339_v8  ;;  %v8757_v8 = vld [vmem:[#allocation213_spill] sm:$0xff] }
 0x4bc   :  { %v2457_v15 = vsel %vm2446_vm0, %v8745_v21, %v2275_v50  ;;  %3425 = vmatprep.mubr.msk.f32.mxu1 %vm2519_vm1, %v2489_v12  ;;  %v8758_v21 = vld [vmem:[#allocation249_spill] sm:$0xff] }
 0x4bd   :  { %3377 = vmatprep.mubr.msk.f32.mxu0 %vm2519_vm1, %v2457_v15 }
 0x4be   :  { %v2341_v20 = vpop.permute.xlu1 %2340 }
 0x4bf   :  { %v2277_v17 = vpop.permute.xlu0 %2276  ;;  %v2490_v43 = vsel %vm2446_vm0, %v8746_v28, %v2341_v20  ;;  %v8759_v20 = vld [vmem:[#allocation212_spill] sm:$0xff] }
 0x4c0   :  { %v2458_v57 = vsel %vm2446_vm0, %v8747_v34, %v2277_v17  ;;  %3426 = vmatmul.mubr.msk.f32.gmra.mrb[10].mxu1 %vm2519_vm1, %v2490_v43  ;;  %v8760_v34 = vld [vmem:[#allocation252_spill] sm:$0xff] }
 0x4c1   :  { %3378 = vmatmul.mubr.msk.f32.gmra.mrb[10].mxu0 %vm2519_vm1, %v2458_v57 }
 0x4c2   :  { %v2343_v26 = vpop.permute.xlu1 %2342 }
 0x4c3   :  { %v2279_v41 = vpop.permute.xlu0 %2278  ;;  %v2491_v48 = vsel %vm2446_vm0, %v8748_v42, %v2343_v26  ;;  %v8761_v26 = vld [vmem:[#allocation216_spill] sm:$0xff] }
 0x4c4   :  { %v2459_v23 = vsel %vm2446_vm0, %v8749_v55, %v2279_v41  ;;  %3428 = vmatprep.mubr.msk.f32.mxu1 %vm2519_vm1, %v2491_v48 }
 0x4c5   :  { %3380 = vmatprep.mubr.msk.f32.mxu0 %vm2519_vm1, %v2459_v23  ;;  %v8762_v23 = vld [vmem:[#allocation215_spill] sm:$0xff] }
 0x4c6   :  { %v2345_v38 = vpop.permute.xlu1 %2344 }
 0x4c7   :  { %v2281_v19 = vpop.permute.xlu0 %2280  ;;  %v2492_v27 = vsel %vm2446_vm0, %v8750_v49, %v2345_v38 }
 0x4c8   :  { %v2460_v61 = vsel %vm2446_vm0, %v8751_v29, %v2281_v19  ;;  %3429 = vmatmul.mubr.msk.f32.gmra.mrb[12].mxu1 %vm2519_vm1, %v2492_v27 }
 0x4c9   :  { %3381 = vmatmul.mubr.msk.f32.gmra.mrb[12].mxu0 %vm2519_vm1, %v2460_v61 }
 0x4ca   :  { %v2347_v30 = vpop.permute.xlu1 %2346 }
 0x4cb   :  { %v2283_v6 = vpop.permute.xlu0 %2282  ;;  %v2493_v9 = vsel %vm2446_vm0, %v8752_v44, %v2347_v30 }
 0x4cc   :  { %v2461_v60 = vsel %vm2446_vm0, %v8753_v58, %v2283_v6  ;;  %3431 = vmatprep.mubr.msk.f32.mxu1 %vm2519_vm1, %v2493_v9 }
 0x4cd   :  { %3383 = vmatprep.mubr.msk.f32.mxu0 %vm2519_vm1, %v2461_v60 }
 0x4ce   :  { %v2349_v1 = vpop.permute.xlu1 %2348 }
 0x4cf   :  { %v2285_v32 = vpop.permute.xlu0 %2284  ;;  %v2494_v53 = vsel %vm2446_vm0, %v8754_v22, %v2349_v1 }
 0x4d0   :  { %v2462_v16 = vsel %vm2446_vm0, %v8755_v46, %v2285_v32  ;;  %3432 = vmatmul.mubr.msk.f32.gmra.mrb[14].mxu1 %vm2519_vm1, %v2494_v53 }
 0x4d1   :  { %3384 = vmatmul.mubr.msk.f32.gmra.mrb[14].mxu0 %vm2519_vm1, %v2462_v16 }
 0x4d2   :  { %v2351_v36 = vpop.permute.xlu1 %2350 }
 0x4d3   :  { %v2287_v37 = vpop.permute.xlu0 %2286  ;;  %v2495_v25 = vsel %vm2446_vm0, %v8756_v18, %v2351_v36 }
 0x4d4   :  { %v2463_v50 = vsel %vm2446_vm0, %v8757_v8, %v2287_v37  ;;  %3434 = vmatprep.mubr.msk.f32.mxu1 %vm2519_vm1, %v2495_v25  ;;  %v8763_v25 = vld [vmem:[#allocation262_spill] sm:$0xff] }
 0x4d5   :  { %3386 = vmatprep.mubr.msk.f32.mxu0 %vm2519_vm1, %v2463_v50 }
 0x4d6   :  { %v2353_v47 = vpop.permute.xlu1 %2352 }
 0x4d7   :  { %v2289_v12 = vpop.permute.xlu0 %2288  ;;  %v2496_v15 = vsel %vm2446_vm0, %v8758_v21, %v2353_v47 }
 0x4d8   :  { %v2464_v17 = vsel %vm2446_vm0, %v8759_v20, %v2289_v12  ;;  %3435 = vmatmul.mubr.msk.f32.gmra.mrb[16].mxu1 %vm2519_vm1, %v2496_v15 }
 0x4d9   :  { %3387 = vmatmul.mubr.msk.f32.gmra.mrb[16].mxu0 %vm2519_vm1, %v2464_v17 }
 0x4da   :  { %v2355_v28 = vpop.permute.xlu1 %2354 }
 0x4db   :  { %v2291_v43 = vpop.permute.xlu0 %2290  ;;  %v2497_v57 = vsel %vm2446_vm0, %v8760_v34, %v2355_v28 }
 0x4dc   :  { %v2465_v41 = vsel %vm2446_vm0, %v8761_v26, %v2291_v43  ;;  %3437 = vmatprep.mubr.msk.f32.mxu1 %vm2519_vm1, %v2497_v57 }
 0x4dd   :  { %3389 = vmatprep.mubr.msk.f32.mxu0 %vm2519_vm1, %v2465_v41 }
 0x4de   :  { %v2357_v42 = vpop.permute.xlu1 %2356 }
 0x4df   :  { %v2293_v48 = vpop.permute.xlu0 %2292  ;;  %v2498_v55 = vsel %vm2446_vm0, %v8559_v33, %v2357_v42 }
 0x4e0   :  { %v2466_v38 = vsel %vm2446_vm0, %v8762_v23, %v2293_v48  ;;  %3438 = vmatmul.mubr.msk.f32.gmra.mrb[18].mxu1 %vm2519_vm1, %v2498_v55 }
 0x4e1   :  { %3390 = vmatmul.mubr.msk.f32.gmra.mrb[18].mxu0 %vm2519_vm1, %v2466_v38 }
 0x4e2   :  { %v2359_v19 = vpop.permute.xlu1 %2358 }
 0x4e3   :  { %v2295_v49 = vpop.permute.xlu0 %2294  ;;  %v2499_v27 = vsel %vm2446_vm0, %v8576_v35, %v2359_v19 }
 0x4e4   :  { %v2467_v29 = vsel %vm2446_vm0, %v8575_v51, %v2295_v49  ;;  %3440 = vmatprep.mubr.msk.f32.mxu1 %vm2519_vm1, %v2499_v27 }
 0x4e5   :  { %3392 = vmatprep.mubr.msk.f32.mxu0 %vm2519_vm1, %v2467_v29 }
 0x4e6   :  { %v2361_v33 = vpop.permute.xlu1 %2360 }
 0x4e7   :  { %v2297_v61 = vpop.permute.xlu0 %2296  ;;  %v2500_v30 = vsel %vm2446_vm0, %v8588_v14, %v2361_v33 }
 0x4e8   :  { %v2468_v6 = vsel %vm2446_vm0, %v8587_v24, %v2297_v61  ;;  %3441 = vmatmul.mubr.msk.f32.gmra.mrb[20].mxu1 %vm2519_vm1, %v2500_v30 }
 0x4e9   :  { %3393 = vmatmul.mubr.msk.f32.gmra.mrb[20].mxu0 %vm2519_vm1, %v2468_v6 }
 0x4ea   :  { %v2363_v35 = vpop.permute.xlu1 %2362 }
 0x4eb   :  { %v2299_v44 = vpop.permute.xlu0 %2298  ;;  %v2501_v51 = vsel %vm2446_vm0, %v8600_v62, %v2363_v35 }
 0x4ec   :  { %v2469_v9 = vsel %vm2446_vm0, %v8599_v45, %v2299_v44  ;;  %3443 = vmatprep.mubr.msk.f32.mxu1 %vm2519_vm1, %v2501_v51 }
 0x4ed   :  { %3395 = vmatprep.mubr.msk.f32.mxu0 %vm2519_vm1, %v2469_v9 }
 0x4ee   :  { %v2365_v14 = vpop.permute.xlu1 %2364 }
 0x4ef   :  { %v2301_v58 = vpop.permute.xlu0 %2300  ;;  %v2502_v24 = vsel %vm2446_vm0, %v8612_v39, %v2365_v14 }
 0x4f0   :  { %v2470_v60 = vsel %vm2446_vm0, %v8611_v3, %v2301_v58  ;;  %3444 = vmatmul.mubr.msk.f32.gmra.mrb[22].mxu1 %vm2519_vm1, %v2502_v24 }
 0x4f1   :  { %3396 = vmatmul.mubr.msk.f32.gmra.mrb[22].mxu0 %vm2519_vm1, %v2470_v60 }
 0x4f2   :  { %v2367_v62 = vpop.permute.xlu1 %2366 }
 0x4f3   :  { %v2303_v1 = vpop.permute.xlu0 %2302  ;;  %v2503_v45 = vsel %vm2446_vm0, %v8625_v63, %v2367_v62 }
 0x4f4   :  { %v2471_v32 = vsel %vm2446_vm0, %v8624_v7, %v2303_v1  ;;  %3446 = vmatprep.mubr.msk.f32.mxu1 %vm2519_vm1, %v2503_v45 }
 0x4f5   :  { %3398 = vmatprep.mubr.msk.f32.mxu0 %vm2519_vm1, %v2471_v32 }
 0x4f6   :  { %v2369_v39 = vpop.permute.xlu1 %2368 }
 0x4f7   :  { %v2305_v22 = vpop.permute.xlu0 %2304  ;;  %v2504_v3 = vsel %vm2446_vm0, %v8642_v11, %v2369_v39 }
 0x4f8   :  { %v2472_v53 = vsel %vm2446_vm0, %v8641_v56, %v2305_v22  ;;  %3447 = vmatmul.mubr.msk.f32.gmra.mrb[24].mxu1 %vm2519_vm1, %v2504_v3 }
 0x4f9   :  { %3399 = vmatmul.mubr.msk.f32.gmra.mrb[24].mxu0 %vm2519_vm1, %v2472_v53 }
 0x4fa   :  { %v2371_v63 = vpop.permute.xlu1 %2370 }
 0x4fb   :  { %v2307_v46 = vpop.permute.xlu0 %2306  ;;  %v2505_v7 = vsel %vm2446_vm0, %v8656_v0, %v2371_v63 }
 0x4fc   :  { %v2473_v16 = vsel %vm2446_vm0, %v8655_v59, %v2307_v46  ;;  %3449 = vmatprep.mubr.msk.f32.mxu1 %vm2519_vm1, %v2505_v7 }
 0x4fd   :  { %3401 = vmatprep.mubr.msk.f32.mxu0 %vm2519_vm1, %v2473_v16 }
 0x4ff   :  { %v2309_v36 = vpop.permute.xlu0 %2308 }
 0x500   :  { %v2373_v11 = vpop.permute.xlu1 %2372  ;;  %v2474_v37 = vsel %vm2446_vm0, %v8671_v13, %v2309_v36 }
 0x501   :  { %v2506_v56 = vsel %vm2446_vm0, %v8672_v4, %v2373_v11  ;;  %3402 = vmatmul.mubr.msk.f32.gmra.mrb[26].mxu0 %vm2519_vm1, %v2474_v37 }
 0x502   :  { %3450 = vmatmul.mubr.msk.f32.gmra.mrb[26].mxu1 %vm2519_vm1, %v2506_v56 }
 0x504   :  { %v2311_v0 = vpop.permute.xlu0 %2310 }
 0x505   :  { %v2475_v59 = vsel %vm2446_vm0, %v8687_v31, %v2311_v0 }
 0x506   :  { %3404 = vmatprep.mubr.msk.f32.mxu0 %vm2519_vm1, %v2475_v59 }
 0x507   :  { %v2375_v18 = vpop.permute.xlu1 %2374 }
 0x508   :  { %v2507_v8 = vsel %vm2446_vm0, %v8763_v25, %v2375_v18 }
 0x509   :  { %3452 = vmatprep.mubr.msk.f32.mxu1 %vm2519_vm1, %v2507_v8  ;;  %v2313_v4 = vpop.permute.xlu0 %2312 }
 0x50a   :  { %v2476_v13 = vsel %vm2446_vm0, %v8699_v2, %v2313_v4 }
 0x50b   :  { %v2377_v50 = vpop.permute.xlu1 %2376  ;;  %3405 = vmatmul.mubr.msk.f32.gmra.mrb[28].mxu0 %vm2519_vm1, %v2476_v13 }
 0x50c   :  { %v2508_v47 = vsel %vm2446_vm0, %v8706_v52, %v2377_v50 }
 0x50d   :  { %3453 = vmatmul.mubr.msk.f32.gmra.mrb[28].mxu1 %vm2519_vm1, %v2508_v47  ;;  %v2315_v31 = vpop.permute.xlu0 %2314 }
 0x50e   :  { %v2477_v21 = vsel %vm2446_vm0, %v8711_v5, %v2315_v31  ;;  %v7271_v5 = vld [vmem:[%s7595_s2] ss:$0 sm:$0xff] }
 0x50f   :  { %v2379_v12 = vpop.permute.xlu1 %2378  ;;  %3407 = vmatprep.mubr.msk.f32.mxu0 %vm2519_vm1, %v2477_v21 }
 0x510   :  { %v2509_v15 = vsel %vm2446_vm0, %v8712_v40, %v2379_v12 }
 0x511   :  { %3455 = vmatprep.mubr.msk.f32.mxu1 %vm2519_vm1, %v2509_v15  ;;  %v2317_v2 = vpop.permute.xlu0 %2316 }
 0x512   :  { %v2478_v52 = vsel %vm2446_vm0, %v8720_v54, %v2317_v2 }
 0x513   :  { %v2381_v20 = vpop.permute.xlu1 %2380  ;;  %3408 = vmatmul.mubr.msk.f32.gmra.mrb[30].mxu0 %vm2519_vm1, %v2478_v52 }
 0x514   :  { %v2510_v17 = vsel %vm2446_vm0, %v8722_v10, %v2381_v20 }
 0x515   :  { %3456 = vmatmul.mubr.msk.f32.gmra.mrb[30].mxu1 %vm2519_vm1, %v2510_v17 }
 0x56b   :  { %v3412_v40 = vpop.f32.mrb[0].mxu1 }
 0x56c   :  { %v3364_v28 = vpop.f32.mrb[0].mxu0  ;;  %v2944_v43 = vadd.f32 %v3412_v40, %v7271_v5  ;;  %v2938_v34 = vpop.f32.mrb[1].mxu1 }
 0x56d   :  { %v2784_v57 = vadd.f32 %v3364_v28, %v7271_v5  ;;  %v2778_v54 = vpop.f32.mrb[1].mxu0  ;;  %v2939_v10 = vadd.f32 %v7271_v5, %v2938_v34 }
 0x56e   :  { %v3130_v26 = vmax.f32 %v2944_v43, 0.0  ;;  %v2779_v41 = vadd.f32 %v7271_v5, %v2778_v54 }
 0x56f   :  { %v3098_v42 = vmax.f32 %v2784_v57, 0.0  ;;  %v3129_v48 = vmax.f32 %v2939_v10, 0.0 }
 0x570   :  { %3195 = vst.msk [vmem:[%s7596_s3 + $0x108] sm:$0xff] %vm3161_vm2, %v3130_v26  ;;  %v3097_v55 = vmax.f32 %v2779_v41, 0.0 }
 0x571   :  { %3163 = vst.msk [vmem:[%s7596_s3 + $0x8] sm:$0xff] %vm3161_vm2, %v3098_v42  ;;  %3194 = vst.msk [vmem:[%s7596_s3 + $0x100] sm:$0xff] %vm3161_vm2, %v3129_v48 }
 0x572   :  { %3162 = vst.msk [vmem:[%s7596_s3] sm:$0xff] %vm3161_vm2, %v3097_v55 }
 0x573   :  { %v3415_v38 = vpop.f32.mrb[2].mxu1 }
 0x574   :  { %v3367_v23 = vpop.f32.mrb[2].mxu0  ;;  %v2954_v49 = vadd.f32 %v3415_v38, %v7271_v5  ;;  %v2948_v29 = vpop.f32.mrb[3].mxu1 }
 0x575   :  { %v2794_v19 = vadd.f32 %v3367_v23, %v7271_v5  ;;  %v2788_v27 = vpop.f32.mrb[3].mxu0  ;;  %v2949_v61 = vadd.f32 %v7271_v5, %v2948_v29 }
 0x576   :  { %v2789_v33 = vadd.f32 %v7271_v5, %v2788_v27  ;;  %v3132_v6 = vmax.f32 %v2954_v49, 0.0 }
 0x577   :  { %v3100_v30 = vmax.f32 %v2794_v19, 0.0  ;;  %v3131_v44 = vmax.f32 %v2949_v61, 0.0 }
 0x578   :  { %v3099_v35 = vmax.f32 %v2789_v33, 0.0  ;;  %3197 = vst.msk [vmem:[%s7596_s3 + $0x118] sm:$0xff] %vm3161_vm2, %v3132_v6 }
 0x579   :  { %3165 = vst.msk [vmem:[%s7596_s3 + $0x18] sm:$0xff] %vm3161_vm2, %v3100_v30  ;;  %3196 = vst.msk [vmem:[%s7596_s3 + $0x110] sm:$0xff] %vm3161_vm2, %v3131_v44 }
 0x57a   :  { %3164 = vst.msk [vmem:[%s7596_s3 + $0x10] sm:$0xff] %vm3161_vm2, %v3099_v35 }
 0x57b   :  { %v3418_v9 = vpop.f32.mrb[4].mxu1 }
 0x57c   :  { %v3370_v51 = vpop.f32.mrb[4].mxu0  ;;  %v2964_v58 = vadd.f32 %v3418_v9, %v7271_v5  ;;  %v2958_v60 = vpop.f32.mrb[5].mxu1 }
 0x57d   :  { %v2804_v14 = vadd.f32 %v3370_v51, %v7271_v5  ;;  %v2798_v24 = vpop.f32.mrb[5].mxu0  ;;  %v2959_v1 = vadd.f32 %v7271_v5, %v2958_v60 }
 0x57e   :  { %v2799_v62 = vadd.f32 %v7271_v5, %v2798_v24  ;;  %v3134_v32 = vmax.f32 %v2964_v58, 0.0 }
 0x57f   :  { %v3102_v45 = vmax.f32 %v2804_v14, 0.0  ;;  %v3133_v22 = vmax.f32 %v2959_v1, 0.0 }
 0x580   :  { %v3101_v39 = vmax.f32 %v2799_v62, 0.0  ;;  %3199 = vst.msk [vmem:[%s7596_s3 + $0x128] sm:$0xff] %vm3161_vm2, %v3134_v32 }
 0x581   :  { %3167 = vst.msk [vmem:[%s7596_s3 + $0x28] sm:$0xff] %vm3161_vm2, %v3102_v45  ;;  %3198 = vst.msk [vmem:[%s7596_s3 + $0x120] sm:$0xff] %vm3161_vm2, %v3133_v22 }
 0x582   :  { %3166 = vst.msk [vmem:[%s7596_s3 + $0x20] sm:$0xff] %vm3161_vm2, %v3101_v39 }
 0x583   :  { %v3421_v53 = vpop.f32.mrb[6].mxu1 }
 0x584   :  { %v3373_v3 = vpop.f32.mrb[6].mxu0  ;;  %v2974_v46 = vadd.f32 %v3421_v53, %v7271_v5  ;;  %v2968_v16 = vpop.f32.mrb[7].mxu1 }
 0x585   :  { %v2814_v63 = vadd.f32 %v3373_v3, %v7271_v5  ;;  %v2808_v7 = vpop.f32.mrb[7].mxu0  ;;  %v2969_v36 = vadd.f32 %v7271_v5, %v2968_v16 }
 0x586   :  { %v2809_v11 = vadd.f32 %v7271_v5, %v2808_v7  ;;  %v3136_v37 = vmax.f32 %v2974_v46, 0.0 }
 0x587   :  { %v3104_v56 = vmax.f32 %v2814_v63, 0.0  ;;  %v3135_v18 = vmax.f32 %v2969_v36, 0.0 }
 0x588   :  { %v3103_v0 = vmax.f32 %v2809_v11, 0.0  ;;  %3201 = vst.msk [vmem:[%s7596_s3 + $0x138] sm:$0xff] %vm3161_vm2, %v3136_v37 }
 0x589   :  { %3169 = vst.msk [vmem:[%s7596_s3 + $0x38] sm:$0xff] %vm3161_vm2, %v3104_v56  ;;  %3200 = vst.msk [vmem:[%s7596_s3 + $0x130] sm:$0xff] %vm3161_vm2, %v3135_v18 }
 0x58a   :  { %3168 = vst.msk [vmem:[%s7596_s3 + $0x30] sm:$0xff] %vm3161_vm2, %v3103_v0 }
 0x58b   :  { %v3424_v25 = vpop.f32.mrb[8].mxu1 }
 0x58c   :  { %v3376_v59 = vpop.f32.mrb[8].mxu0  ;;  %v2984_v4 = vadd.f32 %v3424_v25, %v7271_v5  ;;  %v2978_v13 = vpop.f32.mrb[9].mxu1 }
 0x58d   :  { %v2824_v8 = vadd.f32 %v3376_v59, %v7271_v5  ;;  %v2818_v50 = vpop.f32.mrb[9].mxu0  ;;  %v2979_v31 = vadd.f32 %v7271_v5, %v2978_v13 }
 0x58e   :  { %v2819_v47 = vadd.f32 %v7271_v5, %v2818_v50  ;;  %v3138_v21 = vmax.f32 %v2984_v4, 0.0 }
 0x58f   :  { %v3106_v12 = vmax.f32 %v2824_v8, 0.0  ;;  %v3137_v2 = vmax.f32 %v2979_v31, 0.0 }
 0x590   :  { %v3105_v15 = vmax.f32 %v2819_v47, 0.0  ;;  %3203 = vst.msk [vmem:[%s7596_s3 + $0x148] sm:$0xff] %vm3161_vm2, %v3138_v21 }
 0x591   :  { %3171 = vst.msk [vmem:[%s7596_s3 + $0x48] sm:$0xff] %vm3161_vm2, %v3106_v12  ;;  %3202 = vst.msk [vmem:[%s7596_s3 + $0x140] sm:$0xff] %vm3161_vm2, %v3137_v2 }
 0x592   :  { %3170 = vst.msk [vmem:[%s7596_s3 + $0x40] sm:$0xff] %vm3161_vm2, %v3105_v15 }
 0x593   :  { %v3427_v52 = vpop.f32.mrb[10].mxu1 }
 0x594   :  { %v3379_v20 = vpop.f32.mrb[10].mxu0  ;;  %v2994_v40 = vadd.f32 %v3427_v52, %v7271_v5  ;;  %v2988_v43 = vpop.f32.mrb[11].mxu1 }
 0x595   :  { %v2834_v17 = vadd.f32 %v3379_v20, %v7271_v5  ;;  %v2828_v28 = vpop.f32.mrb[11].mxu0  ;;  %v2989_v57 = vadd.f32 %v7271_v5, %v2988_v43 }
 0x596   :  { %v2829_v34 = vadd.f32 %v7271_v5, %v2828_v28  ;;  %v3140_v10 = vmax.f32 %v2994_v40, 0.0 }
 0x597   :  { %v3108_v54 = vmax.f32 %v2834_v17, 0.0  ;;  %v3139_v41 = vmax.f32 %v2989_v57, 0.0 }
 0x598   :  { %v3107_v26 = vmax.f32 %v2829_v34, 0.0  ;;  %3205 = vst.msk [vmem:[%s7596_s3 + $0x158] sm:$0xff] %vm3161_vm2, %v3140_v10 }
 0x599   :  { %3173 = vst.msk [vmem:[%s7596_s3 + $0x58] sm:$0xff] %vm3161_vm2, %v3108_v54  ;;  %3204 = vst.msk [vmem:[%s7596_s3 + $0x150] sm:$0xff] %vm3161_vm2, %v3139_v41 }
 0x59a   :  { %3172 = vst.msk [vmem:[%s7596_s3 + $0x50] sm:$0xff] %vm3161_vm2, %v3107_v26 }
 0x59b   :  { %v3430_v48 = vpop.f32.mrb[12].mxu1 }
 0x59c   :  { %v3382_v42 = vpop.f32.mrb[12].mxu0  ;;  %v3004_v23 = vadd.f32 %v3430_v48, %v7271_v5  ;;  %v2998_v19 = vpop.f32.mrb[13].mxu1 }
 0x59d   :  { %v2844_v55 = vadd.f32 %v3382_v42, %v7271_v5  ;;  %v2838_v38 = vpop.f32.mrb[13].mxu0  ;;  %v2999_v27 = vadd.f32 %v7271_v5, %v2998_v19 }
 0x59e   :  { %v2839_v49 = vadd.f32 %v7271_v5, %v2838_v38  ;;  %v3142_v33 = vmax.f32 %v3004_v23, 0.0 }
 0x59f   :  { %v3110_v29 = vmax.f32 %v2844_v55, 0.0  ;;  %v3141_v30 = vmax.f32 %v2999_v27, 0.0 }
 0x5a0   :  { %v3109_v61 = vmax.f32 %v2839_v49, 0.0  ;;  %3207 = vst.msk [vmem:[%s7596_s3 + $0x168] sm:$0xff] %vm3161_vm2, %v3142_v33 }
 0x5a1   :  { %3175 = vst.msk [vmem:[%s7596_s3 + $0x68] sm:$0xff] %vm3161_vm2, %v3110_v29  ;;  %3206 = vst.msk [vmem:[%s7596_s3 + $0x160] sm:$0xff] %vm3161_vm2, %v3141_v30 }
 0x5a2   :  { %3174 = vst.msk [vmem:[%s7596_s3 + $0x60] sm:$0xff] %vm3161_vm2, %v3109_v61 }
 0x5a3   :  { %v3433_v35 = vpop.f32.mrb[14].mxu1 }
 0x5a4   :  { %v3385_v6 = vpop.f32.mrb[14].mxu0  ;;  %v3014_v51 = vadd.f32 %v3433_v35, %v7271_v5  ;;  %v3008_v14 = vpop.f32.mrb[15].mxu1 }
 0x5a5   :  { %v2854_v44 = vadd.f32 %v3385_v6, %v7271_v5  ;;  %v2848_v9 = vpop.f32.mrb[15].mxu0  ;;  %v3009_v24 = vadd.f32 %v7271_v5, %v3008_v14 }
 0x5a6   :  { %v2849_v58 = vadd.f32 %v7271_v5, %v2848_v9  ;;  %v3144_v62 = vmax.f32 %v3014_v51, 0.0 }
 0x5a7   :  { %v3112_v60 = vmax.f32 %v2854_v44, 0.0  ;;  %v3143_v45 = vmax.f32 %v3009_v24, 0.0 }
 0x5a8   :  { %v3111_v1 = vmax.f32 %v2849_v58, 0.0  ;;  %3209 = vst.msk [vmem:[%s7596_s3 + $0x178] sm:$0xff] %vm3161_vm2, %v3144_v62 }
 0x5a9   :  { %3177 = vst.msk [vmem:[%s7596_s3 + $0x78] sm:$0xff] %vm3161_vm2, %v3112_v60  ;;  %3208 = vst.msk [vmem:[%s7596_s3 + $0x170] sm:$0xff] %vm3161_vm2, %v3143_v45 }
 0x5aa   :  { %3176 = vst.msk [vmem:[%s7596_s3 + $0x70] sm:$0xff] %vm3161_vm2, %v3111_v1 }
 0x5ab   :  { %v3436_v39 = vpop.f32.mrb[16].mxu1 }
 0x5ac   :  { %v3388_v32 = vpop.f32.mrb[16].mxu0  ;;  %v3024_v3 = vadd.f32 %v3436_v39, %v7271_v5  ;;  %v3018_v63 = vpop.f32.mrb[17].mxu1 }
 0x5ad   :  { %v2864_v22 = vadd.f32 %v3388_v32, %v7271_v5  ;;  %v2858_v53 = vpop.f32.mrb[17].mxu0  ;;  %v3019_v7 = vadd.f32 %v7271_v5, %v3018_v63 }
 0x5ae   :  { %v2859_v46 = vadd.f32 %v7271_v5, %v2858_v53  ;;  %v3146_v11 = vmax.f32 %v3024_v3, 0.0 }
 0x5af   :  { %v3114_v16 = vmax.f32 %v2864_v22, 0.0  ;;  %v3145_v56 = vmax.f32 %v3019_v7, 0.0 }
 0x5b0   :  { %v3113_v36 = vmax.f32 %v2859_v46, 0.0  ;;  %3211 = vst.msk [vmem:[%s7596_s3 + $0x188] sm:$0xff] %vm3161_vm2, %v3146_v11 }
 0x5b1   :  { %3179 = vst.msk [vmem:[%s7596_s3 + $0x88] sm:$0xff] %vm3161_vm2, %v3114_v16  ;;  %3210 = vst.msk [vmem:[%s7596_s3 + $0x180] sm:$0xff] %vm3161_vm2, %v3145_v56 }
 0x5b2   :  { %3178 = vst.msk [vmem:[%s7596_s3 + $0x80] sm:$0xff] %vm3161_vm2, %v3113_v36 }
 0x5b3   :  { %v3439_v0 = vpop.f32.mrb[18].mxu1 }
 0x5b4   :  { %v3391_v37 = vpop.f32.mrb[18].mxu0  ;;  %v3034_v59 = vadd.f32 %v3439_v0, %v7271_v5  ;;  %v3028_v8 = vpop.f32.mrb[19].mxu1 }
 0x5b5   :  { %v2874_v18 = vadd.f32 %v3391_v37, %v7271_v5  ;;  %v2868_v25 = vpop.f32.mrb[19].mxu0  ;;  %v3029_v50 = vadd.f32 %v7271_v5, %v3028_v8 }
 0x5b6   :  { %v2869_v4 = vadd.f32 %v7271_v5, %v2868_v25  ;;  %v3148_v47 = vmax.f32 %v3034_v59, 0.0 }
 0x5b7   :  { %v3116_v13 = vmax.f32 %v2874_v18, 0.0  ;;  %v3147_v12 = vmax.f32 %v3029_v50, 0.0 }
 0x5b8   :  { %v3115_v31 = vmax.f32 %v2869_v4, 0.0  ;;  %3213 = vst.msk [vmem:[%s7596_s3 + $0x198] sm:$0xff] %vm3161_vm2, %v3148_v47 }
 0x5b9   :  { %3181 = vst.msk [vmem:[%s7596_s3 + $0x98] sm:$0xff] %vm3161_vm2, %v3116_v13  ;;  %3212 = vst.msk [vmem:[%s7596_s3 + $0x190] sm:$0xff] %vm3161_vm2, %v3147_v12 }
 0x5ba   :  { %3180 = vst.msk [vmem:[%s7596_s3 + $0x90] sm:$0xff] %vm3161_vm2, %v3115_v31 }
 0x5bb   :  { %v3442_v15 = vpop.f32.mrb[20].mxu1 }
 0x5bc   :  { %v3394_v21 = vpop.f32.mrb[20].mxu0  ;;  %v3044_v20 = vadd.f32 %v3442_v15, %v7271_v5  ;;  %v3038_v17 = vpop.f32.mrb[21].mxu1 }
 0x5bd   :  { %v2884_v2 = vadd.f32 %v3394_v21, %v7271_v5  ;;  %v2878_v52 = vpop.f32.mrb[21].mxu0  ;;  %v3039_v28 = vadd.f32 %v7271_v5, %v3038_v17 }
 0x5be   :  { %v2879_v40 = vadd.f32 %v7271_v5, %v2878_v52  ;;  %v3150_v34 = vmax.f32 %v3044_v20, 0.0 }
 0x5bf   :  { %v3118_v43 = vmax.f32 %v2884_v2, 0.0  ;;  %v3149_v54 = vmax.f32 %v3039_v28, 0.0 }
 0x5c0   :  { %v3117_v57 = vmax.f32 %v2879_v40, 0.0  ;;  %3215 = vst.msk [vmem:[%s7596_s3 + $0x1a8] sm:$0xff] %vm3161_vm2, %v3150_v34 }
 0x5c1   :  { %3183 = vst.msk [vmem:[%s7596_s3 + $0xa8] sm:$0xff] %vm3161_vm2, %v3118_v43  ;;  %3214 = vst.msk [vmem:[%s7596_s3 + $0x1a0] sm:$0xff] %vm3161_vm2, %v3149_v54 }
 0x5c2   :  { %3182 = vst.msk [vmem:[%s7596_s3 + $0xa0] sm:$0xff] %vm3161_vm2, %v3117_v57 }
 0x5c3   :  { %v3445_v26 = vpop.f32.mrb[22].mxu1 }
 0x5c4   :  { %v3397_v10 = vpop.f32.mrb[22].mxu0  ;;  %v3054_v42 = vadd.f32 %v3445_v26, %v7271_v5  ;;  %v3048_v55 = vpop.f32.mrb[23].mxu1 }
 0x5c5   :  { %v2894_v41 = vadd.f32 %v3397_v10, %v7271_v5  ;;  %v2888_v48 = vpop.f32.mrb[23].mxu0  ;;  %v3049_v38 = vadd.f32 %v7271_v5, %v3048_v55 }
 0x5c6   :  { %v2889_v23 = vadd.f32 %v7271_v5, %v2888_v48  ;;  %v3152_v49 = vmax.f32 %v3054_v42, 0.0 }
 0x5c7   :  { %v3120_v19 = vmax.f32 %v2894_v41, 0.0  ;;  %v3151_v29 = vmax.f32 %v3049_v38, 0.0 }
 0x5c8   :  { %v3119_v27 = vmax.f32 %v2889_v23, 0.0  ;;  %3217 = vst.msk [vmem:[%s7596_s3 + $0x1b8] sm:$0xff] %vm3161_vm2, %v3152_v49 }
 0x5c9   :  { %3185 = vst.msk [vmem:[%s7596_s3 + $0xb8] sm:$0xff] %vm3161_vm2, %v3120_v19  ;;  %3216 = vst.msk [vmem:[%s7596_s3 + $0x1b0] sm:$0xff] %vm3161_vm2, %v3151_v29 }
 0x5ca   :  { %3184 = vst.msk [vmem:[%s7596_s3 + $0xb0] sm:$0xff] %vm3161_vm2, %v3119_v27 }
 0x5cb   :  { %v3448_v61 = vpop.f32.mrb[24].mxu1 }
 0x5cc   :  { %v3400_v33 = vpop.f32.mrb[24].mxu0  ;;  %v3064_v6 = vadd.f32 %v3448_v61, %v7271_v5  ;;  %v3058_v44 = vpop.f32.mrb[25].mxu1 }
 0x5cd   :  { %v2904_v30 = vadd.f32 %v3400_v33, %v7271_v5  ;;  %v2898_v35 = vpop.f32.mrb[25].mxu0  ;;  %v3059_v9 = vadd.f32 %v7271_v5, %v3058_v44 }
 0x5ce   :  { %v2899_v51 = vadd.f32 %v7271_v5, %v2898_v35  ;;  %v3154_v58 = vmax.f32 %v3064_v6, 0.0 }
 0x5cf   :  { %v3122_v14 = vmax.f32 %v2904_v30, 0.0  ;;  %v3153_v60 = vmax.f32 %v3059_v9, 0.0 }
 0x5d0   :  { %v3121_v24 = vmax.f32 %v2899_v51, 0.0  ;;  %3219 = vst.msk [vmem:[%s7596_s3 + $0x1c8] sm:$0xff] %vm3161_vm2, %v3154_v58 }
 0x5d1   :  { %3187 = vst.msk [vmem:[%s7596_s3 + $0xc8] sm:$0xff] %vm3161_vm2, %v3122_v14  ;;  %3218 = vst.msk [vmem:[%s7596_s3 + $0x1c0] sm:$0xff] %vm3161_vm2, %v3153_v60 }
 0x5d2   :  { %3186 = vst.msk [vmem:[%s7596_s3 + $0xc0] sm:$0xff] %vm3161_vm2, %v3121_v24 }
 0x5d4   :  { %v3403_v62 = vpop.f32.mrb[26].mxu0 }
 0x5d5   :  { %v3451_v1 = vpop.f32.mrb[26].mxu1  ;;  %v2914_v45 = vadd.f32 %v3403_v62, %v7271_v5  ;;  %v2908_v39 = vpop.f32.mrb[27].mxu0 }
 0x5d6   :  { %v3074_v32 = vadd.f32 %v3451_v1, %v7271_v5  ;;  %v3068_v22 = vpop.f32.mrb[27].mxu1  ;;  %v2909_v3 = vadd.f32 %v7271_v5, %v2908_v39 }
 0x5d7   :  { %v3069_v53 = vadd.f32 %v7271_v5, %v3068_v22  ;;  %v3124_v63 = vmax.f32 %v2914_v45, 0.0 }
 0x5d8   :  { %v3156_v46 = vmax.f32 %v3074_v32, 0.0  ;;  %v3123_v7 = vmax.f32 %v2909_v3, 0.0 }
 0x5d9   :  { %v3155_v16 = vmax.f32 %v3069_v53, 0.0  ;;  %3189 = vst.msk [vmem:[%s7596_s3 + $0xd8] sm:$0xff] %vm3161_vm2, %v3124_v63 }
 0x5da   :  { %3221 = vst.msk [vmem:[%s7596_s3 + $0x1d8] sm:$0xff] %vm3161_vm2, %v3156_v46  ;;  %3188 = vst.msk [vmem:[%s7596_s3 + $0xd0] sm:$0xff] %vm3161_vm2, %v3123_v7 }
 0x5db   :  { %3220 = vst.msk [vmem:[%s7596_s3 + $0x1d0] sm:$0xff] %vm3161_vm2, %v3155_v16 }
 0x5de   :  { %v3406_v11 = vpop.f32.mrb[28].mxu0 }
 0x5df   :  { %v2924_v36 = vadd.f32 %v3406_v11, %v7271_v5  ;;  %v2918_v37 = vpop.f32.mrb[29].mxu0 }
 0x5e0   :  { %v3454_v56 = vpop.f32.mrb[28].mxu1  ;;  %v2919_v18 = vadd.f32 %v7271_v5, %v2918_v37 }
 0x5e1   :  { %v3084_v0 = vadd.f32 %v3454_v56, %v7271_v5  ;;  %v3078_v59 = vpop.f32.mrb[29].mxu1  ;;  %v3126_v25 = vmax.f32 %v2924_v36, 0.0 }
 0x5e2   :  { %v3079_v8 = vadd.f32 %v7271_v5, %v3078_v59  ;;  %v3125_v50 = vmax.f32 %v2919_v18, 0.0 }
 0x5e3   :  { %v3158_v4 = vmax.f32 %v3084_v0, 0.0  ;;  %3191 = vst.msk [vmem:[%s7596_s3 + $0xe8] sm:$0xff] %vm3161_vm2, %v3126_v25 }
 0x5e4   :  { %v3157_v13 = vmax.f32 %v3079_v8, 0.0  ;;  %3190 = vst.msk [vmem:[%s7596_s3 + $0xe0] sm:$0xff] %vm3161_vm2, %v3125_v50 }
 0x5e5   :  { %3223 = vst.msk [vmem:[%s7596_s3 + $0x1e8] sm:$0xff] %vm3161_vm2, %v3158_v4 }
 0x5e6   :  { %3222 = vst.msk [vmem:[%s7596_s3 + $0x1e0] sm:$0xff] %vm3161_vm2, %v3157_v13  ;;  %v3409_v47 = vpop.f32.mrb[30].mxu0 }
 0x5e7   :  { %v2934_v31 = vadd.f32 %v3409_v47, %v7271_v5  ;;  %v2928_v21 = vpop.f32.mrb[31].mxu0 }
 0x5e8   :  { %v3457_v12 = vpop.f32.mrb[30].mxu1  ;;  %v2929_v2 = vadd.f32 %v7271_v5, %v2928_v21 }
 0x5e9   :  { %v3094_v15 = vadd.f32 %v3457_v12, %v7271_v5  ;;  %v3088_v20 = vpop.f32.mrb[31].mxu1  ;;  %v3128_v52 = vmax.f32 %v2934_v31, 0.0 }
 0x5ea   :  { %v3089_v17 = vadd.f32 %v7271_v5, %v3088_v20  ;;  %v3127_v28 = vmax.f32 %v2929_v2, 0.0 }
 0x5eb   :  { %v3160_v40 = vmax.f32 %v3094_v15, 0.0  ;;  %3193 = vst.msk [vmem:[%s7596_s3 + $0xf8] sm:$0xff] %vm3161_vm2, %v3128_v52 }
 0x5ec   :  { %v3159_v43 = vmax.f32 %v3089_v17, 0.0  ;;  %3192 = vst.msk [vmem:[%s7596_s3 + $0xf0] sm:$0xff] %vm3161_vm2, %v3127_v28 }
 0x5ed   :  { %3225 = vst.msk [vmem:[%s7596_s3 + $0x1f8] sm:$0xff] %vm3161_vm2, %v3160_v40 }
 0x5ee   :  { %3224 = vst.msk [vmem:[%s7596_s3 + $0x1f0] sm:$0xff] %vm3161_vm2, %v3159_v43 }

// kernel: inception_forward.3
= control target key start
LH: loop header
LB: loop body
LE: loop exit
PB: predicated region body
PF: predicated region fallthrough
CT: control target
= control target key end

     0   :  { %v1010_v0 = vmov 0.0|0.0   ;;  %vm171_vm0 = vcmask 359424   ;;  %vm364_vm1 = vcmask 1043456   ;;  %vm1011_vm2 = vmmov 1   ;;  %s1893_s1 = inlined_call_operand.vmem [shape: f32[172,24], index: 1, kind: input, shape index: {}]   ;;  %s1894_s0 = inlined_call_operand.vmem [shape: f32[512,172], index: 0, kind: input, shape index: {}]   ;;  %s1895_s2 = inlined_call_operand.vmem [shape: f32[1,24], index: 2, kind: input, shape index: {}]   ;;  %s1896_s3 = inlined_call_operand.vmem [shape: f32[512,24], index: 3, kind: output, shape index: {}]  }
   0x1   :  { %952 = vmatprep.subr.bf16.mxu0 %v1010_v0  ;;  %986 = vmatprep.subr.bf16.mxu1 %v1010_v0  ;;  %v142_v1 = vld [vmem:[%s1893_s1] sm:$0xff]  ;;  %v143_v2 = vld [vmem:[%s1893_s1 + $0x8] sm:$0xff]  ;;  %v144_v3 = vld [vmem:[%s1893_s1 + $0x10] sm:$0xff]  ;;  %vm817_vm4 = vcmask 195584  }
   0x2   :  { %v953_v4 = vpack.c.bf16 %v143_v2, %v142_v1  ;;  %v145_v5 = vld [vmem:[%s1893_s1 + $0x18] sm:$0xff]  ;;  %v146_v7 = vld [vmem:[%s1893_s1 + $0x20] sm:$0xff]  ;;  %v147_v8 = vld [vmem:[%s1893_s1 + $0x28] sm:$0xff] }
   0x3   :  { %v956_v6 = vpack.c.bf16 %v145_v5, %v144_v3  ;;  %v959_v9 = vpack.c.bf16 %v147_v8, %v146_v7  ;;  %v15_v10 = vld [vmem:[%s1894_s0 + $0x8] sm:$0xff]  ;;  %v148_v11 = vld [vmem:[%s1893_s1 + $0x30] sm:$0xff]  ;;  %v149_v12 = vld [vmem:[%s1893_s1 + $0x38] sm:$0xff] }
   0x4   :  { %954 = vmatpush1.bf16.msra.mxu0 %v953_v4  ;;  %997 = vmatpush1.bf16.msra.mxu1 %v953_v4  ;;  %v79_v13 = vld [vmem:[%s1894_s0 + $0x208] sm:$0xff]  ;;  %v962_v14 = vpack.c.bf16 %v149_v12, %v148_v11  ;;  %v150_v15 = vld [vmem:[%s1893_s1 + $0x40] sm:$0xff]  ;;  %v152_v18 = vld [vmem:[%s1893_s1 + $0x50] sm:$0xff] }
   0x5   :  { %955 = vmatprep.subr.bf16.mxu0 %v1010_v0  ;;  %987 = vmatprep.subr.bf16.mxu1 %v1010_v0  ;;  %v151_v16 = vld [vmem:[%s1893_s1 + $0x48] sm:$0xff]  ;;  %v153_v19 = vld [vmem:[%s1893_s1 + $0x58] sm:$0xff]  ;;  %v154_v21 = vld [vmem:[%s1893_s1 + $0x60] sm:$0xff] }
   0x6   :  { %888 = vmatprep.mubr.msk.f32.mxu0 %vm171_vm0, %v15_v10  ;;  %920 = vmatprep.mubr.msk.f32.mxu1 %vm171_vm0, %v79_v13  ;;  %v965_v17 = vpack.c.bf16 %v151_v16, %v150_v15  ;;  %v968_v20 = vpack.c.bf16 %v153_v19, %v152_v18  ;;  %v155_v22 = vld [vmem:[%s1893_s1 + $0x68] sm:$0xff]  ;;  %v156_v24 = vld [vmem:[%s1893_s1 + $0x70] sm:$0xff]  ;;  %v157_v25 = vld [vmem:[%s1893_s1 + $0x78] sm:$0xff] }
   0x7   :  { %v971_v23 = vpack.c.bf16 %v155_v22, %v154_v21  ;;  %v974_v26 = vpack.c.bf16 %v157_v25, %v156_v24  ;;  %v158_v27 = vld [vmem:[%s1893_s1 + $0x80] sm:$0xff]  ;;  %v159_v28 = vld [vmem:[%s1893_s1 + $0x88] sm:$0xff]  ;;  %v160_v30 = vld [vmem:[%s1893_s1 + $0x90] sm:$0xff] }
   0x8   :  { %957 = vmatpush1.bf16.msra.mxu0 %v956_v6  ;;  %998 = vmatpush1.bf16.msra.mxu1 %v956_v6  ;;  %v977_v29 = vpack.c.bf16 %v159_v28, %v158_v27  ;;  %v161_v31 = vld [vmem:[%s1893_s1 + $0x98] sm:$0xff]  ;;  %v162_v33 = vld [vmem:[%s1893_s1 + $0xa0] sm:$0xff]  ;;  %v163_v34 = vld [vmem:[%s1893_s1 + $0xa8] sm:$0xf] }
   0x9   :  { %958 = vmatprep.subr.bf16.mxu0 %v1010_v0  ;;  %988 = vmatprep.subr.bf16.mxu1 %v1010_v0  ;;  %v980_v32 = vpack.c.bf16 %v161_v31, %v160_v30  ;;  %v983_v35 = vpack.c.bf16 %v163_v34, %v162_v33  ;;  %vm984_vm3 = vmpackc.low %vm364_vm1, %vm1011_vm2  ;;  %v14_v36 = vld [vmem:[%s1894_s0] sm:$0xff]  ;;  %v17_v38 = vld [vmem:[%s1894_s0 + $0x18] sm:$0xff] }
   0xa   :  { %v78_v37 = vld [vmem:[%s1894_s0 + $0x200] sm:$0xff]  ;;  %v81_v39 = vld [vmem:[%s1894_s0 + $0x218] sm:$0xff]  ;;  %v16_v40 = vld [vmem:[%s1894_s0 + $0x10] sm:$0xff] }
   0xb   :  { %v80_v41 = vld [vmem:[%s1894_s0 + $0x210] sm:$0xff]  ;;  %v19_v42 = vld [vmem:[%s1894_s0 + $0x28] sm:$0xff]  ;;  %v18_v44 = vld [vmem:[%s1894_s0 + $0x20] sm:$0xff] }
   0xc   :  { %960 = vmatpush1.bf16.msra.mxu0 %v959_v9  ;;  %999 = vmatpush1.bf16.msra.mxu1 %v959_v9  ;;  %v83_v43 = vld [vmem:[%s1894_s0 + $0x228] sm:$0xff]  ;;  %v82_v45 = vld [vmem:[%s1894_s0 + $0x220] sm:$0xff]  ;;  %v21_v46 = vld [vmem:[%s1894_s0 + $0x38] sm:$0xff] }
   0xd   :  { %961 = vmatprep.subr.bf16.mxu0 %v1010_v0  ;;  %989 = vmatprep.subr.bf16.mxu1 %v1010_v0  ;;  %v85_v47 = vld [vmem:[%s1894_s0 + $0x238] sm:$0xff]  ;;  %v20_v48 = vld [vmem:[%s1894_s0 + $0x30] sm:$0xff]  ;;  %v23_v50 = vld [vmem:[%s1894_s0 + $0x48] sm:$0xff] }
   0xe   :  { %v84_v49 = vld [vmem:[%s1894_s0 + $0x230] sm:$0xff]  ;;  %v87_v51 = vld [vmem:[%s1894_s0 + $0x248] sm:$0xff]  ;;  %v22_v52 = vld [vmem:[%s1894_s0 + $0x40] sm:$0xff] }
   0xf   :  { %v86_v53 = vld [vmem:[%s1894_s0 + $0x240] sm:$0xff]  ;;  %v25_v54 = vld [vmem:[%s1894_s0 + $0x58] sm:$0xff]  ;;  %v24_v56 = vld [vmem:[%s1894_s0 + $0x50] sm:$0xff] }
  0x10   :  { %963 = vmatpush1.bf16.msra.mxu0 %v962_v14  ;;  %1000 = vmatpush1.bf16.msra.mxu1 %v962_v14  ;;  %v89_v55 = vld [vmem:[%s1894_s0 + $0x258] sm:$0xff]  ;;  %v88_v57 = vld [vmem:[%s1894_s0 + $0x250] sm:$0xff]  ;;  %v27_v58 = vld [vmem:[%s1894_s0 + $0x68] sm:$0xff] }
  0x11   :  { %964 = vmatprep.subr.bf16.mxu0 %v1010_v0  ;;  %990 = vmatprep.subr.bf16.mxu1 %v1010_v0  ;;  %v91_v59 = vld [vmem:[%s1894_s0 + $0x268] sm:$0xff]  ;;  %v26_v60 = vld [vmem:[%s1894_s0 + $0x60] sm:$0xff]  ;;  %v29_v62 = vld [vmem:[%s1894_s0 + $0x78] sm:$0xff] }
  0x12   :  { %v90_v61 = vld [vmem:[%s1894_s0 + $0x260] sm:$0xff]  ;;  %v93_v63 = vld [vmem:[%s1894_s0 + $0x278] sm:$0xff]  ;;  %v92_v1 = vld [vmem:[%s1894_s0 + $0x270] sm:$0xff] }
  0x13   :  { %v31_v2 = vld [vmem:[%s1894_s0 + $0x88] sm:$0xff]  ;;  %v30_v4 = vld [vmem:[%s1894_s0 + $0x80] sm:$0xff]  ;;  %v33_v6 = vld [vmem:[%s1894_s0 + $0x98] sm:$0xff] }
  0x14   :  { %966 = vmatpush1.bf16.msra.mxu0 %v965_v17  ;;  %1001 = vmatpush1.bf16.msra.mxu1 %v965_v17  ;;  %v95_v3 = vld [vmem:[%s1894_s0 + $0x288] sm:$0xff]  ;;  %v94_v5 = vld [vmem:[%s1894_s0 + $0x280] sm:$0xff]  ;;  %v97_v7 = vld [vmem:[%s1894_s0 + $0x298] sm:$0xff] }
  0x15   :  { %967 = vmatprep.subr.bf16.mxu0 %v1010_v0  ;;  %991 = vmatprep.subr.bf16.mxu1 %v1010_v0  ;;  %v32_v8 = vld [vmem:[%s1894_s0 + $0x90] sm:$0xff]  ;;  %v35_v10 = vld [vmem:[%s1894_s0 + $0xa8] sm:$0xff]  ;;  %v34_v12 = vld [vmem:[%s1894_s0 + $0xa0] sm:$0xff] }
  0x16   :  { %v96_v9 = vld [vmem:[%s1894_s0 + $0x290] sm:$0xff]  ;;  %v99_v11 = vld [vmem:[%s1894_s0 + $0x2a8] sm:$0xff]  ;;  %v98_v13 = vld [vmem:[%s1894_s0 + $0x2a0] sm:$0xff] }
  0x17   :  { %v37_v14 = vld [vmem:[%s1894_s0 + $0xb8] sm:$0xff]  ;;  %v36_v16 = vld [vmem:[%s1894_s0 + $0xb0] sm:$0xff]  ;;  %v39_v18 = vld [vmem:[%s1894_s0 + $0xc8] sm:$0xff] }
  0x18   :  { %969 = vmatpush1.bf16.msra.mxu0 %v968_v20  ;;  %1002 = vmatpush1.bf16.msra.mxu1 %v968_v20  ;;  %v101_v15 = vld [vmem:[%s1894_s0 + $0x2b8] sm:$0xff]  ;;  %v100_v17 = vld [vmem:[%s1894_s0 + $0x2b0] sm:$0xff]  ;;  %v103_v19 = vld [vmem:[%s1894_s0 + $0x2c8] sm:$0xff] }
  0x19   :  { %970 = vmatprep.subr.bf16.mxu0 %v1010_v0  ;;  %992 = vmatprep.subr.bf16.mxu1 %v1010_v0  ;;  %v38_v20 = vld [vmem:[%s1894_s0 + $0xc0] sm:$0xff]  ;;  %v41_v22 = vld [vmem:[%s1894_s0 + $0xd8] sm:$0xff]  ;;  %v40_v24 = vld [vmem:[%s1894_s0 + $0xd0] sm:$0xff] }
  0x1a   :  { %v102_v21 = vld [vmem:[%s1894_s0 + $0x2c0] sm:$0xff]  ;;  %v104_v25 = vld [vmem:[%s1894_s0 + $0x2d0] sm:$0xff]  ;;  %v107_v27 = vld [vmem:[%s1894_s0 + $0x2e8] sm:$0xff] }
  0x1b   :  { %v42_v28 = vld [vmem:[%s1894_s0 + $0xe0] sm:$0xff]  ;;  %v45_v30 = vld [vmem:[%s1894_s0 + $0xf8] sm:$0xff]  ;;  %v108_v33 = vld [vmem:[%s1894_s0 + $0x2f0] sm:$0xff] }
  0x1c   :  { %972 = vmatpush1.bf16.msra.mxu0 %v971_v23  ;;  %1003 = vmatpush1.bf16.msra.mxu1 %v971_v23  ;;  %v105_v23 = vld [vmem:[%s1894_s0 + $0x2d8] sm:$0xff]  ;;  %v47_v34 = vld [vmem:[%s1894_s0 + $0x108] sm:$0xff] }
  0x1d   :  { %973 = vmatprep.subr.bf16.mxu0 %v1010_v0  ;;  %993 = vmatprep.subr.bf16.mxu1 %v1010_v0  ;;  %v109_v31 = vld [vmem:[%s1894_s0 + $0x2f8] sm:$0xff] }
  0x20   :  { %975 = vmatpush1.bf16.msra.mxu0 %v974_v26  ;;  %1004 = vmatpush1.bf16.msra.mxu1 %v974_v26  ;;  %v43_v26 = vld [vmem:[%s1894_s0 + $0xe8] sm:$0xff] }
  0x21   :  { %976 = vmatprep.subr.bf16.mxu0 %v1010_v0  ;;  %994 = vmatprep.subr.bf16.mxu1 %v1010_v0 }
  0x24   :  { %978 = vmatpush1.bf16.msra.mxu0 %v977_v29  ;;  %1005 = vmatpush1.bf16.msra.mxu1 %v977_v29  ;;  %v106_v29 = vld [vmem:[%s1894_s0 + $0x2e0] sm:$0xff] }
  0x25   :  { %979 = vmatprep.subr.bf16.mxu0 %v1010_v0  ;;  %995 = vmatprep.subr.bf16.mxu1 %v1010_v0 }
  0x28   :  { %981 = vmatpush1.bf16.msra.mxu0 %v980_v32  ;;  %1006 = vmatpush1.bf16.msra.mxu1 %v980_v32  ;;  %v44_v32 = vld [vmem:[%s1894_s0 + $0xf0] sm:$0xff] }
  0x29   :  { %982 = vmatprep.subr.bf16.mxu0 %v1010_v0  ;;  %996 = vmatprep.subr.bf16.mxu1 %v1010_v0  ;;  %v28_v0 = vld [vmem:[%s1894_s0 + $0x70] sm:$0xff] }
  0x2c   :  { %985 = vmatpush1.bf16.msk.msra.mxu0 %vm984_vm3, %v983_v35  ;;  %1007 = vmatpush1.bf16.msk.msra.mxu1 %vm984_vm3, %v983_v35  ;;  %v111_v35 = vld [vmem:[%s1894_s0 + $0x308] sm:$0xff] }
  0x2f   :  { %433 = vmatmul.mubr.f32.vlgmr.msra.gmra.mrb[0].mxu0 %v14_v36  ;;  %593 = vmatmul.mubr.f32.vlgmr.msra.gmra.mrb[0].mxu1 %v78_v37  ;;  %v46_v36 = vld [vmem:[%s1894_s0 + $0x100] sm:$0xff] }
  0x30   :  { %889 = vmatprep.mubr.msk.f32.mxu0 %vm171_vm0, %v17_v38  ;;  %921 = vmatprep.mubr.msk.f32.mxu1 %vm171_vm0, %v81_v39  ;;  %v110_v37 = vld [vmem:[%s1894_s0 + $0x300] sm:$0xff]  ;;  %v49_v38 = vld [vmem:[%s1894_s0 + $0x118] sm:$0xff] }
  0x31   :  { %v113_v39 = vld [vmem:[%s1894_s0 + $0x318] sm:$0xff] }
  0x33   :  { %438 = vmatmul.mubr.f32.gmra.mrb[2].mxu0 %v16_v40  ;;  %598 = vmatmul.mubr.f32.gmra.mrb[2].mxu1 %v80_v41  ;;  %v48_v40 = vld [vmem:[%s1894_s0 + $0x110] sm:$0xff] }
  0x34   :  { %890 = vmatprep.mubr.msk.f32.mxu0 %vm171_vm0, %v19_v42  ;;  %922 = vmatprep.mubr.msk.f32.mxu1 %vm171_vm0, %v83_v43  ;;  %v112_v41 = vld [vmem:[%s1894_s0 + $0x310] sm:$0xff]  ;;  %v51_v42 = vld [vmem:[%s1894_s0 + $0x128] sm:$0xff] }
  0x35   :  { %v115_v43 = vld [vmem:[%s1894_s0 + $0x328] sm:$0xff] }
  0x37   :  { %443 = vmatmul.mubr.f32.gmra.mrb[4].mxu0 %v18_v44  ;;  %603 = vmatmul.mubr.f32.gmra.mrb[4].mxu1 %v82_v45  ;;  %v50_v44 = vld [vmem:[%s1894_s0 + $0x120] sm:$0xff] }
  0x38   :  { %891 = vmatprep.mubr.msk.f32.mxu0 %vm171_vm0, %v21_v46  ;;  %923 = vmatprep.mubr.msk.f32.mxu1 %vm171_vm0, %v85_v47  ;;  %v114_v45 = vld [vmem:[%s1894_s0 + $0x320] sm:$0xff]  ;;  %v53_v46 = vld [vmem:[%s1894_s0 + $0x138] sm:$0xff] }
  0x39   :  { %v117_v47 = vld [vmem:[%s1894_s0 + $0x338] sm:$0xff] }
  0x3b   :  { %448 = vmatmul.mubr.f32.gmra.mrb[6].mxu0 %v20_v48  ;;  %608 = vmatmul.mubr.f32.gmra.mrb[6].mxu1 %v84_v49  ;;  %v52_v48 = vld [vmem:[%s1894_s0 + $0x130] sm:$0xff] }
  0x3c   :  { %892 = vmatprep.mubr.msk.f32.mxu0 %vm171_vm0, %v23_v50  ;;  %924 = vmatprep.mubr.msk.f32.mxu1 %vm171_vm0, %v87_v51  ;;  %v116_v49 = vld [vmem:[%s1894_s0 + $0x330] sm:$0xff]  ;;  %v55_v50 = vld [vmem:[%s1894_s0 + $0x148] sm:$0xff] }
  0x3d   :  { %v119_v51 = vld [vmem:[%s1894_s0 + $0x348] sm:$0xff] }
  0x3f   :  { %453 = vmatmul.mubr.f32.gmra.mrb[8].mxu0 %v22_v52  ;;  %613 = vmatmul.mubr.f32.gmra.mrb[8].mxu1 %v86_v53  ;;  %v54_v52 = vld [vmem:[%s1894_s0 + $0x140] sm:$0xff] }
  0x40   :  { %893 = vmatprep.mubr.msk.f32.mxu0 %vm171_vm0, %v25_v54  ;;  %925 = vmatprep.mubr.msk.f32.mxu1 %vm171_vm0, %v89_v55  ;;  %v118_v53 = vld [vmem:[%s1894_s0 + $0x340] sm:$0xff]  ;;  %v57_v54 = vld [vmem:[%s1894_s0 + $0x158] sm:$0xff] }
  0x41   :  { %v121_v55 = vld [vmem:[%s1894_s0 + $0x358] sm:$0xff] }
  0x43   :  { %458 = vmatmul.mubr.f32.gmra.mrb[10].mxu0 %v24_v56  ;;  %618 = vmatmul.mubr.f32.gmra.mrb[10].mxu1 %v88_v57  ;;  %v56_v56 = vld [vmem:[%s1894_s0 + $0x150] sm:$0xff] }
  0x44   :  { %894 = vmatprep.mubr.msk.f32.mxu0 %vm171_vm0, %v27_v58  ;;  %926 = vmatprep.mubr.msk.f32.mxu1 %vm171_vm0, %v91_v59  ;;  %v120_v57 = vld [vmem:[%s1894_s0 + $0x350] sm:$0xff]  ;;  %v59_v58 = vld [vmem:[%s1894_s0 + $0x168] sm:$0xff] }
  0x45   :  { %v123_v59 = vld [vmem:[%s1894_s0 + $0x368] sm:$0xff] }
  0x47   :  { %463 = vmatmul.mubr.f32.gmra.mrb[12].mxu0 %v26_v60  ;;  %623 = vmatmul.mubr.f32.gmra.mrb[12].mxu1 %v90_v61  ;;  %v58_v60 = vld [vmem:[%s1894_s0 + $0x160] sm:$0xff] }
  0x48   :  { %895 = vmatprep.mubr.msk.f32.mxu0 %vm171_vm0, %v29_v62  ;;  %927 = vmatprep.mubr.msk.f32.mxu1 %vm171_vm0, %v93_v63  ;;  %v122_v61 = vld [vmem:[%s1894_s0 + $0x360] sm:$0xff]  ;;  %v61_v62 = vld [vmem:[%s1894_s0 + $0x178] sm:$0xff] }
  0x49   :  { %v125_v63 = vld [vmem:[%s1894_s0 + $0x378] sm:$0xff] }
  0x4b   :  { %468 = vmatmul.mubr.f32.gmra.mrb[14].mxu0 %v28_v0  ;;  %628 = vmatmul.mubr.f32.gmra.mrb[14].mxu1 %v92_v1  ;;  %v60_v0 = vld [vmem:[%s1894_s0 + $0x170] sm:$0xff] }
  0x4c   :  { %896 = vmatprep.mubr.msk.f32.mxu0 %vm171_vm0, %v31_v2  ;;  %928 = vmatprep.mubr.msk.f32.mxu1 %vm171_vm0, %v95_v3  ;;  %v124_v1 = vld [vmem:[%s1894_s0 + $0x370] sm:$0xff]  ;;  %v63_v2 = vld [vmem:[%s1894_s0 + $0x188] sm:$0xff] }
  0x4d   :  { %v127_v3 = vld [vmem:[%s1894_s0 + $0x388] sm:$0xff] }
  0x4f   :  { %473 = vmatmul.mubr.f32.gmra.mrb[16].mxu0 %v30_v4  ;;  %633 = vmatmul.mubr.f32.gmra.mrb[16].mxu1 %v94_v5  ;;  %v62_v4 = vld [vmem:[%s1894_s0 + $0x180] sm:$0xff] }
  0x50   :  { %897 = vmatprep.mubr.msk.f32.mxu0 %vm171_vm0, %v33_v6  ;;  %929 = vmatprep.mubr.msk.f32.mxu1 %vm171_vm0, %v97_v7  ;;  %v126_v5 = vld [vmem:[%s1894_s0 + $0x380] sm:$0xff]  ;;  %v65_v6 = vld [vmem:[%s1894_s0 + $0x198] sm:$0xff] }
  0x51   :  { %v129_v7 = vld [vmem:[%s1894_s0 + $0x398] sm:$0xff] }
  0x53   :  { %478 = vmatmul.mubr.f32.gmra.mrb[18].mxu0 %v32_v8  ;;  %638 = vmatmul.mubr.f32.gmra.mrb[18].mxu1 %v96_v9  ;;  %v64_v8 = vld [vmem:[%s1894_s0 + $0x190] sm:$0xff] }
  0x54   :  { %898 = vmatprep.mubr.msk.f32.mxu0 %vm171_vm0, %v35_v10  ;;  %930 = vmatprep.mubr.msk.f32.mxu1 %vm171_vm0, %v99_v11  ;;  %v128_v9 = vld [vmem:[%s1894_s0 + $0x390] sm:$0xff]  ;;  %v67_v10 = vld [vmem:[%s1894_s0 + $0x1a8] sm:$0xff] }
  0x55   :  { %v131_v11 = vld [vmem:[%s1894_s0 + $0x3a8] sm:$0xff] }
  0x57   :  { %483 = vmatmul.mubr.f32.gmra.mrb[20].mxu0 %v34_v12  ;;  %643 = vmatmul.mubr.f32.gmra.mrb[20].mxu1 %v98_v13  ;;  %v66_v12 = vld [vmem:[%s1894_s0 + $0x1a0] sm:$0xff] }
  0x58   :  { %899 = vmatprep.mubr.msk.f32.mxu0 %vm171_vm0, %v37_v14  ;;  %931 = vmatprep.mubr.msk.f32.mxu1 %vm171_vm0, %v101_v15  ;;  %v130_v13 = vld [vmem:[%s1894_s0 + $0x3a0] sm:$0xff]  ;;  %v69_v14 = vld [vmem:[%s1894_s0 + $0x1b8] sm:$0xff] }
  0x59   :  { %v133_v15 = vld [vmem:[%s1894_s0 + $0x3b8] sm:$0xff] }
  0x5b   :  { %488 = vmatmul.mubr.f32.gmra.mrb[22].mxu0 %v36_v16  ;;  %648 = vmatmul.mubr.f32.gmra.mrb[22].mxu1 %v100_v17  ;;  %v68_v16 = vld [vmem:[%s1894_s0 + $0x1b0] sm:$0xff] }
  0x5c   :  { %900 = vmatprep.mubr.msk.f32.mxu0 %vm171_vm0, %v39_v18  ;;  %932 = vmatprep.mubr.msk.f32.mxu1 %vm171_vm0, %v103_v19  ;;  %v132_v17 = vld [vmem:[%s1894_s0 + $0x3b0] sm:$0xff]  ;;  %v71_v18 = vld [vmem:[%s1894_s0 + $0x1c8] sm:$0xff] }
  0x5d   :  { %v135_v19 = vld [vmem:[%s1894_s0 + $0x3c8] sm:$0xff] }
  0x5f   :  { %493 = vmatmul.mubr.f32.gmra.mrb[24].mxu0 %v38_v20  ;;  %653 = vmatmul.mubr.f32.gmra.mrb[24].mxu1 %v102_v21  ;;  %v70_v20 = vld [vmem:[%s1894_s0 + $0x1c0] sm:$0xff] }
  0x60   :  { %901 = vmatprep.mubr.msk.f32.mxu0 %vm171_vm0, %v41_v22  ;;  %933 = vmatprep.mubr.msk.f32.mxu1 %vm171_vm0, %v105_v23  ;;  %v134_v21 = vld [vmem:[%s1894_s0 + $0x3c0] sm:$0xff]  ;;  %v73_v22 = vld [vmem:[%s1894_s0 + $0x1d8] sm:$0xff] }
  0x61   :  { %v137_v23 = vld [vmem:[%s1894_s0 + $0x3d8] sm:$0xff] }
  0x63   :  { %498 = vmatmul.mubr.f32.gmra.mrb[26].mxu0 %v40_v24  ;;  %658 = vmatmul.mubr.f32.gmra.mrb[26].mxu1 %v104_v25  ;;  %v72_v24 = vld [vmem:[%s1894_s0 + $0x1d0] sm:$0xff] }
  0x64   :  { %902 = vmatprep.mubr.msk.f32.mxu0 %vm171_vm0, %v43_v26  ;;  %934 = vmatprep.mubr.msk.f32.mxu1 %vm171_vm0, %v107_v27  ;;  %v136_v25 = vld [vmem:[%s1894_s0 + $0x3d0] sm:$0xff]  ;;  %v75_v26 = vld [vmem:[%s1894_s0 + $0x1e8] sm:$0xff] }
  0x65   :  { %v139_v27 = vld [vmem:[%s1894_s0 + $0x3e8] sm:$0xff] }
  0x67   :  { %503 = vmatmul.mubr.f32.gmra.mrb[28].mxu0 %v42_v28  ;;  %663 = vmatmul.mubr.f32.gmra.mrb[28].mxu1 %v106_v29  ;;  %v74_v28 = vld [vmem:[%s1894_s0 + $0x1e0] sm:$0xff] }
  0x68   :  { %903 = vmatprep.mubr.msk.f32.mxu0 %vm171_vm0, %v45_v30  ;;  %935 = vmatprep.mubr.msk.f32.mxu1 %vm171_vm0, %v109_v31  ;;  %v138_v29 = vld [vmem:[%s1894_s0 + $0x3e0] sm:$0xff]  ;;  %v77_v30 = vld [vmem:[%s1894_s0 + $0x1f8] sm:$0xff] }
  0x69   :  { %v141_v31 = vld [vmem:[%s1894_s0 + $0x3f8] sm:$0xff] }
  0x6b   :  { %508 = vmatmul.mubr.f32.gmra.mrb[30].mxu0 %v44_v32  ;;  %668 = vmatmul.mubr.f32.gmra.mrb[30].mxu1 %v108_v33  ;;  %v76_v32 = vld [vmem:[%s1894_s0 + $0x1f0] sm:$0xff] }
  0x6c   :  { %904 = vmatprep.mubr.msk.f32.mxu0 %vm171_vm0, %v47_v34  ;;  %936 = vmatprep.mubr.msk.f32.mxu1 %vm171_vm0, %v111_v35  ;;  %v140_v33 = vld [vmem:[%s1894_s0 + $0x3f0] sm:$0xff]  ;;  %v1571_v34 = vld [vmem:[%s1895_s2] ss:$0 sm:$0xff] }
  0x6f   :  { %513 = vmatmul.mubr.f32.gmra.mrb[32].mxu0 %v46_v36  ;;  %673 = vmatmul.mubr.f32.gmra.mrb[32].mxu1 %v110_v37 }
  0x70   :  { %905 = vmatprep.mubr.msk.f32.mxu0 %vm171_vm0, %v49_v38  ;;  %937 = vmatprep.mubr.msk.f32.mxu1 %vm171_vm0, %v113_v39 }
  0x73   :  { %518 = vmatmul.mubr.f32.gmra.mrb[34].mxu0 %v48_v40  ;;  %678 = vmatmul.mubr.f32.gmra.mrb[34].mxu1 %v112_v41 }
  0x74   :  { %906 = vmatprep.mubr.msk.f32.mxu0 %vm171_vm0, %v51_v42  ;;  %938 = vmatprep.mubr.msk.f32.mxu1 %vm171_vm0, %v115_v43 }
  0x77   :  { %523 = vmatmul.mubr.f32.gmra.mrb[36].mxu0 %v50_v44  ;;  %683 = vmatmul.mubr.f32.gmra.mrb[36].mxu1 %v114_v45 }
  0x78   :  { %907 = vmatprep.mubr.msk.f32.mxu0 %vm171_vm0, %v53_v46  ;;  %939 = vmatprep.mubr.msk.f32.mxu1 %vm171_vm0, %v117_v47 }
  0x7b   :  { %528 = vmatmul.mubr.f32.gmra.mrb[38].mxu0 %v52_v48  ;;  %688 = vmatmul.mubr.f32.gmra.mrb[38].mxu1 %v116_v49 }
  0x7c   :  { %908 = vmatprep.mubr.msk.f32.mxu0 %vm171_vm0, %v55_v50  ;;  %940 = vmatprep.mubr.msk.f32.mxu1 %vm171_vm0, %v119_v51 }
  0x7f   :  { %533 = vmatmul.mubr.f32.gmra.mrb[40].mxu0 %v54_v52  ;;  %693 = vmatmul.mubr.f32.gmra.mrb[40].mxu1 %v118_v53 }
  0x80   :  { %909 = vmatprep.mubr.msk.f32.mxu0 %vm171_vm0, %v57_v54  ;;  %941 = vmatprep.mubr.msk.f32.mxu1 %vm171_vm0, %v121_v55 }
  0x83   :  { %538 = vmatmul.mubr.f32.gmra.mrb[42].mxu0 %v56_v56  ;;  %698 = vmatmul.mubr.f32.gmra.mrb[42].mxu1 %v120_v57 }
  0x84   :  { %910 = vmatprep.mubr.msk.f32.mxu0 %vm171_vm0, %v59_v58  ;;  %942 = vmatprep.mubr.msk.f32.mxu1 %vm171_vm0, %v123_v59 }
  0x87   :  { %543 = vmatmul.mubr.f32.gmra.mrb[44].mxu0 %v58_v60  ;;  %703 = vmatmul.mubr.f32.gmra.mrb[44].mxu1 %v122_v61 }
  0x88   :  { %911 = vmatprep.mubr.msk.f32.mxu0 %vm171_vm0, %v61_v62  ;;  %943 = vmatprep.mubr.msk.f32.mxu1 %vm171_vm0, %v125_v63 }
  0x8b   :  { %548 = vmatmul.mubr.f32.gmra.mrb[46].mxu0 %v60_v0  ;;  %708 = vmatmul.mubr.f32.gmra.mrb[46].mxu1 %v124_v1 }
  0x8c   :  { %912 = vmatprep.mubr.msk.f32.mxu0 %vm171_vm0, %v63_v2  ;;  %944 = vmatprep.mubr.msk.f32.mxu1 %vm171_vm0, %v127_v3 }
  0x8f   :  { %553 = vmatmul.mubr.f32.gmra.mrb[48].mxu0 %v62_v4  ;;  %713 = vmatmul.mubr.f32.gmra.mrb[48].mxu1 %v126_v5 }
  0x90   :  { %913 = vmatprep.mubr.msk.f32.mxu0 %vm171_vm0, %v65_v6  ;;  %945 = vmatprep.mubr.msk.f32.mxu1 %vm171_vm0, %v129_v7 }
  0x93   :  { %558 = vmatmul.mubr.f32.gmra.mrb[50].mxu0 %v64_v8  ;;  %718 = vmatmul.mubr.f32.gmra.mrb[50].mxu1 %v128_v9 }
  0x94   :  { %914 = vmatprep.mubr.msk.f32.mxu0 %vm171_vm0, %v67_v10  ;;  %946 = vmatprep.mubr.msk.f32.mxu1 %vm171_vm0, %v131_v11 }
  0x97   :  { %563 = vmatmul.mubr.f32.gmra.mrb[52].mxu0 %v66_v12  ;;  %723 = vmatmul.mubr.f32.gmra.mrb[52].mxu1 %v130_v13 }
  0x98   :  { %915 = vmatprep.mubr.msk.f32.mxu0 %vm171_vm0, %v69_v14  ;;  %947 = vmatprep.mubr.msk.f32.mxu1 %vm171_vm0, %v133_v15 }
  0x9b   :  { %568 = vmatmul.mubr.f32.gmra.mrb[54].mxu0 %v68_v16  ;;  %728 = vmatmul.mubr.f32.gmra.mrb[54].mxu1 %v132_v17 }
  0x9c   :  { %916 = vmatprep.mubr.msk.f32.mxu0 %vm171_vm0, %v71_v18  ;;  %948 = vmatprep.mubr.msk.f32.mxu1 %vm171_vm0, %v135_v19 }
  0x9f   :  { %573 = vmatmul.mubr.f32.gmra.mrb[56].mxu0 %v70_v20  ;;  %733 = vmatmul.mubr.f32.gmra.mrb[56].mxu1 %v134_v21 }
  0xa0   :  { %917 = vmatprep.mubr.msk.f32.mxu0 %vm171_vm0, %v73_v22  ;;  %949 = vmatprep.mubr.msk.f32.mxu1 %vm171_vm0, %v137_v23 }
  0xa3   :  { %578 = vmatmul.mubr.f32.gmra.mrb[58].mxu0 %v72_v24  ;;  %738 = vmatmul.mubr.f32.gmra.mrb[58].mxu1 %v136_v25 }
  0xa4   :  { %918 = vmatprep.mubr.msk.f32.mxu0 %vm171_vm0, %v75_v26  ;;  %950 = vmatprep.mubr.msk.f32.mxu1 %vm171_vm0, %v139_v27 }
  0xa7   :  { %583 = vmatmul.mubr.f32.gmra.mrb[60].mxu0 %v74_v28  ;;  %743 = vmatmul.mubr.f32.gmra.mrb[60].mxu1 %v138_v29 }
  0xa8   :  { %919 = vmatprep.mubr.msk.f32.mxu0 %vm171_vm0, %v77_v30  ;;  %951 = vmatprep.mubr.msk.f32.mxu1 %vm171_vm0, %v141_v31 }
  0xab   :  { %588 = vmatmul.mubr.f32.gmra.mrb[62].mxu0 %v76_v32  ;;  %748 = vmatmul.mubr.f32.gmra.mrb[62].mxu1 %v140_v33 }
 0x102   :  { %v434_v35 = vpop.f32.mrb[0].mxu0  ;;  %v594_v36 = vpop.f32.mrb[0].mxu1 }
 0x103   :  { %v435_v37 = vadd.f32 %v1571_v34, %v434_v35  ;;  %v595_v38 = vadd.f32 %v1571_v34, %v594_v36  ;;  %v436_v39 = vpop.f32.mrb[1].mxu0  ;;  %v596_v40 = vpop.f32.mrb[1].mxu1 }
 0x105   :  { %v753_v41 = vmax.f32 %v435_v37, 0.0  ;;  %v785_v42 = vmax.f32 %v595_v38, 0.0 }
 0x106   :  { %v439_v43 = vpop.f32.mrb[2].mxu0  ;;  %v599_v44 = vpop.f32.mrb[2].mxu1 }
 0x107   :  { %818 = vst.msk [vmem:[%s1896_s3] sm:$0xff] %vm817_vm4, %v753_v41  ;;  %850 = vst.msk [vmem:[%s1896_s3 + $0x100] sm:$0xff] %vm817_vm4, %v785_v42  ;;  %v440_v45 = vadd.f32 %v1571_v34, %v439_v43  ;;  %v600_v46 = vadd.f32 %v1571_v34, %v599_v44  ;;  %v441_v47 = vpop.f32.mrb[3].mxu0  ;;  %v601_v48 = vpop.f32.mrb[3].mxu1 }
 0x109   :  { %v754_v49 = vmax.f32 %v440_v45, 0.0  ;;  %v786_v50 = vmax.f32 %v600_v46, 0.0 }
 0x10a   :  { %v444_v51 = vpop.f32.mrb[4].mxu0  ;;  %v604_v52 = vpop.f32.mrb[4].mxu1 }
 0x10b   :  { %819 = vst.msk [vmem:[%s1896_s3 + $0x8] sm:$0xff] %vm817_vm4, %v754_v49  ;;  %851 = vst.msk [vmem:[%s1896_s3 + $0x108] sm:$0xff] %vm817_vm4, %v786_v50  ;;  %v445_v53 = vadd.f32 %v1571_v34, %v444_v51  ;;  %v605_v54 = vadd.f32 %v1571_v34, %v604_v52  ;;  %v446_v55 = vpop.f32.mrb[5].mxu0  ;;  %v606_v56 = vpop.f32.mrb[5].mxu1 }
 0x10d   :  { %v755_v57 = vmax.f32 %v445_v53, 0.0  ;;  %v787_v58 = vmax.f32 %v605_v54, 0.0 }
 0x10e   :  { %v449_v59 = vpop.f32.mrb[6].mxu0  ;;  %v609_v60 = vpop.f32.mrb[6].mxu1 }
 0x10f   :  { %820 = vst.msk [vmem:[%s1896_s3 + $0x10] sm:$0xff] %vm817_vm4, %v755_v57  ;;  %852 = vst.msk [vmem:[%s1896_s3 + $0x110] sm:$0xff] %vm817_vm4, %v787_v58  ;;  %v450_v61 = vadd.f32 %v1571_v34, %v449_v59  ;;  %v610_v62 = vadd.f32 %v1571_v34, %v609_v60  ;;  %v451_v63 = vpop.f32.mrb[7].mxu0  ;;  %v611_v0 = vpop.f32.mrb[7].mxu1 }
 0x111   :  { %v756_v1 = vmax.f32 %v450_v61, 0.0  ;;  %v788_v2 = vmax.f32 %v610_v62, 0.0 }
 0x112   :  { %v454_v3 = vpop.f32.mrb[8].mxu0  ;;  %v614_v4 = vpop.f32.mrb[8].mxu1 }
 0x113   :  { %821 = vst.msk [vmem:[%s1896_s3 + $0x18] sm:$0xff] %vm817_vm4, %v756_v1  ;;  %853 = vst.msk [vmem:[%s1896_s3 + $0x118] sm:$0xff] %vm817_vm4, %v788_v2  ;;  %v455_v5 = vadd.f32 %v1571_v34, %v454_v3  ;;  %v615_v6 = vadd.f32 %v1571_v34, %v614_v4  ;;  %v456_v7 = vpop.f32.mrb[9].mxu0  ;;  %v616_v8 = vpop.f32.mrb[9].mxu1 }
 0x115   :  { %v757_v9 = vmax.f32 %v455_v5, 0.0  ;;  %v789_v10 = vmax.f32 %v615_v6, 0.0 }
 0x116   :  { %v459_v11 = vpop.f32.mrb[10].mxu0  ;;  %v619_v12 = vpop.f32.mrb[10].mxu1 }
 0x117   :  { %822 = vst.msk [vmem:[%s1896_s3 + $0x20] sm:$0xff] %vm817_vm4, %v757_v9  ;;  %854 = vst.msk [vmem:[%s1896_s3 + $0x120] sm:$0xff] %vm817_vm4, %v789_v10  ;;  %v460_v13 = vadd.f32 %v1571_v34, %v459_v11  ;;  %v620_v14 = vadd.f32 %v1571_v34, %v619_v12  ;;  %v461_v15 = vpop.f32.mrb[11].mxu0  ;;  %v621_v16 = vpop.f32.mrb[11].mxu1 }
 0x119   :  { %v758_v17 = vmax.f32 %v460_v13, 0.0  ;;  %v790_v18 = vmax.f32 %v620_v14, 0.0 }
 0x11a   :  { %v464_v19 = vpop.f32.mrb[12].mxu0  ;;  %v624_v20 = vpop.f32.mrb[12].mxu1 }
 0x11b   :  { %823 = vst.msk [vmem:[%s1896_s3 + $0x28] sm:$0xff] %vm817_vm4, %v758_v17  ;;  %855 = vst.msk [vmem:[%s1896_s3 + $0x128] sm:$0xff] %vm817_vm4, %v790_v18  ;;  %v465_v21 = vadd.f32 %v1571_v34, %v464_v19  ;;  %v625_v22 = vadd.f32 %v1571_v34, %v624_v20  ;;  %v466_v23 = vpop.f32.mrb[13].mxu0  ;;  %v626_v24 = vpop.f32.mrb[13].mxu1 }
 0x11d   :  { %v759_v25 = vmax.f32 %v465_v21, 0.0  ;;  %v791_v26 = vmax.f32 %v625_v22, 0.0 }
 0x11e   :  { %v469_v27 = vpop.f32.mrb[14].mxu0  ;;  %v629_v28 = vpop.f32.mrb[14].mxu1 }
 0x11f   :  { %824 = vst.msk [vmem:[%s1896_s3 + $0x30] sm:$0xff] %vm817_vm4, %v759_v25  ;;  %856 = vst.msk [vmem:[%s1896_s3 + $0x130] sm:$0xff] %vm817_vm4, %v791_v26  ;;  %v470_v29 = vadd.f32 %v1571_v34, %v469_v27  ;;  %v630_v30 = vadd.f32 %v1571_v34, %v629_v28  ;;  %v471_v31 = vpop.f32.mrb[15].mxu0  ;;  %v631_v32 = vpop.f32.mrb[15].mxu1 }
 0x121   :  { %v760_v33 = vmax.f32 %v470_v29, 0.0  ;;  %v792_v35 = vmax.f32 %v630_v30, 0.0 }
 0x122   :  { %v474_v36 = vpop.f32.mrb[16].mxu0  ;;  %v634_v37 = vpop.f32.mrb[16].mxu1 }
 0x123   :  { %825 = vst.msk [vmem:[%s1896_s3 + $0x38] sm:$0xff] %vm817_vm4, %v760_v33  ;;  %857 = vst.msk [vmem:[%s1896_s3 + $0x138] sm:$0xff] %vm817_vm4, %v792_v35  ;;  %v475_v38 = vadd.f32 %v1571_v34, %v474_v36  ;;  %v635_v39 = vadd.f32 %v1571_v34, %v634_v37  ;;  %v476_v40 = vpop.f32.mrb[17].mxu0  ;;  %v636_v41 = vpop.f32.mrb[17].mxu1 }
 0x125   :  { %v761_v42 = vmax.f32 %v475_v38, 0.0  ;;  %v793_v43 = vmax.f32 %v635_v39, 0.0 }
 0x126   :  { %v479_v44 = vpop.f32.mrb[18].mxu0  ;;  %v639_v45 = vpop.f32.mrb[18].mxu1 }
 0x127   :  { %826 = vst.msk [vmem:[%s1896_s3 + $0x40] sm:$0xff] %vm817_vm4, %v761_v42  ;;  %858 = vst.msk [vmem:[%s1896_s3 + $0x140] sm:$0xff] %vm817_vm4, %v793_v43  ;;  %v480_v46 = vadd.f32 %v1571_v34, %v479_v44  ;;  %v640_v47 = vadd.f32 %v1571_v34, %v639_v45  ;;  %v481_v48 = vpop.f32.mrb[19].mxu0  ;;  %v641_v49 = vpop.f32.mrb[19].mxu1 }
 0x129   :  { %v762_v50 = vmax.f32 %v480_v46, 0.0  ;;  %v794_v51 = vmax.f32 %v640_v47, 0.0 }
 0x12a   :  { %v484_v52 = vpop.f32.mrb[20].mxu0  ;;  %v644_v53 = vpop.f32.mrb[20].mxu1 }
 0x12b   :  { %827 = vst.msk [vmem:[%s1896_s3 + $0x48] sm:$0xff] %vm817_vm4, %v762_v50  ;;  %859 = vst.msk [vmem:[%s1896_s3 + $0x148] sm:$0xff] %vm817_vm4, %v794_v51  ;;  %v485_v54 = vadd.f32 %v1571_v34, %v484_v52  ;;  %v645_v55 = vadd.f32 %v1571_v34, %v644_v53  ;;  %v486_v56 = vpop.f32.mrb[21].mxu0  ;;  %v646_v57 = vpop.f32.mrb[21].mxu1 }
 0x12d   :  { %v763_v58 = vmax.f32 %v485_v54, 0.0  ;;  %v795_v59 = vmax.f32 %v645_v55, 0.0 }
 0x12e   :  { %v489_v60 = vpop.f32.mrb[22].mxu0  ;;  %v649_v61 = vpop.f32.mrb[22].mxu1 }
 0x12f   :  { %828 = vst.msk [vmem:[%s1896_s3 + $0x50] sm:$0xff] %vm817_vm4, %v763_v58  ;;  %860 = vst.msk [vmem:[%s1896_s3 + $0x150] sm:$0xff] %vm817_vm4, %v795_v59  ;;  %v490_v62 = vadd.f32 %v1571_v34, %v489_v60  ;;  %v650_v63 = vadd.f32 %v1571_v34, %v649_v61  ;;  %v491_v0 = vpop.f32.mrb[23].mxu0  ;;  %v651_v1 = vpop.f32.mrb[23].mxu1 }
 0x131   :  { %v764_v2 = vmax.f32 %v490_v62, 0.0  ;;  %v796_v3 = vmax.f32 %v650_v63, 0.0 }
 0x132   :  { %v494_v4 = vpop.f32.mrb[24].mxu0  ;;  %v654_v5 = vpop.f32.mrb[24].mxu1 }
 0x133   :  { %829 = vst.msk [vmem:[%s1896_s3 + $0x58] sm:$0xff] %vm817_vm4, %v764_v2  ;;  %861 = vst.msk [vmem:[%s1896_s3 + $0x158] sm:$0xff] %vm817_vm4, %v796_v3  ;;  %v495_v6 = vadd.f32 %v1571_v34, %v494_v4  ;;  %v655_v7 = vadd.f32 %v1571_v34, %v654_v5  ;;  %v496_v8 = vpop.f32.mrb[25].mxu0  ;;  %v656_v9 = vpop.f32.mrb[25].mxu1 }
 0x135   :  { %v765_v10 = vmax.f32 %v495_v6, 0.0  ;;  %v797_v11 = vmax.f32 %v655_v7, 0.0 }
 0x136   :  { %v499_v12 = vpop.f32.mrb[26].mxu0  ;;  %v659_v13 = vpop.f32.mrb[26].mxu1 }
 0x137   :  { %830 = vst.msk [vmem:[%s1896_s3 + $0x60] sm:$0xff] %vm817_vm4, %v765_v10  ;;  %862 = vst.msk [vmem:[%s1896_s3 + $0x160] sm:$0xff] %vm817_vm4, %v797_v11  ;;  %v500_v14 = vadd.f32 %v1571_v34, %v499_v12  ;;  %v660_v15 = vadd.f32 %v1571_v34, %v659_v13  ;;  %v501_v16 = vpop.f32.mrb[27].mxu0  ;;  %v661_v17 = vpop.f32.mrb[27].mxu1 }
 0x139   :  { %v766_v18 = vmax.f32 %v500_v14, 0.0  ;;  %v798_v19 = vmax.f32 %v660_v15, 0.0 }
 0x13a   :  { %v504_v20 = vpop.f32.mrb[28].mxu0  ;;  %v664_v21 = vpop.f32.mrb[28].mxu1 }
 0x13b   :  { %831 = vst.msk [vmem:[%s1896_s3 + $0x68] sm:$0xff] %vm817_vm4, %v766_v18  ;;  %863 = vst.msk [vmem:[%s1896_s3 + $0x168] sm:$0xff] %vm817_vm4, %v798_v19  ;;  %v505_v22 = vadd.f32 %v1571_v34, %v504_v20  ;;  %v665_v23 = vadd.f32 %v1571_v34, %v664_v21  ;;  %v506_v24 = vpop.f32.mrb[29].mxu0  ;;  %v666_v25 = vpop.f32.mrb[29].mxu1 }
 0x13d   :  { %v767_v26 = vmax.f32 %v505_v22, 0.0  ;;  %v799_v27 = vmax.f32 %v665_v23, 0.0 }
 0x13e   :  { %v509_v28 = vpop.f32.mrb[30].mxu0  ;;  %v669_v29 = vpop.f32.mrb[30].mxu1 }
 0x13f   :  { %832 = vst.msk [vmem:[%s1896_s3 + $0x70] sm:$0xff] %vm817_vm4, %v767_v26  ;;  %864 = vst.msk [vmem:[%s1896_s3 + $0x170] sm:$0xff] %vm817_vm4, %v799_v27  ;;  %v510_v30 = vadd.f32 %v1571_v34, %v509_v28  ;;  %v670_v31 = vadd.f32 %v1571_v34, %v669_v29  ;;  %v511_v32 = vpop.f32.mrb[31].mxu0  ;;  %v671_v33 = vpop.f32.mrb[31].mxu1 }
 0x141   :  { %v768_v35 = vmax.f32 %v510_v30, 0.0  ;;  %v800_v36 = vmax.f32 %v670_v31, 0.0 }
 0x142   :  { %v514_v37 = vpop.f32.mrb[32].mxu0  ;;  %v674_v38 = vpop.f32.mrb[32].mxu1 }
 0x143   :  { %833 = vst.msk [vmem:[%s1896_s3 + $0x78] sm:$0xff] %vm817_vm4, %v768_v35  ;;  %865 = vst.msk [vmem:[%s1896_s3 + $0x178] sm:$0xff] %vm817_vm4, %v800_v36  ;;  %v515_v39 = vadd.f32 %v1571_v34, %v514_v37  ;;  %v675_v40 = vadd.f32 %v1571_v34, %v674_v38  ;;  %v516_v41 = vpop.f32.mrb[33].mxu0  ;;  %v676_v42 = vpop.f32.mrb[33].mxu1 }
 0x145   :  { %v769_v43 = vmax.f32 %v515_v39, 0.0  ;;  %v801_v44 = vmax.f32 %v675_v40, 0.0 }
 0x146   :  { %v519_v45 = vpop.f32.mrb[34].mxu0  ;;  %v679_v46 = vpop.f32.mrb[34].mxu1 }
 0x147   :  { %834 = vst.msk [vmem:[%s1896_s3 + $0x80] sm:$0xff] %vm817_vm4, %v769_v43  ;;  %866 = vst.msk [vmem:[%s1896_s3 + $0x180] sm:$0xff] %vm817_vm4, %v801_v44  ;;  %v520_v47 = vadd.f32 %v1571_v34, %v519_v45  ;;  %v680_v48 = vadd.f32 %v1571_v34, %v679_v46  ;;  %v521_v49 = vpop.f32.mrb[35].mxu0  ;;  %v681_v50 = vpop.f32.mrb[35].mxu1 }
 0x149   :  { %v770_v51 = vmax.f32 %v520_v47, 0.0  ;;  %v802_v52 = vmax.f32 %v680_v48, 0.0 }
 0x14a   :  { %v524_v53 = vpop.f32.mrb[36].mxu0  ;;  %v684_v54 = vpop.f32.mrb[36].mxu1 }
 0x14b   :  { %835 = vst.msk [vmem:[%s1896_s3 + $0x88] sm:$0xff] %vm817_vm4, %v770_v51  ;;  %867 = vst.msk [vmem:[%s1896_s3 + $0x188] sm:$0xff] %vm817_vm4, %v802_v52  ;;  %v525_v55 = vadd.f32 %v1571_v34, %v524_v53  ;;  %v685_v56 = vadd.f32 %v1571_v34, %v684_v54  ;;  %v526_v57 = vpop.f32.mrb[37].mxu0  ;;  %v686_v58 = vpop.f32.mrb[37].mxu1 }
 0x14d   :  { %v771_v59 = vmax.f32 %v525_v55, 0.0  ;;  %v803_v60 = vmax.f32 %v685_v56, 0.0 }
 0x14e   :  { %v529_v61 = vpop.f32.mrb[38].mxu0  ;;  %v689_v62 = vpop.f32.mrb[38].mxu1 }
 0x14f   :  { %836 = vst.msk [vmem:[%s1896_s3 + $0x90] sm:$0xff] %vm817_vm4, %v771_v59  ;;  %868 = vst.msk [vmem:[%s1896_s3 + $0x190] sm:$0xff] %vm817_vm4, %v803_v60  ;;  %v530_v63 = vadd.f32 %v1571_v34, %v529_v61  ;;  %v690_v0 = vadd.f32 %v1571_v34, %v689_v62  ;;  %v531_v1 = vpop.f32.mrb[39].mxu0  ;;  %v691_v2 = vpop.f32.mrb[39].mxu1 }
 0x151   :  { %v772_v3 = vmax.f32 %v530_v63, 0.0  ;;  %v804_v4 = vmax.f32 %v690_v0, 0.0 }
 0x152   :  { %v534_v5 = vpop.f32.mrb[40].mxu0  ;;  %v694_v6 = vpop.f32.mrb[40].mxu1 }
 0x153   :  { %837 = vst.msk [vmem:[%s1896_s3 + $0x98] sm:$0xff] %vm817_vm4, %v772_v3  ;;  %869 = vst.msk [vmem:[%s1896_s3 + $0x198] sm:$0xff] %vm817_vm4, %v804_v4  ;;  %v535_v7 = vadd.f32 %v1571_v34, %v534_v5  ;;  %v695_v8 = vadd.f32 %v1571_v34, %v694_v6  ;;  %v536_v9 = vpop.f32.mrb[41].mxu0  ;;  %v696_v10 = vpop.f32.mrb[41].mxu1 }
 0x155   :  { %v773_v11 = vmax.f32 %v535_v7, 0.0  ;;  %v805_v12 = vmax.f32 %v695_v8, 0.0 }
 0x156   :  { %v539_v13 = vpop.f32.mrb[42].mxu0  ;;  %v699_v14 = vpop.f32.mrb[42].mxu1 }
 0x157   :  { %838 = vst.msk [vmem:[%s1896_s3 + $0xa0] sm:$0xff] %vm817_vm4, %v773_v11  ;;  %870 = vst.msk [vmem:[%s1896_s3 + $0x1a0] sm:$0xff] %vm817_vm4, %v805_v12  ;;  %v540_v15 = vadd.f32 %v1571_v34, %v539_v13  ;;  %v700_v16 = vadd.f32 %v1571_v34, %v699_v14  ;;  %v541_v17 = vpop.f32.mrb[43].mxu0  ;;  %v701_v18 = vpop.f32.mrb[43].mxu1 }
 0x159   :  { %v774_v19 = vmax.f32 %v540_v15, 0.0  ;;  %v806_v20 = vmax.f32 %v700_v16, 0.0 }
 0x15a   :  { %v544_v21 = vpop.f32.mrb[44].mxu0  ;;  %v704_v22 = vpop.f32.mrb[44].mxu1 }
 0x15b   :  { %839 = vst.msk [vmem:[%s1896_s3 + $0xa8] sm:$0xff] %vm817_vm4, %v774_v19  ;;  %871 = vst.msk [vmem:[%s1896_s3 + $0x1a8] sm:$0xff] %vm817_vm4, %v806_v20  ;;  %v545_v23 = vadd.f32 %v1571_v34, %v544_v21  ;;  %v705_v24 = vadd.f32 %v1571_v34, %v704_v22  ;;  %v546_v25 = vpop.f32.mrb[45].mxu0  ;;  %v706_v26 = vpop.f32.mrb[45].mxu1 }
 0x15d   :  { %v775_v27 = vmax.f32 %v545_v23, 0.0  ;;  %v807_v28 = vmax.f32 %v705_v24, 0.0 }
 0x15e   :  { %v549_v29 = vpop.f32.mrb[46].mxu0  ;;  %v709_v30 = vpop.f32.mrb[46].mxu1 }
 0x15f   :  { %840 = vst.msk [vmem:[%s1896_s3 + $0xb0] sm:$0xff] %vm817_vm4, %v775_v27  ;;  %872 = vst.msk [vmem:[%s1896_s3 + $0x1b0] sm:$0xff] %vm817_vm4, %v807_v28  ;;  %v550_v31 = vadd.f32 %v1571_v34, %v549_v29  ;;  %v710_v32 = vadd.f32 %v1571_v34, %v709_v30  ;;  %v551_v33 = vpop.f32.mrb[47].mxu0  ;;  %v711_v35 = vpop.f32.mrb[47].mxu1 }
 0x161   :  { %v776_v36 = vmax.f32 %v550_v31, 0.0  ;;  %v808_v37 = vmax.f32 %v710_v32, 0.0 }
 0x162   :  { %v554_v38 = vpop.f32.mrb[48].mxu0  ;;  %v714_v39 = vpop.f32.mrb[48].mxu1 }
 0x163   :  { %841 = vst.msk [vmem:[%s1896_s3 + $0xb8] sm:$0xff] %vm817_vm4, %v776_v36  ;;  %873 = vst.msk [vmem:[%s1896_s3 + $0x1b8] sm:$0xff] %vm817_vm4, %v808_v37  ;;  %v555_v40 = vadd.f32 %v1571_v34, %v554_v38  ;;  %v715_v41 = vadd.f32 %v1571_v34, %v714_v39  ;;  %v556_v42 = vpop.f32.mrb[49].mxu0  ;;  %v716_v43 = vpop.f32.mrb[49].mxu1 }
 0x165   :  { %v777_v44 = vmax.f32 %v555_v40, 0.0  ;;  %v809_v45 = vmax.f32 %v715_v41, 0.0 }
 0x166   :  { %v559_v46 = vpop.f32.mrb[50].mxu0  ;;  %v719_v47 = vpop.f32.mrb[50].mxu1 }
 0x167   :  { %842 = vst.msk [vmem:[%s1896_s3 + $0xc0] sm:$0xff] %vm817_vm4, %v777_v44  ;;  %874 = vst.msk [vmem:[%s1896_s3 + $0x1c0] sm:$0xff] %vm817_vm4, %v809_v45  ;;  %v560_v48 = vadd.f32 %v1571_v34, %v559_v46  ;;  %v720_v49 = vadd.f32 %v1571_v34, %v719_v47  ;;  %v561_v50 = vpop.f32.mrb[51].mxu0  ;;  %v721_v51 = vpop.f32.mrb[51].mxu1 }
 0x169   :  { %v778_v52 = vmax.f32 %v560_v48, 0.0  ;;  %v810_v53 = vmax.f32 %v720_v49, 0.0 }
 0x16a   :  { %v564_v54 = vpop.f32.mrb[52].mxu0  ;;  %v724_v55 = vpop.f32.mrb[52].mxu1 }
 0x16b   :  { %843 = vst.msk [vmem:[%s1896_s3 + $0xc8] sm:$0xff] %vm817_vm4, %v778_v52  ;;  %875 = vst.msk [vmem:[%s1896_s3 + $0x1c8] sm:$0xff] %vm817_vm4, %v810_v53  ;;  %v565_v56 = vadd.f32 %v1571_v34, %v564_v54  ;;  %v725_v57 = vadd.f32 %v1571_v34, %v724_v55  ;;  %v566_v58 = vpop.f32.mrb[53].mxu0  ;;  %v726_v59 = vpop.f32.mrb[53].mxu1 }
 0x16d   :  { %v779_v60 = vmax.f32 %v565_v56, 0.0  ;;  %v811_v61 = vmax.f32 %v725_v57, 0.0 }
 0x16e   :  { %v569_v62 = vpop.f32.mrb[54].mxu0  ;;  %v729_v63 = vpop.f32.mrb[54].mxu1 }
 0x16f   :  { %844 = vst.msk [vmem:[%s1896_s3 + $0xd0] sm:$0xff] %vm817_vm4, %v779_v60  ;;  %876 = vst.msk [vmem:[%s1896_s3 + $0x1d0] sm:$0xff] %vm817_vm4, %v811_v61  ;;  %v570_v0 = vadd.f32 %v1571_v34, %v569_v62  ;;  %v730_v1 = vadd.f32 %v1571_v34, %v729_v63  ;;  %v571_v2 = vpop.f32.mrb[55].mxu0  ;;  %v731_v3 = vpop.f32.mrb[55].mxu1 }
 0x171   :  { %v780_v4 = vmax.f32 %v570_v0, 0.0  ;;  %v812_v5 = vmax.f32 %v730_v1, 0.0 }
 0x172   :  { %v574_v6 = vpop.f32.mrb[56].mxu0  ;;  %v734_v7 = vpop.f32.mrb[56].mxu1 }
 0x173   :  { %845 = vst.msk [vmem:[%s1896_s3 + $0xd8] sm:$0xff] %vm817_vm4, %v780_v4  ;;  %877 = vst.msk [vmem:[%s1896_s3 + $0x1d8] sm:$0xff] %vm817_vm4, %v812_v5  ;;  %v575_v8 = vadd.f32 %v1571_v34, %v574_v6  ;;  %v735_v9 = vadd.f32 %v1571_v34, %v734_v7  ;;  %v576_v10 = vpop.f32.mrb[57].mxu0  ;;  %v736_v11 = vpop.f32.mrb[57].mxu1 }
 0x175   :  { %v781_v12 = vmax.f32 %v575_v8, 0.0  ;;  %v813_v13 = vmax.f32 %v735_v9, 0.0 }
 0x176   :  { %v579_v14 = vpop.f32.mrb[58].mxu0  ;;  %v739_v15 = vpop.f32.mrb[58].mxu1 }
 0x177   :  { %846 = vst.msk [vmem:[%s1896_s3 + $0xe0] sm:$0xff] %vm817_vm4, %v781_v12  ;;  %878 = vst.msk [vmem:[%s1896_s3 + $0x1e0] sm:$0xff] %vm817_vm4, %v813_v13  ;;  %v580_v16 = vadd.f32 %v1571_v34, %v579_v14  ;;  %v740_v17 = vadd.f32 %v1571_v34, %v739_v15  ;;  %v581_v18 = vpop.f32.mrb[59].mxu0  ;;  %v741_v19 = vpop.f32.mrb[59].mxu1 }
 0x179   :  { %v782_v20 = vmax.f32 %v580_v16, 0.0  ;;  %v814_v21 = vmax.f32 %v740_v17, 0.0 }
 0x17a   :  { %v584_v22 = vpop.f32.mrb[60].mxu0  ;;  %v744_v23 = vpop.f32.mrb[60].mxu1 }
 0x17b   :  { %847 = vst.msk [vmem:[%s1896_s3 + $0xe8] sm:$0xff] %vm817_vm4, %v782_v20  ;;  %879 = vst.msk [vmem:[%s1896_s3 + $0x1e8] sm:$0xff] %vm817_vm4, %v814_v21  ;;  %v585_v24 = vadd.f32 %v1571_v34, %v584_v22  ;;  %v745_v25 = vadd.f32 %v1571_v34, %v744_v23  ;;  %v586_v26 = vpop.f32.mrb[61].mxu0  ;;  %v746_v27 = vpop.f32.mrb[61].mxu1 }
 0x17d   :  { %v783_v28 = vmax.f32 %v585_v24, 0.0  ;;  %v815_v29 = vmax.f32 %v745_v25, 0.0 }
 0x17e   :  { %v589_v30 = vpop.f32.mrb[62].mxu0  ;;  %v749_v31 = vpop.f32.mrb[62].mxu1 }
 0x17f   :  { %848 = vst.msk [vmem:[%s1896_s3 + $0xf0] sm:$0xff] %vm817_vm4, %v783_v28  ;;  %880 = vst.msk [vmem:[%s1896_s3 + $0x1f0] sm:$0xff] %vm817_vm4, %v815_v29  ;;  %v590_v32 = vadd.f32 %v1571_v34, %v589_v30  ;;  %v750_v33 = vadd.f32 %v1571_v34, %v749_v31  ;;  %v591_v35 = vpop.f32.mrb[63].mxu0  ;;  %v751_v36 = vpop.f32.mrb[63].mxu1 }
 0x181   :  { %v784_v37 = vmax.f32 %v590_v32, 0.0  ;;  %v816_v38 = vmax.f32 %v750_v33, 0.0 }
 0x183   :  { %849 = vst.msk [vmem:[%s1896_s3 + $0xf8] sm:$0xff] %vm817_vm4, %v784_v37  ;;  %881 = vst.msk [vmem:[%s1896_s3 + $0x1f8] sm:$0xff] %vm817_vm4, %v816_v38 }

</bundles_post_ra>
